<compile_context>
chip_gen: v7x
topology: tpu7x:2x2x1
jax: 0.10.0
libtpu: 0.0.40
codegen_flags: <defaults>
</compile_context>

<pallas_src>
import functools
import numpy as np
import jax
import jax.numpy as jnp
from jax.experimental import pallas as pl
from jax.experimental.pallas import tpu as pltpu

# ----------------------- hyperparameters (module __init__ args) -----------------------
NUM_SEQUENCE = 16
NUM_AUDIO_FEATURE = 16
NUM_METADATA_FEATURE = 8
NUM_TARGET = 4
NUM_RNN_LAYER = 2
NUM_METADATA_LAYER = 2        # metaDataModel is constructed in torch but never used in forward
NUM_DECODER_LAYER = 1
BATCH = 2

HIDDEN = NUM_AUDIO_FEATURE // NUM_RNN_LAYER                 # 8
RNN_OUTPUT_SHAPE = HIDDEN * NUM_SEQUENCE                    # 128  (lane-dense flatten)
RNN_PLUS_META = RNN_OUTPUT_SHAPE + NUM_METADATA_FEATURE     # 136


def _nodes_list(num_target, rnn_plus_meta, num_decoder_layer):
    # [int(i // 1) for i in reversed(linspace(numTarget, RNNplusMeta, numDecoderLayer + 2))]
    vals = np.linspace(num_target, rnn_plus_meta, num_decoder_layer + 2)
    return [int(float(v) // 1) for v in reversed(vals.tolist())]


NODES = _nodes_list(NUM_TARGET, RNN_PLUS_META, NUM_DECODER_LAYER)   # [136, 70, 4]
assert len(NODES) == 3, "kernel is specialised to numDecoderLayer == 1"


def _gru_row_offsets():
    """Row offsets of each GRU weight/bias block inside the packed (rows, 3H) slab."""
    offs, row, in_size = [], 0, NUM_AUDIO_FEATURE
    for _ in range(NUM_RNN_LAYER):
        o_wih = row; row += in_size          # W_ih^T  (in_size, 3H)
        o_whh = row; row += HIDDEN           # W_hh^T  (H, 3H)
        o_bih = row; row += 1                # b_ih    (1, 3H)
        o_bhh = row; row += 1                # b_hh    (1, 3H)
        offs.append((o_wih, in_size, o_whh, o_bih, o_bhh))
        in_size = HIDDEN
    return offs, row


GRU_OFFS, GRU_SLAB_ROWS = _gru_row_offsets()                 # 44 rows x 24 cols


# ----------------------- fused Pallas kernel -------------------------------------------
def _sigmoid(x):
    # single EUP tanh (avoids an extra exp + divide)
    return 0.5 * (jnp.tanh(0.5 * x) + 1.0)


def _fused_only_rnn_kernel(x_ref, meta_ref, h0_ref, gru_ref, dec0_ref, dec1_ref,
                           out_ref, flat_ref, *, batch):
    """Whole forward pass (2-layer GRU wavefront -> flatten -> decoder -> softmax)."""
    B, H, S = batch, HIDDEN, NUM_SEQUENCE
    H2 = 2 * HIDDEN

    # ---- hoist all weight loads / bf16 casts / per-gate splits out of the time loop ----
    def load_layer(o_wih, in_size, o_whh, o_bih, o_bhh):
        w_ih = gru_ref[o_wih:o_wih + in_size, :].astype(jnp.bfloat16)    # (in, 3H)
        w_hh = gru_ref[o_whh:o_whh + H, :]                               # (H, 3H) f32
        w_rz = w_hh[:, :H2].astype(jnp.bfloat16)                         # (H, 2H)
        w_n = w_hh[:, H2:].astype(jnp.bfloat16)                          # (H, H) -> lanes 0:H
        b_ih = gru_ref[o_bih:o_bih + 1, :]                               # (1, 3H) f32
        b_hh = gru_ref[o_bhh:o_bhh + 1, :]                               # (1, 3H) f32
        return w_ih, w_rz, w_n, b_ih, b_hh[:, :H2], b_hh[:, H2:]

    layers = [load_layer(*GRU_OFFS[l]) for l in range(NUM_RNN_LAYER)]

    # ---- batched layer-1 input projection: ONE MXU matmul for all S timesteps ----
    x = x_ref[...].astype(jnp.bfloat16)                                  # (S*B, F) time-major
    gi0_all = (jnp.dot(x, layers[0][0], preferred_element_type=jnp.float32)
               + layers[0][3])                                           # (S*B, 3H) f32

    def gru_cell(gi, h, w_rz, w_n, b_rz, b_n):
        # PyTorch GRU gate equations, gate order r, z, n.
        hb = h.astype(jnp.bfloat16)
        gh_rz = jnp.dot(hb, w_rz, preferred_element_type=jnp.float32) + b_rz   # (B, 2H)
        gh_n = jnp.dot(hb, w_n, preferred_element_type=jnp.float32) + b_n      # (B, H)
        rz = _sigmoid(gi[:, :H2] + gh_rz)       # r and z in ONE EUP round-trip
        r = rz[:, :H]
        z = rz[:, H:H2]                         # lane shift hides under the tanh below
        n = jnp.tanh(gi[:, H2:] + r * gh_n)
        return n + z * (h - n)                  # == (1 - z) * n + z * h

    hs = [h0_ref[l * B:(l + 1) * B, :] for l in range(NUM_RNN_LAYER)]    # (B, H) each

    # ---- explicit wavefront: layer l step t issues right after layer l-1 step t ----
    for t in range(S):
        below = None
        for l in range(NUM_RNN_LAYER):
            w_ih, w_rz, w_n, b_ih, b_rz, b_n = layers[l]
            if l == 0:
                gi = gi0_all[t * B:(t + 1) * B, :]   # precomputed; off the serial chain
            else:
                gi = (jnp.dot(below.astype(jnp.bfloat16), w_ih,
                              preferred_element_type=jnp.float32) + b_ih)
            hs[l] = gru_cell(gi, hs[l], w_rz, w_n, b_rz, b_n)
            below = hs[l]
        # build the lane-dense (B, S*H) slab directly (replaces 16-way lane concat)
        flat_ref[:, t * H:(t + 1) * H] = hs[-1]

    # ---- decoder: concat([flattened GRU output, metaData]) folded into two matmuls ----
    flat = flat_ref[...]                                                 # (B, 128) f32
    w0a = dec0_ref[0:RNN_OUTPUT_SHAPE, :]                                # (128, 70)
    w0b = dec0_ref[RNN_OUTPUT_SHAPE:RNN_PLUS_META, :]                    # (8, 70)
    b0 = dec0_ref[RNN_PLUS_META:RNN_PLUS_META + 1, :]                    # (1, 70)
    y = (jnp.dot(flat, w0a, preferred_element_type=jnp.float32)
         + jnp.dot(meta_ref[...], w0b, preferred_element_type=jnp.float32)
         + b0)
    # second decoder Linear (torch Sequential has no inter-layer activation)
    w1 = dec1_ref[0:NODES[1], :]                                         # (70, 4)
    b1 = dec1_ref[NODES[1]:NODES[1] + 1, :]                              # (1, 4)
    y = jnp.dot(y, w1, preferred_element_type=jnp.float32) + b1

    # nn.Softmax(dim=1) — exact division (runs once, off the critical chain)
    m = jnp.max(y, axis=1, keepdims=True)
    e = jnp.exp(y - m)
    out_ref[...] = (e / jnp.sum(e, axis=1, keepdims=True)).astype(out_ref.dtype)


# ----------------------- wrapper --------------------------------------------------------
@jax.jit
def only_rnn_forward(audio, meta, h0, gru_slab, dec0_slab, dec1_slab):
    B, S, F = audio.shape
    # time-major flatten so per-timestep gi slices inside the kernel are contiguous rows
    x_flat = jnp.transpose(audio, (1, 0, 2)).reshape(S * B, F)
    h0_flat = h0.reshape(NUM_RNN_LAYER * B, HIDDEN)

    kernel = functools.partial(_fused_only_rnn_kernel, batch=B)
    vmem = pltpu.MemorySpace.VMEM
    # Single grid-free pallas_call: every operand is one full-array VMEM block.
    # TODO(synk): at B=2 one TensorCore is used; for batched deployments on v7x add a
    # grid over batch with dimension_semantics=("parallel",) to use both TCs.
    return pl.pallas_call(
        kernel,
        out_shape=jax.ShapeDtypeStruct((B, NUM_TARGET), jnp.float32),
        in_specs=[pl.BlockSpec(memory_space=vmem)] * 6,
        out_specs=pl.BlockSpec(memory_space=vmem),
        scratch_shapes=[pltpu.VMEM((B, RNN_OUTPUT_SHAPE), jnp.float32)],
    )(x_flat, meta, h0_flat, gru_slab, dec0_slab, dec1_slab)


# ----------------------- deterministic parameter init (packed slabs) -------------------
def init_params(key):
    """Pack all weights into 3 f32 slabs (GRU, decoder0, decoder1).

    NOTE: weights are generated directly in (fan_in, fan_out) layout; a real torch
    checkpoint stores nn.Linear / nn.GRU weights as (out, in) and must be transposed.
    """
    # nn.GRU init: U(-1/sqrt(hidden), 1/sqrt(hidden)) for all weights/biases
    bound = 1.0 / np.sqrt(HIDDEN)
    rows, in_size = [], NUM_AUDIO_FEATURE
    for _ in range(NUM_RNN_LAYER):
        key, k1, k2, k3, k4 = jax.random.split(key, 5)
        w_ih = jax.random.uniform(k1, (3 * HIDDEN, in_size), jnp.float32, -bound, bound)
        w_hh = jax.random.uniform(k2, (3 * HIDDEN, HIDDEN), jnp.float32, -bound, bound)
        b_ih = jax.random.uniform(k3, (1, 3 * HIDDEN), jnp.float32, -bound, bound)
        b_hh = jax.random.uniform(k4, (1, 3 * HIDDEN), jnp.float32, -bound, bound)
        rows += [w_ih.T, w_hh.T, b_ih, b_hh]        # pre-transposed so kernel does x @ W
        in_size = HIDDEN
    gru_slab = jnp.concatenate(rows, axis=0)
    assert gru_slab.shape == (GRU_SLAB_ROWS, 3 * HIDDEN)

    # decoder Linears: nodes [136, 70, 4] for numDecoderLayer=1; nn.Linear-style init
    key, k1, k2 = jax.random.split(key, 3)
    bnd = 1.0 / np.sqrt(NODES[0])
    w0 = jax.random.uniform(k1, (NODES[0], NODES[1]), jnp.float32, -bnd, bnd)
    b0 = jax.random.uniform(k2, (1, NODES[1]), jnp.float32, -bnd, bnd)
    dec0_slab = jnp.concatenate([w0, b0], axis=0)   # (137, 70): rows 0:128 audio, 128:136 meta, 136 bias

    key, k1, k2 = jax.random.split(key, 3)
    bnd = 1.0 / np.sqrt(NODES[1])
    w1 = jax.random.uniform(k1, (NODES[1], NODES[2]), jnp.float32, -bnd, bnd)
    b1 = jax.random.uniform(k2, (1, NODES[2]), jnp.float32, -bnd, bnd)
    dec1_slab = jnp.concatenate([w1, b1], axis=0)   # (71, 4)

    # TODO(synk): the torch metaDataModel Linear stack is dead code in forward
    # (`'self.metaDataModel' in globals()` is always False); its weights are omitted.
    return gru_slab, dec0_slab, dec1_slab


# ----------------------- pure-JAX f32 reference (correctness check) --------------------
@jax.jit
def _reference_forward(audio, meta, h0, gru_slab, dec0_slab, dec1_slab):
    B, S, F = audio.shape
    layer_in = [audio[:, t, :] for t in range(S)]
    for l, (o_wih, in_size, o_whh, o_bih, o_bhh) in enumerate(GRU_OFFS):
        w_ih = gru_slab[o_wih:o_wih + in_size, :]
        w_hh = gru_slab[o_whh:o_whh + HIDDEN, :]
        b_ih = gru_slab[o_bih, :]
        b_hh = gru_slab[o_bhh, :]
        h = h0[l]
        outs = []
        for t in range(S):
            gi = layer_in[t] @ w_ih + b_ih
            gh = h @ w_hh + b_hh
            r = jax.nn.sigmoid(gi[:, :HIDDEN] + gh[:, :HIDDEN])
            z = jax.nn.sigmoid(gi[:, HIDDEN:2 * HIDDEN] + gh[:, HIDDEN:2 * HIDDEN])
            n = jnp.tanh(gi[:, 2 * HIDDEN:] + r * gh[:, 2 * HIDDEN:])
            h = (1.0 - z) * n + z * h
            outs.append(h)
        layer_in = outs
    flat = jnp.concatenate(layer_in, axis=1)
    y = jnp.concatenate([flat, meta], axis=1) @ dec0_slab[:RNN_PLUS_META, :] + dec0_slab[RNN_PLUS_META, :]
    y = y @ dec1_slab[:NODES[1], :] + dec1_slab[NODES[1], :]
    return jax.nn.softmax(y, axis=1)


# ----------------------- main -----------------------------------------------------------
if __name__ == "__main__":
    key = jax.random.PRNGKey(0)
    pkey, akey, mkey, hkey = jax.random.split(key, 4)
    gru_slab, dec0_slab, dec1_slab = init_params(pkey)

    audio = jax.random.normal(akey, (BATCH, NUM_SEQUENCE, NUM_AUDIO_FEATURE), jnp.float32)
    meta = jax.random.normal(mkey, (BATCH, NUM_METADATA_FEATURE), jnp.float32)
    # torch draws a fresh randn hidden state each forward; reproduced deterministically
    h0 = jax.random.normal(hkey, (NUM_RNN_LAYER, BATCH, HIDDEN), jnp.float32)

    out = only_rnn_forward(audio, meta, h0, gru_slab, dec0_slab, dec1_slab)
    out = jax.block_until_ready(out)

    assert out.shape == (BATCH, NUM_TARGET), out.shape
    out_np = np.asarray(out)
    assert np.allclose(out_np.sum(axis=1), 1.0, atol=1e-4), out_np.sum(axis=1)
    assert np.all(out_np >= 0.0) and np.all(np.isfinite(out_np))

    # parity vs pure-JAX f32 reference (kernel recurrence matmuls run in bf16)
    ref = np.asarray(_reference_forward(audio, meta, h0, gru_slab, dec0_slab, dec1_slab))
    assert np.allclose(out_np, ref, atol=3e-2), np.abs(out_np - ref).max()

    print("KERNEL_OK")
</pallas_src>

<mosaic_0001>
module attributes {stable_mosaic.version = 11 : i64} {
  func.func @_fused_only_rnn_kernel(%arg0: memref<32x16xf32, #tpu.memory_space<vmem>>, %arg1: memref<2x8xf32, #tpu.memory_space<vmem>>, %arg2: memref<4x8xf32, #tpu.memory_space<vmem>>, %arg3: memref<44x24xf32, #tpu.memory_space<vmem>>, %arg4: memref<137x70xf32, #tpu.memory_space<vmem>>, %arg5: memref<71x4xf32, #tpu.memory_space<vmem>>, %arg6: memref<2x4xf32, #tpu.memory_space<vmem>>, %arg7: memref<2x128xf32, #tpu.memory_space<vmem>>) attributes {dimension_semantics = [], scalar_prefetch = 0 : i64, scratch_operands = 1 : i64, tpu.core_type = #tpu.core_type<tc>} {
    %c0 = arith.constant 0 : index
    %c0_0 = arith.constant 0 : index
    %0 = vector.load %arg3[%c0, %c0_0] : memref<44x24xf32, #tpu.memory_space<vmem>>, vector<16x24xf32>
    %1 = arith.truncf %0 : vector<16x24xf32> to vector<16x24xbf16>
    %c16 = arith.constant 16 : index
    %c0_1 = arith.constant 0 : index
    %2 = vector.load %arg3[%c16, %c0_1] : memref<44x24xf32, #tpu.memory_space<vmem>>, vector<8x24xf32>
    %3 = vector.extract_strided_slice %2 {offsets = [0, 0], sizes = [8, 16], strides = [1, 1]} : vector<8x24xf32> to vector<8x16xf32>
    %4 = arith.truncf %3 : vector<8x16xf32> to vector<8x16xbf16>
    %5 = vector.extract_strided_slice %2 {offsets = [0, 16], sizes = [8, 8], strides = [1, 1]} : vector<8x24xf32> to vector<8x8xf32>
    %6 = arith.truncf %5 : vector<8x8xf32> to vector<8x8xbf16>
    %c24 = arith.constant 24 : index
    %c0_2 = arith.constant 0 : index
    %7 = vector.load %arg3[%c24, %c0_2] : memref<44x24xf32, #tpu.memory_space<vmem>>, vector<1x24xf32>
    %c25 = arith.constant 25 : index
    %c0_3 = arith.constant 0 : index
    %8 = vector.load %arg3[%c25, %c0_3] : memref<44x24xf32, #tpu.memory_space<vmem>>, vector<1x24xf32>
    %9 = vector.extract_strided_slice %8 {offsets = [0, 0], sizes = [1, 16], strides = [1, 1]} : vector<1x24xf32> to vector<1x16xf32>
    %10 = vector.extract_strided_slice %8 {offsets = [0, 16], sizes = [1, 8], strides = [1, 1]} : vector<1x24xf32> to vector<1x8xf32>
    %c26 = arith.constant 26 : index
    %c0_4 = arith.constant 0 : index
    %11 = vector.load %arg3[%c26, %c0_4] : memref<44x24xf32, #tpu.memory_space<vmem>>, vector<8x24xf32>
    %12 = arith.truncf %11 : vector<8x24xf32> to vector<8x24xbf16>
    %c34 = arith.constant 34 : index
    %c0_5 = arith.constant 0 : index
    %13 = vector.load %arg3[%c34, %c0_5] : memref<44x24xf32, #tpu.memory_space<vmem>>, vector<8x24xf32>
    %14 = vector.extract_strided_slice %13 {offsets = [0, 0], sizes = [8, 16], strides = [1, 1]} : vector<8x24xf32> to vector<8x16xf32>
    %15 = arith.truncf %14 : vector<8x16xf32> to vector<8x16xbf16>
    %16 = vector.extract_strided_slice %13 {offsets = [0, 16], sizes = [8, 8], strides = [1, 1]} : vector<8x24xf32> to vector<8x8xf32>
    %17 = arith.truncf %16 : vector<8x8xf32> to vector<8x8xbf16>
    %c42 = arith.constant 42 : index
    %c0_6 = arith.constant 0 : index
    %18 = vector.load %arg3[%c42, %c0_6] : memref<44x24xf32, #tpu.memory_space<vmem>>, vector<1x24xf32>
    %c43 = arith.constant 43 : index
    %c0_7 = arith.constant 0 : index
    %19 = vector.load %arg3[%c43, %c0_7] : memref<44x24xf32, #tpu.memory_space<vmem>>, vector<1x24xf32>
    %20 = vector.extract_strided_slice %19 {offsets = [0, 0], sizes = [1, 16], strides = [1, 1]} : vector<1x24xf32> to vector<1x16xf32>
    %21 = vector.extract_strided_slice %19 {offsets = [0, 16], sizes = [1, 8], strides = [1, 1]} : vector<1x24xf32> to vector<1x8xf32>
    %c0_8 = arith.constant 0 : index
    %c0_9 = arith.constant 0 : index
    %22 = vector.load %arg0[%c0_8, %c0_9] : memref<32x16xf32, #tpu.memory_space<vmem>>, vector<32x16xf32>
    %23 = arith.truncf %22 : vector<32x16xf32> to vector<32x16xbf16>
    %cst = arith.constant dense<0.000000e+00> : vector<32x24xf32>
    %24 = tpu.matmul %23, %1, %cst {dimension_numbers = #tpu.dot_dimension_numbers<[1], [0], [0], [1], [0, 0, 1, 1], [], []>} : vector<32x16xbf16>, vector<16x24xbf16>, vector<32x24xf32> -> vector<32x24xf32>
    %25 = vector.broadcast %7 : vector<1x24xf32> to vector<32x24xf32>
    %26 = arith.addf %24, %25 : vector<32x24xf32>
    %c0_10 = arith.constant 0 : index
    %c0_11 = arith.constant 0 : index
    %27 = vector.load %arg2[%c0_10, %c0_11] : memref<4x8xf32, #tpu.memory_space<vmem>>, vector<2x8xf32>
    %c2 = arith.constant 2 : index
    %c0_12 = arith.constant 0 : index
    %28 = vector.load %arg2[%c2, %c0_12] : memref<4x8xf32, #tpu.memory_space<vmem>>, vector<2x8xf32>
    %29 = vector.extract_strided_slice %26 {offsets = [0, 0], sizes = [2, 24], strides = [1, 1]} : vector<32x24xf32> to vector<2x24xf32>
    %30 = arith.truncf %27 : vector<2x8xf32> to vector<2x8xbf16>
    %cst_13 = arith.constant dense<0.000000e+00> : vector<2x16xf32>
    %31 = tpu.matmul %30, %4, %cst_13 {dimension_numbers = #tpu.dot_dimension_numbers<[1], [0], [0], [1], [0, 0, 1, 1], [], []>} : vector<2x8xbf16>, vector<8x16xbf16>, vector<2x16xf32> -> vector<2x16xf32>
    %32 = vector.broadcast %9 : vector<1x16xf32> to vector<2x16xf32>
    %33 = arith.addf %31, %32 : vector<2x16xf32>
    %cst_14 = arith.constant dense<0.000000e+00> : vector<2x8xf32>
    %34 = tpu.matmul %30, %6, %cst_14 {dimension_numbers = #tpu.dot_dimension_numbers<[1], [0], [0], [1], [0, 0, 1, 1], [], []>} : vector<2x8xbf16>, vector<8x8xbf16>, vector<2x8xf32> -> vector<2x8xf32>
    %35 = vector.broadcast %10 : vector<1x8xf32> to vector<2x8xf32>
    %36 = arith.addf %34, %35 : vector<2x8xf32>
    %37 = vector.extract_strided_slice %29 {offsets = [0, 0], sizes = [2, 16], strides = [1, 1]} : vector<2x24xf32> to vector<2x16xf32>
    %38 = arith.addf %37, %33 : vector<2x16xf32>
    %cst_15 = arith.constant 5.000000e-01 : f32
    %39 = vector.broadcast %cst_15 : f32 to vector<2x16xf32>
    %40 = arith.mulf %39, %38 : vector<2x16xf32>
    %41 = math.tanh %40 : vector<2x16xf32>
    %cst_16 = arith.constant 1.000000e+00 : f32
    %42 = vector.broadcast %cst_16 : f32 to vector<2x16xf32>
    %43 = arith.addf %41, %42 : vector<2x16xf32>
    %cst_17 = arith.constant 5.000000e-01 : f32
    %44 = vector.broadcast %cst_17 : f32 to vector<2x16xf32>
    %45 = arith.mulf %44, %43 : vector<2x16xf32>
    %46 = vector.extract_strided_slice %45 {offsets = [0, 0], sizes = [2, 8], strides = [1, 1]} : vector<2x16xf32> to vector<2x8xf32>
    %47 = vector.extract_strided_slice %45 {offsets = [0, 8], sizes = [2, 8], strides = [1, 1]} : vector<2x16xf32> to vector<2x8xf32>
    %48 = vector.extract_strided_slice %29 {offsets = [0, 16], sizes = [2, 8], strides = [1, 1]} : vector<2x24xf32> to vector<2x8xf32>
    %49 = arith.mulf %46, %36 : vector<2x8xf32>
    %50 = arith.addf %48, %49 : vector<2x8xf32>
    %51 = math.tanh %50 : vector<2x8xf32>
    %52 = arith.subf %27, %51 : vector<2x8xf32>
    %53 = arith.mulf %47, %52 : vector<2x8xf32>
    %54 = arith.addf %51, %53 : vector<2x8xf32>
    %55 = arith.truncf %54 : vector<2x8xf32> to vector<2x8xbf16>
    %cst_18 = arith.constant dense<0.000000e+00> : vector<2x24xf32>
    %56 = tpu.matmul %55, %12, %cst_18 {dimension_numbers = #tpu.dot_dimension_numbers<[1], [0], [0], [1], [0, 0, 1, 1], [], []>} : vector<2x8xbf16>, vector<8x24xbf16>, vector<2x24xf32> -> vector<2x24xf32>
    %57 = vector.broadcast %18 : vector<1x24xf32> to vector<2x24xf32>
    %58 = arith.addf %56, %57 : vector<2x24xf32>
    %59 = arith.truncf %28 : vector<2x8xf32> to vector<2x8xbf16>
    %cst_19 = arith.constant dense<0.000000e+00> : vector<2x16xf32>
    %60 = tpu.matmul %59, %15, %cst_19 {dimension_numbers = #tpu.dot_dimension_numbers<[1], [0], [0], [1], [0, 0, 1, 1], [], []>} : vector<2x8xbf16>, vector<8x16xbf16>, vector<2x16xf32> -> vector<2x16xf32>
    %61 = vector.broadcast %20 : vector<1x16xf32> to vector<2x16xf32>
    %62 = arith.addf %60, %61 : vector<2x16xf32>
    %cst_20 = arith.constant dense<0.000000e+00> : vector<2x8xf32>
    %63 = tpu.matmul %59, %17, %cst_20 {dimension_numbers = #tpu.dot_dimension_numbers<[1], [0], [0], [1], [0, 0, 1, 1], [], []>} : vector<2x8xbf16>, vector<8x8xbf16>, vector<2x8xf32> -> vector<2x8xf32>
    %64 = vector.broadcast %21 : vector<1x8xf32> to vector<2x8xf32>
    %65 = arith.addf %63, %64 : vector<2x8xf32>
    %66 = vector.extract_strided_slice %58 {offsets = [0, 0], sizes = [2, 16], strides = [1, 1]} : vector<2x24xf32> to vector<2x16xf32>
    %67 = arith.addf %66, %62 : vector<2x16xf32>
    %cst_21 = arith.constant 5.000000e-01 : f32
    %68 = vector.broadcast %cst_21 : f32 to vector<2x16xf32>
    %69 = arith.mulf %68, %67 : vector<2x16xf32>
    %70 = math.tanh %69 : vector<2x16xf32>
    %cst_22 = arith.constant 1.000000e+00 : f32
    %71 = vector.broadcast %cst_22 : f32 to vector<2x16xf32>
    %72 = arith.addf %70, %71 : vector<2x16xf32>
    %cst_23 = arith.constant 5.000000e-01 : f32
    %73 = vector.broadcast %cst_23 : f32 to vector<2x16xf32>
    %74 = arith.mulf %73, %72 : vector<2x16xf32>
    %75 = vector.extract_strided_slice %74 {offsets = [0, 0], sizes = [2, 8], strides = [1, 1]} : vector<2x16xf32> to vector<2x8xf32>
    %76 = vector.extract_strided_slice %74 {offsets = [0, 8], sizes = [2, 8], strides = [1, 1]} : vector<2x16xf32> to vector<2x8xf32>
    %77 = vector.extract_strided_slice %58 {offsets = [0, 16], sizes = [2, 8], strides = [1, 1]} : vector<2x24xf32> to vector<2x8xf32>
    %78 = arith.mulf %75, %65 : vector<2x8xf32>
    %79 = arith.addf %77, %78 : vector<2x8xf32>
    %80 = math.tanh %79 : vector<2x8xf32>
    %81 = arith.subf %28, %80 : vector<2x8xf32>
    %82 = arith.mulf %76, %81 : vector<2x8xf32>
    %83 = arith.addf %80, %82 : vector<2x8xf32>
    %c0_24 = arith.constant 0 : index
    %c0_25 = arith.constant 0 : index
    %84 = vector.load %arg7[%c0_24, %c0_25] : memref<2x128xf32, #tpu.memory_space<vmem>>, vector<2x8xf32>
    tpu.vector_store %arg7[%c0_24, %c0_25], %83 {strides = array<i32>} : memref<2x128xf32, #tpu.memory_space<vmem>>, vector<2x8xf32>,
    %85 = vector.extract_strided_slice %26 {offsets = [2, 0], sizes = [2, 24], strides = [1, 1]} : vector<32x24xf32> to vector<2x24xf32>
    %86 = arith.truncf %54 : vector<2x8xf32> to vector<2x8xbf16>
    %cst_26 = arith.constant dense<0.000000e+00> : vector<2x16xf32>
    %87 = tpu.matmul %86, %4, %cst_26 {dimension_numbers = #tpu.dot_dimension_numbers<[1], [0], [0], [1], [0, 0, 1, 1], [], []>} : vector<2x8xbf16>, vector<8x16xbf16>, vector<2x16xf32> -> vector<2x16xf32>
    %88 = vector.broadcast %9 : vector<1x16xf32> to vector<2x16xf32>
    %89 = arith.addf %87, %88 : vector<2x16xf32>
    %cst_27 = arith.constant dense<0.000000e+00> : vector<2x8xf32>
    %90 = tpu.matmul %86, %6, %cst_27 {dimension_numbers = #tpu.dot_dimension_numbers<[1], [0], [0], [1], [0, 0, 1, 1], [], []>} : vector<2x8xbf16>, vector<8x8xbf16>, vector<2x8xf32> -> vector<2x8xf32>
    %91 = vector.broadcast %10 : vector<1x8xf32> to vector<2x8xf32>
    %92 = arith.addf %90, %91 : vector<2x8xf32>
    %93 = vector.extract_strided_slice %85 {offsets = [0, 0], sizes = [2, 16], strides = [1, 1]} : vector<2x24xf32> to vector<2x16xf32>
    %94 = arith.addf %93, %89 : vector<2x16xf32>
    %cst_28 = arith.constant 5.000000e-01 : f32
    %95 = vector.broadcast %cst_28 : f32 to vector<2x16xf32>
    %96 = arith.mulf %95, %94 : vector<2x16xf32>
    %97 = math.tanh %96 : vector<2x16xf32>
    %cst_29 = arith.constant 1.000000e+00 : f32
    %98 = vector.broadcast %cst_29 : f32 to vector<2x16xf32>
    %99 = arith.addf %97, %98 : vector<2x16xf32>
    %cst_30 = arith.constant 5.000000e-01 : f32
    %100 = vector.broadcast %cst_30 : f32 to vector<2x16xf32>
    %101 = arith.mulf %100, %99 : vector<2x16xf32>
    %102 = vector.extract_strided_slice %101 {offsets = [0, 0], sizes = [2, 8], strides = [1, 1]} : vector<2x16xf32> to vector<2x8xf32>
    %103 = vector.extract_strided_slice %101 {offsets = [0, 8], sizes = [2, 8], strides = [1, 1]} : vector<2x16xf32> to vector<2x8xf32>
    %104 = vector.extract_strided_slice %85 {offsets = [0, 16], sizes = [2, 8], strides = [1, 1]} : vector<2x24xf32> to vector<2x8xf32>
    %105 = arith.mulf %102, %92 : vector<2x8xf32>
    %106 = arith.addf %104, %105 : vector<2x8xf32>
    %107 = math.tanh %106 : vector<2x8xf32>
    %108 = arith.subf %54, %107 : vector<2x8xf32>
    %109 = arith.mulf %103, %108 : vector<2x8xf32>
    %110 = arith.addf %107, %109 : vector<2x8xf32>
    %111 = arith.truncf %110 : vector<2x8xf32> to vector<2x8xbf16>
    %cst_31 = arith.constant dense<0.000000e+00> : vector<2x24xf32>
    %112 = tpu.matmul %111, %12, %cst_31 {dimension_numbers = #tpu.dot_dimension_numbers<[1], [0], [0], [1], [0, 0, 1, 1], [], []>} : vector<2x8xbf16>, vector<8x24xbf16>, vector<2x24xf32> -> vector<2x24xf32>
    %113 = vector.broadcast %18 : vector<1x24xf32> to vector<2x24xf32>
    %114 = arith.addf %112, %113 : vector<2x24xf32>
    %115 = arith.truncf %83 : vector<2x8xf32> to vector<2x8xbf16>
    %cst_32 = arith.constant dense<0.000000e+00> : vector<2x16xf32>
    %116 = tpu.matmul %115, %15, %cst_32 {dimension_numbers = #tpu.dot_dimension_numbers<[1], [0], [0], [1], [0, 0, 1, 1], [], []>} : vector<2x8xbf16>, vector<8x16xbf16>, vector<2x16xf32> -> vector<2x16xf32>
    %117 = vector.broadcast %20 : vector<1x16xf32> to vector<2x16xf32>
    %118 = arith.addf %116, %117 : vector<2x16xf32>
    %cst_33 = arith.constant dense<0.000000e+00> : vector<2x8xf32>
    %119 = tpu.matmul %115, %17, %cst_33 {dimension_numbers = #tpu.dot_dimension_numbers<[1], [0], [0], [1], [0, 0, 1, 1], [], []>} : vector<2x8xbf16>, vector<8x8xbf16>, vector<2x8xf32> -> vector<2x8xf32>
    %120 = vector.broadcast %21 : vector<1x8xf32> to vector<2x8xf32>
    %121 = arith.addf %119, %120 : vector<2x8xf32>
    %122 = vector.extract_strided_slice %114 {offsets = [0, 0], sizes = [2, 16], strides = [1, 1]} : vector<2x24xf32> to vector<2x16xf32>
    %123 = arith.addf %122, %118 : vector<2x16xf32>
    %cst_34 = arith.constant 5.000000e-01 : f32
    %124 = vector.broadcast %cst_34 : f32 to vector<2x16xf32>
    %125 = arith.mulf %124, %123 : vector<2x16xf32>
    %126 = math.tanh %125 : vector<2x16xf32>
    %cst_35 = arith.constant 1.000000e+00 : f32
    %127 = vector.broadcast %cst_35 : f32 to vector<2x16xf32>
    %128 = arith.addf %126, %127 : vector<2x16xf32>
    %cst_36 = arith.constant 5.000000e-01 : f32
    %129 = vector.broadcast %cst_36 : f32 to vector<2x16xf32>
    %130 = arith.mulf %129, %128 : vector<2x16xf32>
    %131 = vector.extract_strided_slice %130 {offsets = [0, 0], sizes = [2, 8], strides = [1, 1]} : vector<2x16xf32> to vector<2x8xf32>
    %132 = vector.extract_strided_slice %130 {offsets = [0, 8], sizes = [2, 8], strides = [1, 1]} : vector<2x16xf32> to vector<2x8xf32>
    %133 = vector.extract_strided_slice %114 {offsets = [0, 16], sizes = [2, 8], strides = [1, 1]} : vector<2x24xf32> to vector<2x8xf32>
    %134 = arith.mulf %131, %121 : vector<2x8xf32>
    %135 = arith.addf %133, %134 : vector<2x8xf32>
    %136 = math.tanh %135 : vector<2x8xf32>
    %137 = arith.subf %83, %136 : vector<2x8xf32>
    %138 = arith.mulf %132, %137 : vector<2x8xf32>
    %139 = arith.addf %136, %138 : vector<2x8xf32>
    %c0_37 = arith.constant 0 : index
    %c8 = arith.constant 8 : index
    %140 = vector.load %arg7[%c0_37, %c8] : memref<2x128xf32, #tpu.memory_space<vmem>>, vector<2x8xf32>
    tpu.vector_store %arg7[%c0_37, %c8], %139 {strides = array<i32>} : memref<2x128xf32, #tpu.memory_space<vmem>>, vector<2x8xf32>,
    %141 = vector.extract_strided_slice %26 {offsets = [4, 0], sizes = [2, 24], strides = [1, 1]} : vector<32x24xf32> to vector<2x24xf32>
    %142 = arith.truncf %110 : vector<2x8xf32> to vector<2x8xbf16>
    %cst_38 = arith.constant dense<0.000000e+00> : vector<2x16xf32>
    %143 = tpu.matmul %142, %4, %cst_38 {dimension_numbers = #tpu.dot_dimension_numbers<[1], [0], [0], [1], [0, 0, 1, 1], [], []>} : vector<2x8xbf16>, vector<8x16xbf16>, vector<2x16xf32> -> vector<2x16xf32>
    %144 = vector.broadcast %9 : vector<1x16xf32> to vector<2x16xf32>
    %145 = arith.addf %143, %144 : vector<2x16xf32>
    %cst_39 = arith.constant dense<0.000000e+00> : vector<2x8xf32>
    %146 = tpu.matmul %142, %6, %cst_39 {dimension_numbers = #tpu.dot_dimension_numbers<[1], [0], [0], [1], [0, 0, 1, 1], [], []>} : vector<2x8xbf16>, vector<8x8xbf16>, vector<2x8xf32> -> vector<2x8xf32>
    %147 = vector.broadcast %10 : vector<1x8xf32> to vector<2x8xf32>
    %148 = arith.addf %146, %147 : vector<2x8xf32>
    %149 = vector.extract_strided_slice %141 {offsets = [0, 0], sizes = [2, 16], strides = [1, 1]} : vector<2x24xf32> to vector<2x16xf32>
    %150 = arith.addf %149, %145 : vector<2x16xf32>
    %cst_40 = arith.constant 5.000000e-01 : f32
    %151 = vector.broadcast %cst_40 : f32 to vector<2x16xf32>
    %152 = arith.mulf %151, %150 : vector<2x16xf32>
    %153 = math.tanh %152 : vector<2x16xf32>
    %cst_41 = arith.constant 1.000000e+00 : f32
    %154 = vector.broadcast %cst_41 : f32 to vector<2x16xf32>
    %155 = arith.addf %153, %154 : vector<2x16xf32>
    %cst_42 = arith.constant 5.000000e-01 : f32
    %156 = vector.broadcast %cst_42 : f32 to vector<2x16xf32>
    %157 = arith.mulf %156, %155 : vector<2x16xf32>
    %158 = vector.extract_strided_slice %157 {offsets = [0, 0], sizes = [2, 8], strides = [1, 1]} : vector<2x16xf32> to vector<2x8xf32>
    %159 = vector.extract_strided_slice %157 {offsets = [0, 8], sizes = [2, 8], strides = [1, 1]} : vector<2x16xf32> to vector<2x8xf32>
    %160 = vector.extract_strided_slice %141 {offsets = [0, 16], sizes = [2, 8], strides = [1, 1]} : vector<2x24xf32> to vector<2x8xf32>
    %161 = arith.mulf %158, %148 : vector<2x8xf32>
    %162 = arith.addf %160, %161 : vector<2x8xf32>
    %163 = math.tanh %162 : vector<2x8xf32>
    %164 = arith.subf %110, %163 : vector<2x8xf32>
    %165 = arith.mulf %159, %164 : vector<2x8xf32>
    %166 = arith.addf %163, %165 : vector<2x8xf32>
    %167 = arith.truncf %166 : vector<2x8xf32> to vector<2x8xbf16>
    %cst_43 = arith.constant dense<0.000000e+00> : vector<2x24xf32>
    %168 = tpu.matmul %167, %12, %cst_43 {dimension_numbers = #tpu.dot_dimension_numbers<[1], [0], [0], [1], [0, 0, 1, 1], [], []>} : vector<2x8xbf16>, vector<8x24xbf16>, vector<2x24xf32> -> vector<2x24xf32>
    %169 = vector.broadcast %18 : vector<1x24xf32> to vector<2x24xf32>
    %170 = arith.addf %168, %169 : vector<2x24xf32>
    %171 = arith.truncf %139 : vector<2x8xf32> to vector<2x8xbf16>
    %cst_44 = arith.constant dense<0.000000e+00> : vector<2x16xf32>
    %172 = tpu.matmul %171, %15, %cst_44 {dimension_numbers = #tpu.dot_dimension_numbers<[1], [0], [0], [1], [0, 0, 1, 1], [], []>} : vector<2x8xbf16>, vector<8x16xbf16>, vector<2x16xf32> -> vector<2x16xf32>
    %173 = vector.broadcast %20 : vector<1x16xf32> to vector<2x16xf32>
    %174 = arith.addf %172, %173 : vector<2x16xf32>
    %cst_45 = arith.constant dense<0.000000e+00> : vector<2x8xf32>
    %175 = tpu.matmul %171, %17, %cst_45 {dimension_numbers = #tpu.dot_dimension_numbers<[1], [0], [0], [1], [0, 0, 1, 1], [], []>} : vector<2x8xbf16>, vector<8x8xbf16>, vector<2x8xf32> -> vector<2x8xf32>
    %176 = vector.broadcast %21 : vector<1x8xf32> to vector<2x8xf32>
    %177 = arith.addf %175, %176 : vector<2x8xf32>
    %178 = vector.extract_strided_slice %170 {offsets = [0, 0], sizes = [2, 16], strides = [1, 1]} : vector<2x24xf32> to vector<2x16xf32>
    %179 = arith.addf %178, %174 : vector<2x16xf32>
    %cst_46 = arith.constant 5.000000e-01 : f32
    %180 = vector.broadcast %cst_46 : f32 to vector<2x16xf32>
    %181 = arith.mulf %180, %179 : vector<2x16xf32>
    %182 = math.tanh %181 : vector<2x16xf32>
    %cst_47 = arith.constant 1.000000e+00 : f32
    %183 = vector.broadcast %cst_47 : f32 to vector<2x16xf32>
    %184 = arith.addf %182, %183 : vector<2x16xf32>
    %cst_48 = arith.constant 5.000000e-01 : f32
    %185 = vector.broadcast %cst_48 : f32 to vector<2x16xf32>
    %186 = arith.mulf %185, %184 : vector<2x16xf32>
    %187 = vector.extract_strided_slice %186 {offsets = [0, 0], sizes = [2, 8], strides = [1, 1]} : vector<2x16xf32> to vector<2x8xf32>
    %188 = vector.extract_strided_slice %186 {offsets = [0, 8], sizes = [2, 8], strides = [1, 1]} : vector<2x16xf32> to vector<2x8xf32>
    %189 = vector.extract_strided_slice %170 {offsets = [0, 16], sizes = [2, 8], strides = [1, 1]} : vector<2x24xf32> to vector<2x8xf32>
    %190 = arith.mulf %187, %177 : vector<2x8xf32>
    %191 = arith.addf %189, %190 : vector<2x8xf32>
    %192 = math.tanh %191 : vector<2x8xf32>
    %193 = arith.subf %139, %192 : vector<2x8xf32>
    %194 = arith.mulf %188, %193 : vector<2x8xf32>
    %195 = arith.addf %192, %194 : vector<2x8xf32>
    %c0_49 = arith.constant 0 : index
    %c16_50 = arith.constant 16 : index
    %196 = vector.load %arg7[%c0_49, %c16_50] : memref<2x128xf32, #tpu.memory_space<vmem>>, vector<2x8xf32>
    tpu.vector_store %arg7[%c0_49, %c16_50], %195 {strides = array<i32>} : memref<2x128xf32, #tpu.memory_space<vmem>>, vector<2x8xf32>,
    %197 = vector.extract_strided_slice %26 {offsets = [6, 0], sizes = [2, 24], strides = [1, 1]} : vector<32x24xf32> to vector<2x24xf32>
    %198 = arith.truncf %166 : vector<2x8xf32> to vector<2x8xbf16>
    %cst_51 = arith.constant dense<0.000000e+00> : vector<2x16xf32>
    %199 = tpu.matmul %198, %4, %cst_51 {dimension_numbers = #tpu.dot_dimension_numbers<[1], [0], [0], [1], [0, 0, 1, 1], [], []>} : vector<2x8xbf16>, vector<8x16xbf16>, vector<2x16xf32> -> vector<2x16xf32>
    %200 = vector.broadcast %9 : vector<1x16xf32> to vector<2x16xf32>
    %201 = arith.addf %199, %200 : vector<2x16xf32>
    %cst_52 = arith.constant dense<0.000000e+00> : vector<2x8xf32>
    %202 = tpu.matmul %198, %6, %cst_52 {dimension_numbers = #tpu.dot_dimension_numbers<[1], [0], [0], [1], [0, 0, 1, 1], [], []>} : vector<2x8xbf16>, vector<8x8xbf16>, vector<2x8xf32> -> vector<2x8xf32>
    %203 = vector.broadcast %10 : vector<1x8xf32> to vector<2x8xf32>
    %204 = arith.addf %202, %203 : vector<2x8xf32>
    %205 = vector.extract_strided_slice %197 {offsets = [0, 0], sizes = [2, 16], strides = [1, 1]} : vector<2x24xf32> to vector<2x16xf32>
    %206 = arith.addf %205, %201 : vector<2x16xf32>
    %cst_53 = arith.constant 5.000000e-01 : f32
    %207 = vector.broadcast %cst_53 : f32 to vector<2x16xf32>
    %208 = arith.mulf %207, %206 : vector<2x16xf32>
    %209 = math.tanh %208 : vector<2x16xf32>
    %cst_54 = arith.constant 1.000000e+00 : f32
    %210 = vector.broadcast %cst_54 : f32 to vector<2x16xf32>
    %211 = arith.addf %209, %210 : vector<2x16xf32>
    %cst_55 = arith.constant 5.000000e-01 : f32
    %212 = vector.broadcast %cst_55 : f32 to vector<2x16xf32>
    %213 = arith.mulf %212, %211 : vector<2x16xf32>
    %214 = vector.extract_strided_slice %213 {offsets = [0, 0], sizes = [2, 8], strides = [1, 1]} : vector<2x16xf32> to vector<2x8xf32>
    %215 = vector.extract_strided_slice %213 {offsets = [0, 8], sizes = [2, 8], strides = [1, 1]} : vector<2x16xf32> to vector<2x8xf32>
    %216 = vector.extract_strided_slice %197 {offsets = [0, 16], sizes = [2, 8], strides = [1, 1]} : vector<2x24xf32> to vector<2x8xf32>
    %217 = arith.mulf %214, %204 : vector<2x8xf32>
    %218 = arith.addf %216, %217 : vector<2x8xf32>
    %219 = math.tanh %218 : vector<2x8xf32>
    %220 = arith.subf %166, %219 : vector<2x8xf32>
    %221 = arith.mulf %215, %220 : vector<2x8xf32>
    %222 = arith.addf %219, %221 : vector<2x8xf32>
    %223 = arith.truncf %222 : vector<2x8xf32> to vector<2x8xbf16>
    %cst_56 = arith.constant dense<0.000000e+00> : vector<2x24xf32>
    %224 = tpu.matmul %223, %12, %cst_56 {dimension_numbers = #tpu.dot_dimension_numbers<[1], [0], [0], [1], [0, 0, 1, 1], [], []>} : vector<2x8xbf16>, vector<8x24xbf16>, vector<2x24xf32> -> vector<2x24xf32>
    %225 = vector.broadcast %18 : vector<1x24xf32> to vector<2x24xf32>
    %226 = arith.addf %224, %225 : vector<2x24xf32>
    %227 = arith.truncf %195 : vector<2x8xf32> to vector<2x8xbf16>
    %cst_57 = arith.constant dense<0.000000e+00> : vector<2x16xf32>
    %228 = tpu.matmul %227, %15, %cst_57 {dimension_numbers = #tpu.dot_dimension_numbers<[1], [0], [0], [1], [0, 0, 1, 1], [], []>} : vector<2x8xbf16>, vector<8x16xbf16>, vector<2x16xf32> -> vector<2x16xf32>
    %229 = vector.broadcast %20 : vector<1x16xf32> to vector<2x16xf32>
    %230 = arith.addf %228, %229 : vector<2x16xf32>
    %cst_58 = arith.constant dense<0.000000e+00> : vector<2x8xf32>
    %231 = tpu.matmul %227, %17, %cst_58 {dimension_numbers = #tpu.dot_dimension_numbers<[1], [0], [0], [1], [0, 0, 1, 1], [], []>} : vector<2x8xbf16>, vector<8x8xbf16>, vector<2x8xf32> -> vector<2x8xf32>
    %232 = vector.broadcast %21 : vector<1x8xf32> to vector<2x8xf32>
    %233 = arith.addf %231, %232 : vector<2x8xf32>
    %234 = vector.extract_strided_slice %226 {offsets = [0, 0], sizes = [2, 16], strides = [1, 1]} : vector<2x24xf32> to vector<2x16xf32>
    %235 = arith.addf %234, %230 : vector<2x16xf32>
    %cst_59 = arith.constant 5.000000e-01 : f32
    %236 = vector.broadcast %cst_59 : f32 to vector<2x16xf32>
    %237 = arith.mulf %236, %235 : vector<2x16xf32>
    %238 = math.tanh %237 : vector<2x16xf32>
    %cst_60 = arith.constant 1.000000e+00 : f32
    %239 = vector.broadcast %cst_60 : f32 to vector<2x16xf32>
    %240 = arith.addf %238, %239 : vector<2x16xf32>
    %cst_61 = arith.constant 5.000000e-01 : f32
    %241 = vector.broadcast %cst_61 : f32 to vector<2x16xf32>
    %242 = arith.mulf %241, %240 : vector<2x16xf32>
    %243 = vector.extract_strided_slice %242 {offsets = [0, 0], sizes = [2, 8], strides = [1, 1]} : vector<2x16xf32> to vector<2x8xf32>
    %244 = vector.extract_strided_slice %242 {offsets = [0, 8], sizes = [2, 8], strides = [1, 1]} : vector<2x16xf32> to vector<2x8xf32>
    %245 = vector.extract_strided_slice %226 {offsets = [0, 16], sizes = [2, 8], strides = [1, 1]} : vector<2x24xf32> to vector<2x8xf32>
    %246 = arith.mulf %243, %233 : vector<2x8xf32>
    %247 = arith.addf %245, %246 : vector<2x8xf32>
    %248 = math.tanh %247 : vector<2x8xf32>
    %249 = arith.subf %195, %248 : vector<2x8xf32>
    %250 = arith.mulf %244, %249 : vector<2x8xf32>
    %251 = arith.addf %248, %250 : vector<2x8xf32>
    %c0_62 = arith.constant 0 : index
    %c24_63 = arith.constant 24 : index
    %252 = vector.load %arg7[%c0_62, %c24_63] : memref<2x128xf32, #tpu.memory_space<vmem>>, vector<2x8xf32>
    tpu.vector_store %arg7[%c0_62, %c24_63], %251 {strides = array<i32>} : memref<2x128xf32, #tpu.memory_space<vmem>>, vector<2x8xf32>,
    %253 = vector.extract_strided_slice %26 {offsets = [8, 0], sizes = [2, 24], strides = [1, 1]} : vector<32x24xf32> to vector<2x24xf32>
    %254 = arith.truncf %222 : vector<2x8xf32> to vector<2x8xbf16>
    %cst_64 = arith.constant dense<0.000000e+00> : vector<2x16xf32>
    %255 = tpu.matmul %254, %4, %cst_64 {dimension_numbers = #tpu.dot_dimension_numbers<[1], [0], [0], [1], [0, 0, 1, 1], [], []>} : vector<2x8xbf16>, vector<8x16xbf16>, vector<2x16xf32> -> vector<2x16xf32>
    %256 = vector.broadcast %9 : vector<1x16xf32> to vector<2x16xf32>
    %257 = arith.addf %255, %256 : vector<2x16xf32>
    %cst_65 = arith.constant dense<0.000000e+00> : vector<2x8xf32>
    %258 = tpu.matmul %254, %6, %cst_65 {dimension_numbers = #tpu.dot_dimension_numbers<[1], [0], [0], [1], [0, 0, 1, 1], [], []>} : vector<2x8xbf16>, vector<8x8xbf16>, vector<2x8xf32> -> vector<2x8xf32>
    %259 = vector.broadcast %10 : vector<1x8xf32> to vector<2x8xf32>
    %260 = arith.addf %258, %259 : vector<2x8xf32>
    %261 = vector.extract_strided_slice %253 {offsets = [0, 0], sizes = [2, 16], strides = [1, 1]} : vector<2x24xf32> to vector<2x16xf32>
    %262 = arith.addf %261, %257 : vector<2x16xf32>
    %cst_66 = arith.constant 5.000000e-01 : f32
    %263 = vector.broadcast %cst_66 : f32 to vector<2x16xf32>
    %264 = arith.mulf %263, %262 : vector<2x16xf32>
    %265 = math.tanh %264 : vector<2x16xf32>
    %cst_67 = arith.constant 1.000000e+00 : f32
    %266 = vector.broadcast %cst_67 : f32 to vector<2x16xf32>
    %267 = arith.addf %265, %266 : vector<2x16xf32>
    %cst_68 = arith.constant 5.000000e-01 : f32
    %268 = vector.broadcast %cst_68 : f32 to vector<2x16xf32>
    %269 = arith.mulf %268, %267 : vector<2x16xf32>
    %270 = vector.extract_strided_slice %269 {offsets = [0, 0], sizes = [2, 8], strides = [1, 1]} : vector<2x16xf32> to vector<2x8xf32>
    %271 = vector.extract_strided_slice %269 {offsets = [0, 8], sizes = [2, 8], strides = [1, 1]} : vector<2x16xf32> to vector<2x8xf32>
    %272 = vector.extract_strided_slice %253 {offsets = [0, 16], sizes = [2, 8], strides = [1, 1]} : vector<2x24xf32> to vector<2x8xf32>
    %273 = arith.mulf %270, %260 : vector<2x8xf32>
    %274 = arith.addf %272, %273 : vector<2x8xf32>
    %275 = math.tanh %274 : vector<2x8xf32>
    %276 = arith.subf %222, %275 : vector<2x8xf32>
    %277 = arith.mulf %271, %276 : vector<2x8xf32>
    %278 = arith.addf %275, %277 : vector<2x8xf32>
    %279 = arith.truncf %278 : vector<2x8xf32> to vector<2x8xbf16>
    %cst_69 = arith.constant dense<0.000000e+00> : vector<2x24xf32>
    %280 = tpu.matmul %279, %12, %cst_69 {dimension_numbers = #tpu.dot_dimension_numbers<[1], [0], [0], [1], [0, 0, 1, 1], [], []>} : vector<2x8xbf16>, vector<8x24xbf16>, vector<2x24xf32> -> vector<2x24xf32>
    %281 = vector.broadcast %18 : vector<1x24xf32> to vector<2x24xf32>
    %282 = arith.addf %280, %281 : vector<2x24xf32>
    %283 = arith.truncf %251 : vector<2x8xf32> to vector<2x8xbf16>
    %cst_70 = arith.constant dense<0.000000e+00> : vector<2x16xf32>
    %284 = tpu.matmul %283, %15, %cst_70 {dimension_numbers = #tpu.dot_dimension_numbers<[1], [0], [0], [1], [0, 0, 1, 1], [], []>} : vector<2x8xbf16>, vector<8x16xbf16>, vector<2x16xf32> -> vector<2x16xf32>
    %285 = vector.broadcast %20 : vector<1x16xf32> to vector<2x16xf32>
    %286 = arith.addf %284, %285 : vector<2x16xf32>
    %cst_71 = arith.constant dense<0.000000e+00> : vector<2x8xf32>
    %287 = tpu.matmul %283, %17, %cst_71 {dimension_numbers = #tpu.dot_dimension_numbers<[1], [0], [0], [1], [0, 0, 1, 1], [], []>} : vector<2x8xbf16>, vector<8x8xbf16>, vector<2x8xf32> -> vector<2x8xf32>
    %288 = vector.broadcast %21 : vector<1x8xf32> to vector<2x8xf32>
    %289 = arith.addf %287, %288 : vector<2x8xf32>
    %290 = vector.extract_strided_slice %282 {offsets = [0, 0], sizes = [2, 16], strides = [1, 1]} : vector<2x24xf32> to vector<2x16xf32>
    %291 = arith.addf %290, %286 : vector<2x16xf32>
    %cst_72 = arith.constant 5.000000e-01 : f32
    %292 = vector.broadcast %cst_72 : f32 to vector<2x16xf32>
    %293 = arith.mulf %292, %291 : vector<2x16xf32>
    %294 = math.tanh %293 : vector<2x16xf32>
    %cst_73 = arith.constant 1.000000e+00 : f32
    %295 = vector.broadcast %cst_73 : f32 to vector<2x16xf32>
    %296 = arith.addf %294, %295 : vector<2x16xf32>
    %cst_74 = arith.constant 5.000000e-01 : f32
    %297 = vector.broadcast %cst_74 : f32 to vector<2x16xf32>
    %298 = arith.mulf %297, %296 : vector<2x16xf32>
    %299 = vector.extract_strided_slice %298 {offsets = [0, 0], sizes = [2, 8], strides = [1, 1]} : vector<2x16xf32> to vector<2x8xf32>
    %300 = vector.extract_strided_slice %298 {offsets = [0, 8], sizes = [2, 8], strides = [1, 1]} : vector<2x16xf32> to vector<2x8xf32>
    %301 = vector.extract_strided_slice %282 {offsets = [0, 16], sizes = [2, 8], strides = [1, 1]} : vector<2x24xf32> to vector<2x8xf32>
    %302 = arith.mulf %299, %289 : vector<2x8xf32>
    %303 = arith.addf %301, %302 : vector<2x8xf32>
    %304 = math.tanh %303 : vector<2x8xf32>
    %305 = arith.subf %251, %304 : vector<2x8xf32>
    %306 = arith.mulf %300, %305 : vector<2x8xf32>
    %307 = arith.addf %304, %306 : vector<2x8xf32>
    %c0_75 = arith.constant 0 : index
    %c32 = arith.constant 32 : index
    %308 = vector.load %arg7[%c0_75, %c32] : memref<2x128xf32, #tpu.memory_space<vmem>>, vector<2x8xf32>
    tpu.vector_store %arg7[%c0_75, %c32], %307 {strides = array<i32>} : memref<2x128xf32, #tpu.memory_space<vmem>>, vector<2x8xf32>,
    %309 = vector.extract_strided_slice %26 {offsets = [10, 0], sizes = [2, 24], strides = [1, 1]} : vector<32x24xf32> to vector<2x24xf32>
    %310 = arith.truncf %278 : vector<2x8xf32> to vector<2x8xbf16>
    %cst_76 = arith.constant dense<0.000000e+00> : vector<2x16xf32>
    %311 = tpu.matmul %310, %4, %cst_76 {dimension_numbers = #tpu.dot_dimension_numbers<[1], [0], [0], [1], [0, 0, 1, 1], [], []>} : vector<2x8xbf16>, vector<8x16xbf16>, vector<2x16xf32> -> vector<2x16xf32>
    %312 = vector.broadcast %9 : vector<1x16xf32> to vector<2x16xf32>
    %313 = arith.addf %311, %312 : vector<2x16xf32>
    %cst_77 = arith.constant dense<0.000000e+00> : vector<2x8xf32>
    %314 = tpu.matmul %310, %6, %cst_77 {dimension_numbers = #tpu.dot_dimension_numbers<[1], [0], [0], [1], [0, 0, 1, 1], [], []>} : vector<2x8xbf16>, vector<8x8xbf16>, vector<2x8xf32> -> vector<2x8xf32>
    %315 = vector.broadcast %10 : vector<1x8xf32> to vector<2x8xf32>
    %316 = arith.addf %314, %315 : vector<2x8xf32>
    %317 = vector.extract_strided_slice %309 {offsets = [0, 0], sizes = [2, 16], strides = [1, 1]} : vector<2x24xf32> to vector<2x16xf32>
    %318 = arith.addf %317, %313 : vector<2x16xf32>
    %cst_78 = arith.constant 5.000000e-01 : f32
    %319 = vector.broadcast %cst_78 : f32 to vector<2x16xf32>
    %320 = arith.mulf %319, %318 : vector<2x16xf32>
    %321 = math.tanh %320 : vector<2x16xf32>
    %cst_79 = arith.constant 1.000000e+00 : f32
    %322 = vector.broadcast %cst_79 : f32 to vector<2x16xf32>
    %323 = arith.addf %321, %322 : vector<2x16xf32>
    %cst_80 = arith.constant 5.000000e-01 : f32
    %324 = vector.broadcast %cst_80 : f32 to vector<2x16xf32>
    %325 = arith.mulf %324, %323 : vector<2x16xf32>
    %326 = vector.extract_strided_slice %325 {offsets = [0, 0], sizes = [2, 8], strides = [1, 1]} : vector<2x16xf32> to vector<2x8xf32>
    %327 = vector.extract_strided_slice %325 {offsets = [0, 8], sizes = [2, 8], strides = [1, 1]} : vector<2x16xf32> to vector<2x8xf32>
    %328 = vector.extract_strided_slice %309 {offsets = [0, 16], sizes = [2, 8], strides = [1, 1]} : vector<2x24xf32> to vector<2x8xf32>
    %329 = arith.mulf %326, %316 : vector<2x8xf32>
    %330 = arith.addf %328, %329 : vector<2x8xf32>
    %331 = math.tanh %330 : vector<2x8xf32>
    %332 = arith.subf %278, %331 : vector<2x8xf32>
    %333 = arith.mulf %327, %332 : vector<2x8xf32>
    %334 = arith.addf %331, %333 : vector<2x8xf32>
    %335 = arith.truncf %334 : vector<2x8xf32> to vector<2x8xbf16>
    %cst_81 = arith.constant dense<0.000000e+00> : vector<2x24xf32>
    %336 = tpu.matmul %335, %12, %cst_81 {dimension_numbers = #tpu.dot_dimension_numbers<[1], [0], [0], [1], [0, 0, 1, 1], [], []>} : vector<2x8xbf16>, vector<8x24xbf16>, vector<2x24xf32> -> vector<2x24xf32>
    %337 = vector.broadcast %18 : vector<1x24xf32> to vector<2x24xf32>
    %338 = arith.addf %336, %337 : vector<2x24xf32>
    %339 = arith.truncf %307 : vector<2x8xf32> to vector<2x8xbf16>
    %cst_82 = arith.constant dense<0.000000e+00> : vector<2x16xf32>
    %340 = tpu.matmul %339, %15, %cst_82 {dimension_numbers = #tpu.dot_dimension_numbers<[1], [0], [0], [1], [0, 0, 1, 1], [], []>} : vector<2x8xbf16>, vector<8x16xbf16>, vector<2x16xf32> -> vector<2x16xf32>
    %341 = vector.broadcast %20 : vector<1x16xf32> to vector<2x16xf32>
    %342 = arith.addf %340, %341 : vector<2x16xf32>
    %cst_83 = arith.constant dense<0.000000e+00> : vector<2x8xf32>
    %343 = tpu.matmul %339, %17, %cst_83 {dimension_numbers = #tpu.dot_dimension_numbers<[1], [0], [0], [1], [0, 0, 1, 1], [], []>} : vector<2x8xbf16>, vector<8x8xbf16>, vector<2x8xf32> -> vector<2x8xf32>
    %344 = vector.broadcast %21 : vector<1x8xf32> to vector<2x8xf32>
    %345 = arith.addf %343, %344 : vector<2x8xf32>
    %346 = vector.extract_strided_slice %338 {offsets = [0, 0], sizes = [2, 16], strides = [1, 1]} : vector<2x24xf32> to vector<2x16xf32>
    %347 = arith.addf %346, %342 : vector<2x16xf32>
    %cst_84 = arith.constant 5.000000e-01 : f32
    %348 = vector.broadcast %cst_84 : f32 to vector<2x16xf32>
    %349 = arith.mulf %348, %347 : vector<2x16xf32>
    %350 = math.tanh %349 : vector<2x16xf32>
    %cst_85 = arith.constant 1.000000e+00 : f32
    %351 = vector.broadcast %cst_85 : f32 to vector<2x16xf32>
    %352 = arith.addf %350, %351 : vector<2x16xf32>
    %cst_86 = arith.constant 5.000000e-01 : f32
    %353 = vector.broadcast %cst_86 : f32 to vector<2x16xf32>
    %354 = arith.mulf %353, %352 : vector<2x16xf32>
    %355 = vector.extract_strided_slice %354 {offsets = [0, 0], sizes = [2, 8], strides = [1, 1]} : vector<2x16xf32> to vector<2x8xf32>
    %356 = vector.extract_strided_slice %354 {offsets = [0, 8], sizes = [2, 8], strides = [1, 1]} : vector<2x16xf32> to vector<2x8xf32>
    %357 = vector.extract_strided_slice %338 {offsets = [0, 16], sizes = [2, 8], strides = [1, 1]} : vector<2x24xf32> to vector<2x8xf32>
    %358 = arith.mulf %355, %345 : vector<2x8xf32>
    %359 = arith.addf %357, %358 : vector<2x8xf32>
    %360 = math.tanh %359 : vector<2x8xf32>
    %361 = arith.subf %307, %360 : vector<2x8xf32>
    %362 = arith.mulf %356, %361 : vector<2x8xf32>
    %363 = arith.addf %360, %362 : vector<2x8xf32>
    %c0_87 = arith.constant 0 : index
    %c40 = arith.constant 40 : index
    %364 = vector.load %arg7[%c0_87, %c40] : memref<2x128xf32, #tpu.memory_space<vmem>>, vector<2x8xf32>
    tpu.vector_store %arg7[%c0_87, %c40], %363 {strides = array<i32>} : memref<2x128xf32, #tpu.memory_space<vmem>>, vector<2x8xf32>,
    %365 = vector.extract_strided_slice %26 {offsets = [12, 0], sizes = [2, 24], strides = [1, 1]} : vector<32x24xf32> to vector<2x24xf32>
    %366 = arith.truncf %334 : vector<2x8xf32> to vector<2x8xbf16>
    %cst_88 = arith.constant dense<0.000000e+00> : vector<2x16xf32>
    %367 = tpu.matmul %366, %4, %cst_88 {dimension_numbers = #tpu.dot_dimension_numbers<[1], [0], [0], [1], [0, 0, 1, 1], [], []>} : vector<2x8xbf16>, vector<8x16xbf16>, vector<2x16xf32> -> vector<2x16xf32>
    %368 = vector.broadcast %9 : vector<1x16xf32> to vector<2x16xf32>
    %369 = arith.addf %367, %368 : vector<2x16xf32>
    %cst_89 = arith.constant dense<0.000000e+00> : vector<2x8xf32>
    %370 = tpu.matmul %366, %6, %cst_89 {dimension_numbers = #tpu.dot_dimension_numbers<[1], [0], [0], [1], [0, 0, 1, 1], [], []>} : vector<2x8xbf16>, vector<8x8xbf16>, vector<2x8xf32> -> vector<2x8xf32>
    %371 = vector.broadcast %10 : vector<1x8xf32> to vector<2x8xf32>
    %372 = arith.addf %370, %371 : vector<2x8xf32>
    %373 = vector.extract_strided_slice %365 {offsets = [0, 0], sizes = [2, 16], strides = [1, 1]} : vector<2x24xf32> to vector<2x16xf32>
    %374 = arith.addf %373, %369 : vector<2x16xf32>
    %cst_90 = arith.constant 5.000000e-01 : f32
    %375 = vector.broadcast %cst_90 : f32 to vector<2x16xf32>
    %376 = arith.mulf %375, %374 : vector<2x16xf32>
    %377 = math.tanh %376 : vector<2x16xf32>
    %cst_91 = arith.constant 1.000000e+00 : f32
    %378 = vector.broadcast %cst_91 : f32 to vector<2x16xf32>
    %379 = arith.addf %377, %378 : vector<2x16xf32>
    %cst_92 = arith.constant 5.000000e-01 : f32
    %380 = vector.broadcast %cst_92 : f32 to vector<2x16xf32>
    %381 = arith.mulf %380, %379 : vector<2x16xf32>
    %382 = vector.extract_strided_slice %381 {offsets = [0, 0], sizes = [2, 8], strides = [1, 1]} : vector<2x16xf32> to vector<2x8xf32>
    %383 = vector.extract_strided_slice %381 {offsets = [0, 8], sizes = [2, 8], strides = [1, 1]} : vector<2x16xf32> to vector<2x8xf32>
    %384 = vector.extract_strided_slice %365 {offsets = [0, 16], sizes = [2, 8], strides = [1, 1]} : vector<2x24xf32> to vector<2x8xf32>
    %385 = arith.mulf %382, %372 : vector<2x8xf32>
    %386 = arith.addf %384, %385 : vector<2x8xf32>
    %387 = math.tanh %386 : vector<2x8xf32>
    %388 = arith.subf %334, %387 : vector<2x8xf32>
    %389 = arith.mulf %383, %388 : vector<2x8xf32>
    %390 = arith.addf %387, %389 : vector<2x8xf32>
    %391 = arith.truncf %390 : vector<2x8xf32> to vector<2x8xbf16>
    %cst_93 = arith.constant dense<0.000000e+00> : vector<2x24xf32>
    %392 = tpu.matmul %391, %12, %cst_93 {dimension_numbers = #tpu.dot_dimension_numbers<[1], [0], [0], [1], [0, 0, 1, 1], [], []>} : vector<2x8xbf16>, vector<8x24xbf16>, vector<2x24xf32> -> vector<2x24xf32>
    %393 = vector.broadcast %18 : vector<1x24xf32> to vector<2x24xf32>
    %394 = arith.addf %392, %393 : vector<2x24xf32>
    %395 = arith.truncf %363 : vector<2x8xf32> to vector<2x8xbf16>
    %cst_94 = arith.constant dense<0.000000e+00> : vector<2x16xf32>
    %396 = tpu.matmul %395, %15, %cst_94 {dimension_numbers = #tpu.dot_dimension_numbers<[1], [0], [0], [1], [0, 0, 1, 1], [], []>} : vector<2x8xbf16>, vector<8x16xbf16>, vector<2x16xf32> -> vector<2x16xf32>
    %397 = vector.broadcast %20 : vector<1x16xf32> to vector<2x16xf32>
    %398 = arith.addf %396, %397 : vector<2x16xf32>
    %cst_95 = arith.constant dense<0.000000e+00> : vector<2x8xf32>
    %399 = tpu.matmul %395, %17, %cst_95 {dimension_numbers = #tpu.dot_dimension_numbers<[1], [0], [0], [1], [0, 0, 1, 1], [], []>} : vector<2x8xbf16>, vector<8x8xbf16>, vector<2x8xf32> -> vector<2x8xf32>
    %400 = vector.broadcast %21 : vector<1x8xf32> to vector<2x8xf32>
    %401 = arith.addf %399, %400 : vector<2x8xf32>
    %402 = vector.extract_strided_slice %394 {offsets = [0, 0], sizes = [2, 16], strides = [1, 1]} : vector<2x24xf32> to vector<2x16xf32>
    %403 = arith.addf %402, %398 : vector<2x16xf32>
    %cst_96 = arith.constant 5.000000e-01 : f32
    %404 = vector.broadcast %cst_96 : f32 to vector<2x16xf32>
    %405 = arith.mulf %404, %403 : vector<2x16xf32>
    %406 = math.tanh %405 : vector<2x16xf32>
    %cst_97 = arith.constant 1.000000e+00 : f32
    %407 = vector.broadcast %cst_97 : f32 to vector<2x16xf32>
    %408 = arith.addf %406, %407 : vector<2x16xf32>
    %cst_98 = arith.constant 5.000000e-01 : f32
    %409 = vector.broadcast %cst_98 : f32 to vector<2x16xf32>
    %410 = arith.mulf %409, %408 : vector<2x16xf32>
    %411 = vector.extract_strided_slice %410 {offsets = [0, 0], sizes = [2, 8], strides = [1, 1]} : vector<2x16xf32> to vector<2x8xf32>
    %412 = vector.extract_strided_slice %410 {offsets = [0, 8], sizes = [2, 8], strides = [1, 1]} : vector<2x16xf32> to vector<2x8xf32>
    %413 = vector.extract_strided_slice %394 {offsets = [0, 16], sizes = [2, 8], strides = [1, 1]} : vector<2x24xf32> to vector<2x8xf32>
    %414 = arith.mulf %411, %401 : vector<2x8xf32>
    %415 = arith.addf %413, %414 : vector<2x8xf32>
    %416 = math.tanh %415 : vector<2x8xf32>
    %417 = arith.subf %363, %416 : vector<2x8xf32>
    %418 = arith.mulf %412, %417 : vector<2x8xf32>
    %419 = arith.addf %416, %418 : vector<2x8xf32>
    %c0_99 = arith.constant 0 : index
    %c48 = arith.constant 48 : index
    %420 = vector.load %arg7[%c0_99, %c48] : memref<2x128xf32, #tpu.memory_space<vmem>>, vector<2x8xf32>
    tpu.vector_store %arg7[%c0_99, %c48], %419 {strides = array<i32>} : memref<2x128xf32, #tpu.memory_space<vmem>>, vector<2x8xf32>,
    %421 = vector.extract_strided_slice %26 {offsets = [14, 0], sizes = [2, 24], strides = [1, 1]} : vector<32x24xf32> to vector<2x24xf32>
    %422 = arith.truncf %390 : vector<2x8xf32> to vector<2x8xbf16>
    %cst_100 = arith.constant dense<0.000000e+00> : vector<2x16xf32>
    %423 = tpu.matmul %422, %4, %cst_100 {dimension_numbers = #tpu.dot_dimension_numbers<[1], [0], [0], [1], [0, 0, 1, 1], [], []>} : vector<2x8xbf16>, vector<8x16xbf16>, vector<2x16xf32> -> vector<2x16xf32>
    %424 = vector.broadcast %9 : vector<1x16xf32> to vector<2x16xf32>
    %425 = arith.addf %423, %424 : vector<2x16xf32>
    %cst_101 = arith.constant dense<0.000000e+00> : vector<2x8xf32>
    %426 = tpu.matmul %422, %6, %cst_101 {dimension_numbers = #tpu.dot_dimension_numbers<[1], [0], [0], [1], [0, 0, 1, 1], [], []>} : vector<2x8xbf16>, vector<8x8xbf16>, vector<2x8xf32> -> vector<2x8xf32>
    %427 = vector.broadcast %10 : vector<1x8xf32> to vector<2x8xf32>
    %428 = arith.addf %426, %427 : vector<2x8xf32>
    %429 = vector.extract_strided_slice %421 {offsets = [0, 0], sizes = [2, 16], strides = [1, 1]} : vector<2x24xf32> to vector<2x16xf32>
    %430 = arith.addf %429, %425 : vector<2x16xf32>
    %cst_102 = arith.constant 5.000000e-01 : f32
    %431 = vector.broadcast %cst_102 : f32 to vector<2x16xf32>
    %432 = arith.mulf %431, %430 : vector<2x16xf32>
    %433 = math.tanh %432 : vector<2x16xf32>
    %cst_103 = arith.constant 1.000000e+00 : f32
    %434 = vector.broadcast %cst_103 : f32 to vector<2x16xf32>
    %435 = arith.addf %433, %434 : vector<2x16xf32>
    %cst_104 = arith.constant 5.000000e-01 : f32
    %436 = vector.broadcast %cst_104 : f32 to vector<2x16xf32>
    %437 = arith.mulf %436, %435 : vector<2x16xf32>
    %438 = vector.extract_strided_slice %437 {offsets = [0, 0], sizes = [2, 8], strides = [1, 1]} : vector<2x16xf32> to vector<2x8xf32>
    %439 = vector.extract_strided_slice %437 {offsets = [0, 8], sizes = [2, 8], strides = [1, 1]} : vector<2x16xf32> to vector<2x8xf32>
    %440 = vector.extract_strided_slice %421 {offsets = [0, 16], sizes = [2, 8], strides = [1, 1]} : vector<2x24xf32> to vector<2x8xf32>
    %441 = arith.mulf %438, %428 : vector<2x8xf32>
    %442 = arith.addf %440, %441 : vector<2x8xf32>
    %443 = math.tanh %442 : vector<2x8xf32>
    %444 = arith.subf %390, %443 : vector<2x8xf32>
    %445 = arith.mulf %439, %444 : vector<2x8xf32>
    %446 = arith.addf %443, %445 : vector<2x8xf32>
    %447 = arith.truncf %446 : vector<2x8xf32> to vector<2x8xbf16>
    %cst_105 = arith.constant dense<0.000000e+00> : vector<2x24xf32>
    %448 = tpu.matmul %447, %12, %cst_105 {dimension_numbers = #tpu.dot_dimension_numbers<[1], [0], [0], [1], [0, 0, 1, 1], [], []>} : vector<2x8xbf16>, vector<8x24xbf16>, vector<2x24xf32> -> vector<2x24xf32>
    %449 = vector.broadcast %18 : vector<1x24xf32> to vector<2x24xf32>
    %450 = arith.addf %448, %449 : vector<2x24xf32>
    %451 = arith.truncf %419 : vector<2x8xf32> to vector<2x8xbf16>
    %cst_106 = arith.constant dense<0.000000e+00> : vector<2x16xf32>
    %452 = tpu.matmul %451, %15, %cst_106 {dimension_numbers = #tpu.dot_dimension_numbers<[1], [0], [0], [1], [0, 0, 1, 1], [], []>} : vector<2x8xbf16>, vector<8x16xbf16>, vector<2x16xf32> -> vector<2x16xf32>
    %453 = vector.broadcast %20 : vector<1x16xf32> to vector<2x16xf32>
    %454 = arith.addf %452, %453 : vector<2x16xf32>
    %cst_107 = arith.constant dense<0.000000e+00> : vector<2x8xf32>
    %455 = tpu.matmul %451, %17, %cst_107 {dimension_numbers = #tpu.dot_dimension_numbers<[1], [0], [0], [1], [0, 0, 1, 1], [], []>} : vector<2x8xbf16>, vector<8x8xbf16>, vector<2x8xf32> -> vector<2x8xf32>
    %456 = vector.broadcast %21 : vector<1x8xf32> to vector<2x8xf32>
    %457 = arith.addf %455, %456 : vector<2x8xf32>
    %458 = vector.extract_strided_slice %450 {offsets = [0, 0], sizes = [2, 16], strides = [1, 1]} : vector<2x24xf32> to vector<2x16xf32>
    %459 = arith.addf %458, %454 : vector<2x16xf32>
    %cst_108 = arith.constant 5.000000e-01 : f32
    %460 = vector.broadcast %cst_108 : f32 to vector<2x16xf32>
    %461 = arith.mulf %460, %459 : vector<2x16xf32>
    %462 = math.tanh %461 : vector<2x16xf32>
    %cst_109 = arith.constant 1.000000e+00 : f32
    %463 = vector.broadcast %cst_109 : f32 to vector<2x16xf32>
    %464 = arith.addf %462, %463 : vector<2x16xf32>
    %cst_110 = arith.constant 5.000000e-01 : f32
    %465 = vector.broadcast %cst_110 : f32 to vector<2x16xf32>
    %466 = arith.mulf %465, %464 : vector<2x16xf32>
    %467 = vector.extract_strided_slice %466 {offsets = [0, 0], sizes = [2, 8], strides = [1, 1]} : vector<2x16xf32> to vector<2x8xf32>
    %468 = vector.extract_strided_slice %466 {offsets = [0, 8], sizes = [2, 8], strides = [1, 1]} : vector<2x16xf32> to vector<2x8xf32>
    %469 = vector.extract_strided_slice %450 {offsets = [0, 16], sizes = [2, 8], strides = [1, 1]} : vector<2x24xf32> to vector<2x8xf32>
    %470 = arith.mulf %467, %457 : vector<2x8xf32>
    %471 = arith.addf %469, %470 : vector<2x8xf32>
    %472 = math.tanh %471 : vector<2x8xf32>
    %473 = arith.subf %419, %472 : vector<2x8xf32>
    %474 = arith.mulf %468, %473 : vector<2x8xf32>
    %475 = arith.addf %472, %474 : vector<2x8xf32>
    %c0_111 = arith.constant 0 : index
    %c56 = arith.constant 56 : index
    %476 = vector.load %arg7[%c0_111, %c56] : memref<2x128xf32, #tpu.memory_space<vmem>>, vector<2x8xf32>
    tpu.vector_store %arg7[%c0_111, %c56], %475 {strides = array<i32>} : memref<2x128xf32, #tpu.memory_space<vmem>>, vector<2x8xf32>,
    %477 = vector.extract_strided_slice %26 {offsets = [16, 0], sizes = [2, 24], strides = [1, 1]} : vector<32x24xf32> to vector<2x24xf32>
    %478 = arith.truncf %446 : vector<2x8xf32> to vector<2x8xbf16>
    %cst_112 = arith.constant dense<0.000000e+00> : vector<2x16xf32>
    %479 = tpu.matmul %478, %4, %cst_112 {dimension_numbers = #tpu.dot_dimension_numbers<[1], [0], [0], [1], [0, 0, 1, 1], [], []>} : vector<2x8xbf16>, vector<8x16xbf16>, vector<2x16xf32> -> vector<2x16xf32>
    %480 = vector.broadcast %9 : vector<1x16xf32> to vector<2x16xf32>
    %481 = arith.addf %479, %480 : vector<2x16xf32>
    %cst_113 = arith.constant dense<0.000000e+00> : vector<2x8xf32>
    %482 = tpu.matmul %478, %6, %cst_113 {dimension_numbers = #tpu.dot_dimension_numbers<[1], [0], [0], [1], [0, 0, 1, 1], [], []>} : vector<2x8xbf16>, vector<8x8xbf16>, vector<2x8xf32> -> vector<2x8xf32>
    %483 = vector.broadcast %10 : vector<1x8xf32> to vector<2x8xf32>
    %484 = arith.addf %482, %483 : vector<2x8xf32>
    %485 = vector.extract_strided_slice %477 {offsets = [0, 0], sizes = [2, 16], strides = [1, 1]} : vector<2x24xf32> to vector<2x16xf32>
    %486 = arith.addf %485, %481 : vector<2x16xf32>
    %cst_114 = arith.constant 5.000000e-01 : f32
    %487 = vector.broadcast %cst_114 : f32 to vector<2x16xf32>
    %488 = arith.mulf %487, %486 : vector<2x16xf32>
    %489 = math.tanh %488 : vector<2x16xf32>
    %cst_115 = arith.constant 1.000000e+00 : f32
    %490 = vector.broadcast %cst_115 : f32 to vector<2x16xf32>
    %491 = arith.addf %489, %490 : vector<2x16xf32>
    %cst_116 = arith.constant 5.000000e-01 : f32
    %492 = vector.broadcast %cst_116 : f32 to vector<2x16xf32>
    %493 = arith.mulf %492, %491 : vector<2x16xf32>
    %494 = vector.extract_strided_slice %493 {offsets = [0, 0], sizes = [2, 8], strides = [1, 1]} : vector<2x16xf32> to vector<2x8xf32>
    %495 = vector.extract_strided_slice %493 {offsets = [0, 8], sizes = [2, 8], strides = [1, 1]} : vector<2x16xf32> to vector<2x8xf32>
    %496 = vector.extract_strided_slice %477 {offsets = [0, 16], sizes = [2, 8], strides = [1, 1]} : vector<2x24xf32> to vector<2x8xf32>
    %497 = arith.mulf %494, %484 : vector<2x8xf32>
    %498 = arith.addf %496, %497 : vector<2x8xf32>
    %499 = math.tanh %498 : vector<2x8xf32>
    %500 = arith.subf %446, %499 : vector<2x8xf32>
    %501 = arith.mulf %495, %500 : vector<2x8xf32>
    %502 = arith.addf %499, %501 : vector<2x8xf32>
    %503 = arith.truncf %502 : vector<2x8xf32> to vector<2x8xbf16>
    %cst_117 = arith.constant dense<0.000000e+00> : vector<2x24xf32>
    %504 = tpu.matmul %503, %12, %cst_117 {dimension_numbers = #tpu.dot_dimension_numbers<[1], [0], [0], [1], [0, 0, 1, 1], [], []>} : vector<2x8xbf16>, vector<8x24xbf16>, vector<2x24xf32> -> vector<2x24xf32>
    %505 = vector.broadcast %18 : vector<1x24xf32> to vector<2x24xf32>
    %506 = arith.addf %504, %505 : vector<2x24xf32>
    %507 = arith.truncf %475 : vector<2x8xf32> to vector<2x8xbf16>
    %cst_118 = arith.constant dense<0.000000e+00> : vector<2x16xf32>
    %508 = tpu.matmul %507, %15, %cst_118 {dimension_numbers = #tpu.dot_dimension_numbers<[1], [0], [0], [1], [0, 0, 1, 1], [], []>} : vector<2x8xbf16>, vector<8x16xbf16>, vector<2x16xf32> -> vector<2x16xf32>
    %509 = vector.broadcast %20 : vector<1x16xf32> to vector<2x16xf32>
    %510 = arith.addf %508, %509 : vector<2x16xf32>
    %cst_119 = arith.constant dense<0.000000e+00> : vector<2x8xf32>
    %511 = tpu.matmul %507, %17, %cst_119 {dimension_numbers = #tpu.dot_dimension_numbers<[1], [0], [0], [1], [0, 0, 1, 1], [], []>} : vector<2x8xbf16>, vector<8x8xbf16>, vector<2x8xf32> -> vector<2x8xf32>
    %512 = vector.broadcast %21 : vector<1x8xf32> to vector<2x8xf32>
    %513 = arith.addf %511, %512 : vector<2x8xf32>
    %514 = vector.extract_strided_slice %506 {offsets = [0, 0], sizes = [2, 16], strides = [1, 1]} : vector<2x24xf32> to vector<2x16xf32>
    %515 = arith.addf %514, %510 : vector<2x16xf32>
    %cst_120 = arith.constant 5.000000e-01 : f32
    %516 = vector.broadcast %cst_120 : f32 to vector<2x16xf32>
    %517 = arith.mulf %516, %515 : vector<2x16xf32>
    %518 = math.tanh %517 : vector<2x16xf32>
    %cst_121 = arith.constant 1.000000e+00 : f32
    %519 = vector.broadcast %cst_121 : f32 to vector<2x16xf32>
    %520 = arith.addf %518, %519 : vector<2x16xf32>
    %cst_122 = arith.constant 5.000000e-01 : f32
    %521 = vector.broadcast %cst_122 : f32 to vector<2x16xf32>
    %522 = arith.mulf %521, %520 : vector<2x16xf32>
    %523 = vector.extract_strided_slice %522 {offsets = [0, 0], sizes = [2, 8], strides = [1, 1]} : vector<2x16xf32> to vector<2x8xf32>
    %524 = vector.extract_strided_slice %522 {offsets = [0, 8], sizes = [2, 8], strides = [1, 1]} : vector<2x16xf32> to vector<2x8xf32>
    %525 = vector.extract_strided_slice %506 {offsets = [0, 16], sizes = [2, 8], strides = [1, 1]} : vector<2x24xf32> to vector<2x8xf32>
    %526 = arith.mulf %523, %513 : vector<2x8xf32>
    %527 = arith.addf %525, %526 : vector<2x8xf32>
    %528 = math.tanh %527 : vector<2x8xf32>
    %529 = arith.subf %475, %528 : vector<2x8xf32>
    %530 = arith.mulf %524, %529 : vector<2x8xf32>
    %531 = arith.addf %528, %530 : vector<2x8xf32>
    %c0_123 = arith.constant 0 : index
    %c64 = arith.constant 64 : index
    %532 = vector.load %arg7[%c0_123, %c64] : memref<2x128xf32, #tpu.memory_space<vmem>>, vector<2x8xf32>
    tpu.vector_store %arg7[%c0_123, %c64], %531 {strides = array<i32>} : memref<2x128xf32, #tpu.memory_space<vmem>>, vector<2x8xf32>,
    %533 = vector.extract_strided_slice %26 {offsets = [18, 0], sizes = [2, 24], strides = [1, 1]} : vector<32x24xf32> to vector<2x24xf32>
    %534 = arith.truncf %502 : vector<2x8xf32> to vector<2x8xbf16>
    %cst_124 = arith.constant dense<0.000000e+00> : vector<2x16xf32>
    %535 = tpu.matmul %534, %4, %cst_124 {dimension_numbers = #tpu.dot_dimension_numbers<[1], [0], [0], [1], [0, 0, 1, 1], [], []>} : vector<2x8xbf16>, vector<8x16xbf16>, vector<2x16xf32> -> vector<2x16xf32>
    %536 = vector.broadcast %9 : vector<1x16xf32> to vector<2x16xf32>
    %537 = arith.addf %535, %536 : vector<2x16xf32>
    %cst_125 = arith.constant dense<0.000000e+00> : vector<2x8xf32>
    %538 = tpu.matmul %534, %6, %cst_125 {dimension_numbers = #tpu.dot_dimension_numbers<[1], [0], [0], [1], [0, 0, 1, 1], [], []>} : vector<2x8xbf16>, vector<8x8xbf16>, vector<2x8xf32> -> vector<2x8xf32>
    %539 = vector.broadcast %10 : vector<1x8xf32> to vector<2x8xf32>
    %540 = arith.addf %538, %539 : vector<2x8xf32>
    %541 = vector.extract_strided_slice %533 {offsets = [0, 0], sizes = [2, 16], strides = [1, 1]} : vector<2x24xf32> to vector<2x16xf32>
    %542 = arith.addf %541, %537 : vector<2x16xf32>
    %cst_126 = arith.constant 5.000000e-01 : f32
    %543 = vector.broadcast %cst_126 : f32 to vector<2x16xf32>
    %544 = arith.mulf %543, %542 : vector<2x16xf32>
    %545 = math.tanh %544 : vector<2x16xf32>
    %cst_127 = arith.constant 1.000000e+00 : f32
    %546 = vector.broadcast %cst_127 : f32 to vector<2x16xf32>
    %547 = arith.addf %545, %546 : vector<2x16xf32>
    %cst_128 = arith.constant 5.000000e-01 : f32
    %548 = vector.broadcast %cst_128 : f32 to vector<2x16xf32>
    %549 = arith.mulf %548, %547 : vector<2x16xf32>
    %550 = vector.extract_strided_slice %549 {offsets = [0, 0], sizes = [2, 8], strides = [1, 1]} : vector<2x16xf32> to vector<2x8xf32>
    %551 = vector.extract_strided_slice %549 {offsets = [0, 8], sizes = [2, 8], strides = [1, 1]} : vector<2x16xf32> to vector<2x8xf32>
    %552 = vector.extract_strided_slice %533 {offsets = [0, 16], sizes = [2, 8], strides = [1, 1]} : vector<2x24xf32> to vector<2x8xf32>
    %553 = arith.mulf %550, %540 : vector<2x8xf32>
    %554 = arith.addf %552, %553 : vector<2x8xf32>
    %555 = math.tanh %554 : vector<2x8xf32>
    %556 = arith.subf %502, %555 : vector<2x8xf32>
    %557 = arith.mulf %551, %556 : vector<2x8xf32>
    %558 = arith.addf %555, %557 : vector<2x8xf32>
    %559 = arith.truncf %558 : vector<2x8xf32> to vector<2x8xbf16>
    %cst_129 = arith.constant dense<0.000000e+00> : vector<2x24xf32>
    %560 = tpu.matmul %559, %12, %cst_129 {dimension_numbers = #tpu.dot_dimension_numbers<[1], [0], [0], [1], [0, 0, 1, 1], [], []>} : vector<2x8xbf16>, vector<8x24xbf16>, vector<2x24xf32> -> vector<2x24xf32>
    %561 = vector.broadcast %18 : vector<1x24xf32> to vector<2x24xf32>
    %562 = arith.addf %560, %561 : vector<2x24xf32>
    %563 = arith.truncf %531 : vector<2x8xf32> to vector<2x8xbf16>
    %cst_130 = arith.constant dense<0.000000e+00> : vector<2x16xf32>
    %564 = tpu.matmul %563, %15, %cst_130 {dimension_numbers = #tpu.dot_dimension_numbers<[1], [0], [0], [1], [0, 0, 1, 1], [], []>} : vector<2x8xbf16>, vector<8x16xbf16>, vector<2x16xf32> -> vector<2x16xf32>
    %565 = vector.broadcast %20 : vector<1x16xf32> to vector<2x16xf32>
    %566 = arith.addf %564, %565 : vector<2x16xf32>
    %cst_131 = arith.constant dense<0.000000e+00> : vector<2x8xf32>
    %567 = tpu.matmul %563, %17, %cst_131 {dimension_numbers = #tpu.dot_dimension_numbers<[1], [0], [0], [1], [0, 0, 1, 1], [], []>} : vector<2x8xbf16>, vector<8x8xbf16>, vector<2x8xf32> -> vector<2x8xf32>
    %568 = vector.broadcast %21 : vector<1x8xf32> to vector<2x8xf32>
    %569 = arith.addf %567, %568 : vector<2x8xf32>
    %570 = vector.extract_strided_slice %562 {offsets = [0, 0], sizes = [2, 16], strides = [1, 1]} : vector<2x24xf32> to vector<2x16xf32>
    %571 = arith.addf %570, %566 : vector<2x16xf32>
    %cst_132 = arith.constant 5.000000e-01 : f32
    %572 = vector.broadcast %cst_132 : f32 to vector<2x16xf32>
    %573 = arith.mulf %572, %571 : vector<2x16xf32>
    %574 = math.tanh %573 : vector<2x16xf32>
    %cst_133 = arith.constant 1.000000e+00 : f32
    %575 = vector.broadcast %cst_133 : f32 to vector<2x16xf32>
    %576 = arith.addf %574, %575 : vector<2x16xf32>
    %cst_134 = arith.constant 5.000000e-01 : f32
    %577 = vector.broadcast %cst_134 : f32 to vector<2x16xf32>
    %578 = arith.mulf %577, %576 : vector<2x16xf32>
    %579 = vector.extract_strided_slice %578 {offsets = [0, 0], sizes = [2, 8], strides = [1, 1]} : vector<2x16xf32> to vector<2x8xf32>
    %580 = vector.extract_strided_slice %578 {offsets = [0, 8], sizes = [2, 8], strides = [1, 1]} : vector<2x16xf32> to vector<2x8xf32>
    %581 = vector.extract_strided_slice %562 {offsets = [0, 16], sizes = [2, 8], strides = [1, 1]} : vector<2x24xf32> to vector<2x8xf32>
    %582 = arith.mulf %579, %569 : vector<2x8xf32>
    %583 = arith.addf %581, %582 : vector<2x8xf32>
    %584 = math.tanh %583 : vector<2x8xf32>
    %585 = arith.subf %531, %584 : vector<2x8xf32>
    %586 = arith.mulf %580, %585 : vector<2x8xf32>
    %587 = arith.addf %584, %586 : vector<2x8xf32>
    %c0_135 = arith.constant 0 : index
    %c72 = arith.constant 72 : index
    %588 = vector.load %arg7[%c0_135, %c72] : memref<2x128xf32, #tpu.memory_space<vmem>>, vector<2x8xf32>
    tpu.vector_store %arg7[%c0_135, %c72], %587 {strides = array<i32>} : memref<2x128xf32, #tpu.memory_space<vmem>>, vector<2x8xf32>,
    %589 = vector.extract_strided_slice %26 {offsets = [20, 0], sizes = [2, 24], strides = [1, 1]} : vector<32x24xf32> to vector<2x24xf32>
    %590 = arith.truncf %558 : vector<2x8xf32> to vector<2x8xbf16>
    %cst_136 = arith.constant dense<0.000000e+00> : vector<2x16xf32>
    %591 = tpu.matmul %590, %4, %cst_136 {dimension_numbers = #tpu.dot_dimension_numbers<[1], [0], [0], [1], [0, 0, 1, 1], [], []>} : vector<2x8xbf16>, vector<8x16xbf16>, vector<2x16xf32> -> vector<2x16xf32>
    %592 = vector.broadcast %9 : vector<1x16xf32> to vector<2x16xf32>
    %593 = arith.addf %591, %592 : vector<2x16xf32>
    %cst_137 = arith.constant dense<0.000000e+00> : vector<2x8xf32>
    %594 = tpu.matmul %590, %6, %cst_137 {dimension_numbers = #tpu.dot_dimension_numbers<[1], [0], [0], [1], [0, 0, 1, 1], [], []>} : vector<2x8xbf16>, vector<8x8xbf16>, vector<2x8xf32> -> vector<2x8xf32>
    %595 = vector.broadcast %10 : vector<1x8xf32> to vector<2x8xf32>
    %596 = arith.addf %594, %595 : vector<2x8xf32>
    %597 = vector.extract_strided_slice %589 {offsets = [0, 0], sizes = [2, 16], strides = [1, 1]} : vector<2x24xf32> to vector<2x16xf32>
    %598 = arith.addf %597, %593 : vector<2x16xf32>
    %cst_138 = arith.constant 5.000000e-01 : f32
    %599 = vector.broadcast %cst_138 : f32 to vector<2x16xf32>
    %600 = arith.mulf %599, %598 : vector<2x16xf32>
    %601 = math.tanh %600 : vector<2x16xf32>
    %cst_139 = arith.constant 1.000000e+00 : f32
    %602 = vector.broadcast %cst_139 : f32 to vector<2x16xf32>
    %603 = arith.addf %601, %602 : vector<2x16xf32>
    %cst_140 = arith.constant 5.000000e-01 : f32
    %604 = vector.broadcast %cst_140 : f32 to vector<2x16xf32>
    %605 = arith.mulf %604, %603 : vector<2x16xf32>
    %606 = vector.extract_strided_slice %605 {offsets = [0, 0], sizes = [2, 8], strides = [1, 1]} : vector<2x16xf32> to vector<2x8xf32>
    %607 = vector.extract_strided_slice %605 {offsets = [0, 8], sizes = [2, 8], strides = [1, 1]} : vector<2x16xf32> to vector<2x8xf32>
    %608 = vector.extract_strided_slice %589 {offsets = [0, 16], sizes = [2, 8], strides = [1, 1]} : vector<2x24xf32> to vector<2x8xf32>
    %609 = arith.mulf %606, %596 : vector<2x8xf32>
    %610 = arith.addf %608, %609 : vector<2x8xf32>
    %611 = math.tanh %610 : vector<2x8xf32>
    %612 = arith.subf %558, %611 : vector<2x8xf32>
    %613 = arith.mulf %607, %612 : vector<2x8xf32>
    %614 = arith.addf %611, %613 : vector<2x8xf32>
    %615 = arith.truncf %614 : vector<2x8xf32> to vector<2x8xbf16>
    %cst_141 = arith.constant dense<0.000000e+00> : vector<2x24xf32>
    %616 = tpu.matmul %615, %12, %cst_141 {dimension_numbers = #tpu.dot_dimension_numbers<[1], [0], [0], [1], [0, 0, 1, 1], [], []>} : vector<2x8xbf16>, vector<8x24xbf16>, vector<2x24xf32> -> vector<2x24xf32>
    %617 = vector.broadcast %18 : vector<1x24xf32> to vector<2x24xf32>
    %618 = arith.addf %616, %617 : vector<2x24xf32>
    %619 = arith.truncf %587 : vector<2x8xf32> to vector<2x8xbf16>
    %cst_142 = arith.constant dense<0.000000e+00> : vector<2x16xf32>
    %620 = tpu.matmul %619, %15, %cst_142 {dimension_numbers = #tpu.dot_dimension_numbers<[1], [0], [0], [1], [0, 0, 1, 1], [], []>} : vector<2x8xbf16>, vector<8x16xbf16>, vector<2x16xf32> -> vector<2x16xf32>
    %621 = vector.broadcast %20 : vector<1x16xf32> to vector<2x16xf32>
    %622 = arith.addf %620, %621 : vector<2x16xf32>
    %cst_143 = arith.constant dense<0.000000e+00> : vector<2x8xf32>
    %623 = tpu.matmul %619, %17, %cst_143 {dimension_numbers = #tpu.dot_dimension_numbers<[1], [0], [0], [1], [0, 0, 1, 1], [], []>} : vector<2x8xbf16>, vector<8x8xbf16>, vector<2x8xf32> -> vector<2x8xf32>
    %624 = vector.broadcast %21 : vector<1x8xf32> to vector<2x8xf32>
    %625 = arith.addf %623, %624 : vector<2x8xf32>
    %626 = vector.extract_strided_slice %618 {offsets = [0, 0], sizes = [2, 16], strides = [1, 1]} : vector<2x24xf32> to vector<2x16xf32>
    %627 = arith.addf %626, %622 : vector<2x16xf32>
    %cst_144 = arith.constant 5.000000e-01 : f32
    %628 = vector.broadcast %cst_144 : f32 to vector<2x16xf32>
    %629 = arith.mulf %628, %627 : vector<2x16xf32>
    %630 = math.tanh %629 : vector<2x16xf32>
    %cst_145 = arith.constant 1.000000e+00 : f32
    %631 = vector.broadcast %cst_145 : f32 to vector<2x16xf32>
    %632 = arith.addf %630, %631 : vector<2x16xf32>
    %cst_146 = arith.constant 5.000000e-01 : f32
    %633 = vector.broadcast %cst_146 : f32 to vector<2x16xf32>
    %634 = arith.mulf %633, %632 : vector<2x16xf32>
    %635 = vector.extract_strided_slice %634 {offsets = [0, 0], sizes = [2, 8], strides = [1, 1]} : vector<2x16xf32> to vector<2x8xf32>
    %636 = vector.extract_strided_slice %634 {offsets = [0, 8], sizes = [2, 8], strides = [1, 1]} : vector<2x16xf32> to vector<2x8xf32>
    %637 = vector.extract_strided_slice %618 {offsets = [0, 16], sizes = [2, 8], strides = [1, 1]} : vector<2x24xf32> to vector<2x8xf32>
    %638 = arith.mulf %635, %625 : vector<2x8xf32>
    %639 = arith.addf %637, %638 : vector<2x8xf32>
    %640 = math.tanh %639 : vector<2x8xf32>
    %641 = arith.subf %587, %640 : vector<2x8xf32>
    %642 = arith.mulf %636, %641 : vector<2x8xf32>
    %643 = arith.addf %640, %642 : vector<2x8xf32>
    %c0_147 = arith.constant 0 : index
    %c80 = arith.constant 80 : index
    %644 = vector.load %arg7[%c0_147, %c80] : memref<2x128xf32, #tpu.memory_space<vmem>>, vector<2x8xf32>
    tpu.vector_store %arg7[%c0_147, %c80], %643 {strides = array<i32>} : memref<2x128xf32, #tpu.memory_space<vmem>>, vector<2x8xf32>,
    %645 = vector.extract_strided_slice %26 {offsets = [22, 0], sizes = [2, 24], strides = [1, 1]} : vector<32x24xf32> to vector<2x24xf32>
    %646 = arith.truncf %614 : vector<2x8xf32> to vector<2x8xbf16>
    %cst_148 = arith.constant dense<0.000000e+00> : vector<2x16xf32>
    %647 = tpu.matmul %646, %4, %cst_148 {dimension_numbers = #tpu.dot_dimension_numbers<[1], [0], [0], [1], [0, 0, 1, 1], [], []>} : vector<2x8xbf16>, vector<8x16xbf16>, vector<2x16xf32> -> vector<2x16xf32>
    %648 = vector.broadcast %9 : vector<1x16xf32> to vector<2x16xf32>
    %649 = arith.addf %647, %648 : vector<2x16xf32>
    %cst_149 = arith.constant dense<0.000000e+00> : vector<2x8xf32>
    %650 = tpu.matmul %646, %6, %cst_149 {dimension_numbers = #tpu.dot_dimension_numbers<[1], [0], [0], [1], [0, 0, 1, 1], [], []>} : vector<2x8xbf16>, vector<8x8xbf16>, vector<2x8xf32> -> vector<2x8xf32>
    %651 = vector.broadcast %10 : vector<1x8xf32> to vector<2x8xf32>
    %652 = arith.addf %650, %651 : vector<2x8xf32>
    %653 = vector.extract_strided_slice %645 {offsets = [0, 0], sizes = [2, 16], strides = [1, 1]} : vector<2x24xf32> to vector<2x16xf32>
    %654 = arith.addf %653, %649 : vector<2x16xf32>
    %cst_150 = arith.constant 5.000000e-01 : f32
    %655 = vector.broadcast %cst_150 : f32 to vector<2x16xf32>
    %656 = arith.mulf %655, %654 : vector<2x16xf32>
    %657 = math.tanh %656 : vector<2x16xf32>
    %cst_151 = arith.constant 1.000000e+00 : f32
    %658 = vector.broadcast %cst_151 : f32 to vector<2x16xf32>
    %659 = arith.addf %657, %658 : vector<2x16xf32>
    %cst_152 = arith.constant 5.000000e-01 : f32
    %660 = vector.broadcast %cst_152 : f32 to vector<2x16xf32>
    %661 = arith.mulf %660, %659 : vector<2x16xf32>
    %662 = vector.extract_strided_slice %661 {offsets = [0, 0], sizes = [2, 8], strides = [1, 1]} : vector<2x16xf32> to vector<2x8xf32>
    %663 = vector.extract_strided_slice %661 {offsets = [0, 8], sizes = [2, 8], strides = [1, 1]} : vector<2x16xf32> to vector<2x8xf32>
    %664 = vector.extract_strided_slice %645 {offsets = [0, 16], sizes = [2, 8], strides = [1, 1]} : vector<2x24xf32> to vector<2x8xf32>
    %665 = arith.mulf %662, %652 : vector<2x8xf32>
    %666 = arith.addf %664, %665 : vector<2x8xf32>
    %667 = math.tanh %666 : vector<2x8xf32>
    %668 = arith.subf %614, %667 : vector<2x8xf32>
    %669 = arith.mulf %663, %668 : vector<2x8xf32>
    %670 = arith.addf %667, %669 : vector<2x8xf32>
    %671 = arith.truncf %670 : vector<2x8xf32> to vector<2x8xbf16>
    %cst_153 = arith.constant dense<0.000000e+00> : vector<2x24xf32>
    %672 = tpu.matmul %671, %12, %cst_153 {dimension_numbers = #tpu.dot_dimension_numbers<[1], [0], [0], [1], [0, 0, 1, 1], [], []>} : vector<2x8xbf16>, vector<8x24xbf16>, vector<2x24xf32> -> vector<2x24xf32>
    %673 = vector.broadcast %18 : vector<1x24xf32> to vector<2x24xf32>
    %674 = arith.addf %672, %673 : vector<2x24xf32>
    %675 = arith.truncf %643 : vector<2x8xf32> to vector<2x8xbf16>
    %cst_154 = arith.constant dense<0.000000e+00> : vector<2x16xf32>
    %676 = tpu.matmul %675, %15, %cst_154 {dimension_numbers = #tpu.dot_dimension_numbers<[1], [0], [0], [1], [0, 0, 1, 1], [], []>} : vector<2x8xbf16>, vector<8x16xbf16>, vector<2x16xf32> -> vector<2x16xf32>
    %677 = vector.broadcast %20 : vector<1x16xf32> to vector<2x16xf32>
    %678 = arith.addf %676, %677 : vector<2x16xf32>
    %cst_155 = arith.constant dense<0.000000e+00> : vector<2x8xf32>
    %679 = tpu.matmul %675, %17, %cst_155 {dimension_numbers = #tpu.dot_dimension_numbers<[1], [0], [0], [1], [0, 0, 1, 1], [], []>} : vector<2x8xbf16>, vector<8x8xbf16>, vector<2x8xf32> -> vector<2x8xf32>
    %680 = vector.broadcast %21 : vector<1x8xf32> to vector<2x8xf32>
    %681 = arith.addf %679, %680 : vector<2x8xf32>
    %682 = vector.extract_strided_slice %674 {offsets = [0, 0], sizes = [2, 16], strides = [1, 1]} : vector<2x24xf32> to vector<2x16xf32>
    %683 = arith.addf %682, %678 : vector<2x16xf32>
    %cst_156 = arith.constant 5.000000e-01 : f32
    %684 = vector.broadcast %cst_156 : f32 to vector<2x16xf32>
    %685 = arith.mulf %684, %683 : vector<2x16xf32>
    %686 = math.tanh %685 : vector<2x16xf32>
    %cst_157 = arith.constant 1.000000e+00 : f32
    %687 = vector.broadcast %cst_157 : f32 to vector<2x16xf32>
    %688 = arith.addf %686, %687 : vector<2x16xf32>
    %cst_158 = arith.constant 5.000000e-01 : f32
    %689 = vector.broadcast %cst_158 : f32 to vector<2x16xf32>
    %690 = arith.mulf %689, %688 : vector<2x16xf32>
    %691 = vector.extract_strided_slice %690 {offsets = [0, 0], sizes = [2, 8], strides = [1, 1]} : vector<2x16xf32> to vector<2x8xf32>
    %692 = vector.extract_strided_slice %690 {offsets = [0, 8], sizes = [2, 8], strides = [1, 1]} : vector<2x16xf32> to vector<2x8xf32>
    %693 = vector.extract_strided_slice %674 {offsets = [0, 16], sizes = [2, 8], strides = [1, 1]} : vector<2x24xf32> to vector<2x8xf32>
    %694 = arith.mulf %691, %681 : vector<2x8xf32>
    %695 = arith.addf %693, %694 : vector<2x8xf32>
    %696 = math.tanh %695 : vector<2x8xf32>
    %697 = arith.subf %643, %696 : vector<2x8xf32>
    %698 = arith.mulf %692, %697 : vector<2x8xf32>
    %699 = arith.addf %696, %698 : vector<2x8xf32>
    %c0_159 = arith.constant 0 : index
    %c88 = arith.constant 88 : index
    %700 = vector.load %arg7[%c0_159, %c88] : memref<2x128xf32, #tpu.memory_space<vmem>>, vector<2x8xf32>
    tpu.vector_store %arg7[%c0_159, %c88], %699 {strides = array<i32>} : memref<2x128xf32, #tpu.memory_space<vmem>>, vector<2x8xf32>,
    %701 = vector.extract_strided_slice %26 {offsets = [24, 0], sizes = [2, 24], strides = [1, 1]} : vector<32x24xf32> to vector<2x24xf32>
    %702 = arith.truncf %670 : vector<2x8xf32> to vector<2x8xbf16>
    %cst_160 = arith.constant dense<0.000000e+00> : vector<2x16xf32>
    %703 = tpu.matmul %702, %4, %cst_160 {dimension_numbers = #tpu.dot_dimension_numbers<[1], [0], [0], [1], [0, 0, 1, 1], [], []>} : vector<2x8xbf16>, vector<8x16xbf16>, vector<2x16xf32> -> vector<2x16xf32>
    %704 = vector.broadcast %9 : vector<1x16xf32> to vector<2x16xf32>
    %705 = arith.addf %703, %704 : vector<2x16xf32>
    %cst_161 = arith.constant dense<0.000000e+00> : vector<2x8xf32>
    %706 = tpu.matmul %702, %6, %cst_161 {dimension_numbers = #tpu.dot_dimension_numbers<[1], [0], [0], [1], [0, 0, 1, 1], [], []>} : vector<2x8xbf16>, vector<8x8xbf16>, vector<2x8xf32> -> vector<2x8xf32>
    %707 = vector.broadcast %10 : vector<1x8xf32> to vector<2x8xf32>
    %708 = arith.addf %706, %707 : vector<2x8xf32>
    %709 = vector.extract_strided_slice %701 {offsets = [0, 0], sizes = [2, 16], strides = [1, 1]} : vector<2x24xf32> to vector<2x16xf32>
    %710 = arith.addf %709, %705 : vector<2x16xf32>
    %cst_162 = arith.constant 5.000000e-01 : f32
    %711 = vector.broadcast %cst_162 : f32 to vector<2x16xf32>
    %712 = arith.mulf %711, %710 : vector<2x16xf32>
    %713 = math.tanh %712 : vector<2x16xf32>
    %cst_163 = arith.constant 1.000000e+00 : f32
    %714 = vector.broadcast %cst_163 : f32 to vector<2x16xf32>
    %715 = arith.addf %713, %714 : vector<2x16xf32>
    %cst_164 = arith.constant 5.000000e-01 : f32
    %716 = vector.broadcast %cst_164 : f32 to vector<2x16xf32>
    %717 = arith.mulf %716, %715 : vector<2x16xf32>
    %718 = vector.extract_strided_slice %717 {offsets = [0, 0], sizes = [2, 8], strides = [1, 1]} : vector<2x16xf32> to vector<2x8xf32>
    %719 = vector.extract_strided_slice %717 {offsets = [0, 8], sizes = [2, 8], strides = [1, 1]} : vector<2x16xf32> to vector<2x8xf32>
    %720 = vector.extract_strided_slice %701 {offsets = [0, 16], sizes = [2, 8], strides = [1, 1]} : vector<2x24xf32> to vector<2x8xf32>
    %721 = arith.mulf %718, %708 : vector<2x8xf32>
    %722 = arith.addf %720, %721 : vector<2x8xf32>
    %723 = math.tanh %722 : vector<2x8xf32>
    %724 = arith.subf %670, %723 : vector<2x8xf32>
    %725 = arith.mulf %719, %724 : vector<2x8xf32>
    %726 = arith.addf %723, %725 : vector<2x8xf32>
    %727 = arith.truncf %726 : vector<2x8xf32> to vector<2x8xbf16>
    %cst_165 = arith.constant dense<0.000000e+00> : vector<2x24xf32>
    %728 = tpu.matmul %727, %12, %cst_165 {dimension_numbers = #tpu.dot_dimension_numbers<[1], [0], [0], [1], [0, 0, 1, 1], [], []>} : vector<2x8xbf16>, vector<8x24xbf16>, vector<2x24xf32> -> vector<2x24xf32>
    %729 = vector.broadcast %18 : vector<1x24xf32> to vector<2x24xf32>
    %730 = arith.addf %728, %729 : vector<2x24xf32>
    %731 = arith.truncf %699 : vector<2x8xf32> to vector<2x8xbf16>
    %cst_166 = arith.constant dense<0.000000e+00> : vector<2x16xf32>
    %732 = tpu.matmul %731, %15, %cst_166 {dimension_numbers = #tpu.dot_dimension_numbers<[1], [0], [0], [1], [0, 0, 1, 1], [], []>} : vector<2x8xbf16>, vector<8x16xbf16>, vector<2x16xf32> -> vector<2x16xf32>
    %733 = vector.broadcast %20 : vector<1x16xf32> to vector<2x16xf32>
    %734 = arith.addf %732, %733 : vector<2x16xf32>
    %cst_167 = arith.constant dense<0.000000e+00> : vector<2x8xf32>
    %735 = tpu.matmul %731, %17, %cst_167 {dimension_numbers = #tpu.dot_dimension_numbers<[1], [0], [0], [1], [0, 0, 1, 1], [], []>} : vector<2x8xbf16>, vector<8x8xbf16>, vector<2x8xf32> -> vector<2x8xf32>
    %736 = vector.broadcast %21 : vector<1x8xf32> to vector<2x8xf32>
    %737 = arith.addf %735, %736 : vector<2x8xf32>
    %738 = vector.extract_strided_slice %730 {offsets = [0, 0], sizes = [2, 16], strides = [1, 1]} : vector<2x24xf32> to vector<2x16xf32>
    %739 = arith.addf %738, %734 : vector<2x16xf32>
    %cst_168 = arith.constant 5.000000e-01 : f32
    %740 = vector.broadcast %cst_168 : f32 to vector<2x16xf32>
    %741 = arith.mulf %740, %739 : vector<2x16xf32>
    %742 = math.tanh %741 : vector<2x16xf32>
    %cst_169 = arith.constant 1.000000e+00 : f32
    %743 = vector.broadcast %cst_169 : f32 to vector<2x16xf32>
    %744 = arith.addf %742, %743 : vector<2x16xf32>
    %cst_170 = arith.constant 5.000000e-01 : f32
    %745 = vector.broadcast %cst_170 : f32 to vector<2x16xf32>
    %746 = arith.mulf %745, %744 : vector<2x16xf32>
    %747 = vector.extract_strided_slice %746 {offsets = [0, 0], sizes = [2, 8], strides = [1, 1]} : vector<2x16xf32> to vector<2x8xf32>
    %748 = vector.extract_strided_slice %746 {offsets = [0, 8], sizes = [2, 8], strides = [1, 1]} : vector<2x16xf32> to vector<2x8xf32>
    %749 = vector.extract_strided_slice %730 {offsets = [0, 16], sizes = [2, 8], strides = [1, 1]} : vector<2x24xf32> to vector<2x8xf32>
    %750 = arith.mulf %747, %737 : vector<2x8xf32>
    %751 = arith.addf %749, %750 : vector<2x8xf32>
    %752 = math.tanh %751 : vector<2x8xf32>
    %753 = arith.subf %699, %752 : vector<2x8xf32>
    %754 = arith.mulf %748, %753 : vector<2x8xf32>
    %755 = arith.addf %752, %754 : vector<2x8xf32>
    %c0_171 = arith.constant 0 : index
    %c96 = arith.constant 96 : index
    %756 = vector.load %arg7[%c0_171, %c96] : memref<2x128xf32, #tpu.memory_space<vmem>>, vector<2x8xf32>
    tpu.vector_store %arg7[%c0_171, %c96], %755 {strides = array<i32>} : memref<2x128xf32, #tpu.memory_space<vmem>>, vector<2x8xf32>,
    %757 = vector.extract_strided_slice %26 {offsets = [26, 0], sizes = [2, 24], strides = [1, 1]} : vector<32x24xf32> to vector<2x24xf32>
    %758 = arith.truncf %726 : vector<2x8xf32> to vector<2x8xbf16>
    %cst_172 = arith.constant dense<0.000000e+00> : vector<2x16xf32>
    %759 = tpu.matmul %758, %4, %cst_172 {dimension_numbers = #tpu.dot_dimension_numbers<[1], [0], [0], [1], [0, 0, 1, 1], [], []>} : vector<2x8xbf16>, vector<8x16xbf16>, vector<2x16xf32> -> vector<2x16xf32>
    %760 = vector.broadcast %9 : vector<1x16xf32> to vector<2x16xf32>
    %761 = arith.addf %759, %760 : vector<2x16xf32>
    %cst_173 = arith.constant dense<0.000000e+00> : vector<2x8xf32>
    %762 = tpu.matmul %758, %6, %cst_173 {dimension_numbers = #tpu.dot_dimension_numbers<[1], [0], [0], [1], [0, 0, 1, 1], [], []>} : vector<2x8xbf16>, vector<8x8xbf16>, vector<2x8xf32> -> vector<2x8xf32>
    %763 = vector.broadcast %10 : vector<1x8xf32> to vector<2x8xf32>
    %764 = arith.addf %762, %763 : vector<2x8xf32>
    %765 = vector.extract_strided_slice %757 {offsets = [0, 0], sizes = [2, 16], strides = [1, 1]} : vector<2x24xf32> to vector<2x16xf32>
    %766 = arith.addf %765, %761 : vector<2x16xf32>
    %cst_174 = arith.constant 5.000000e-01 : f32
    %767 = vector.broadcast %cst_174 : f32 to vector<2x16xf32>
    %768 = arith.mulf %767, %766 : vector<2x16xf32>
    %769 = math.tanh %768 : vector<2x16xf32>
    %cst_175 = arith.constant 1.000000e+00 : f32
    %770 = vector.broadcast %cst_175 : f32 to vector<2x16xf32>
    %771 = arith.addf %769, %770 : vector<2x16xf32>
    %cst_176 = arith.constant 5.000000e-01 : f32
    %772 = vector.broadcast %cst_176 : f32 to vector<2x16xf32>
    %773 = arith.mulf %772, %771 : vector<2x16xf32>
    %774 = vector.extract_strided_slice %773 {offsets = [0, 0], sizes = [2, 8], strides = [1, 1]} : vector<2x16xf32> to vector<2x8xf32>
    %775 = vector.extract_strided_slice %773 {offsets = [0, 8], sizes = [2, 8], strides = [1, 1]} : vector<2x16xf32> to vector<2x8xf32>
    %776 = vector.extract_strided_slice %757 {offsets = [0, 16], sizes = [2, 8], strides = [1, 1]} : vector<2x24xf32> to vector<2x8xf32>
    %777 = arith.mulf %774, %764 : vector<2x8xf32>
    %778 = arith.addf %776, %777 : vector<2x8xf32>
    %779 = math.tanh %778 : vector<2x8xf32>
    %780 = arith.subf %726, %779 : vector<2x8xf32>
    %781 = arith.mulf %775, %780 : vector<2x8xf32>
    %782 = arith.addf %779, %781 : vector<2x8xf32>
    %783 = arith.truncf %782 : vector<2x8xf32> to vector<2x8xbf16>
    %cst_177 = arith.constant dense<0.000000e+00> : vector<2x24xf32>
    %784 = tpu.matmul %783, %12, %cst_177 {dimension_numbers = #tpu.dot_dimension_numbers<[1], [0], [0], [1], [0, 0, 1, 1], [], []>} : vector<2x8xbf16>, vector<8x24xbf16>, vector<2x24xf32> -> vector<2x24xf32>
    %785 = vector.broadcast %18 : vector<1x24xf32> to vector<2x24xf32>
    %786 = arith.addf %784, %785 : vector<2x24xf32>
    %787 = arith.truncf %755 : vector<2x8xf32> to vector<2x8xbf16>
    %cst_178 = arith.constant dense<0.000000e+00> : vector<2x16xf32>
    %788 = tpu.matmul %787, %15, %cst_178 {dimension_numbers = #tpu.dot_dimension_numbers<[1], [0], [0], [1], [0, 0, 1, 1], [], []>} : vector<2x8xbf16>, vector<8x16xbf16>, vector<2x16xf32> -> vector<2x16xf32>
    %789 = vector.broadcast %20 : vector<1x16xf32> to vector<2x16xf32>
    %790 = arith.addf %788, %789 : vector<2x16xf32>
    %cst_179 = arith.constant dense<0.000000e+00> : vector<2x8xf32>
    %791 = tpu.matmul %787, %17, %cst_179 {dimension_numbers = #tpu.dot_dimension_numbers<[1], [0], [0], [1], [0, 0, 1, 1], [], []>} : vector<2x8xbf16>, vector<8x8xbf16>, vector<2x8xf32> -> vector<2x8xf32>
    %792 = vector.broadcast %21 : vector<1x8xf32> to vector<2x8xf32>
    %793 = arith.addf %791, %792 : vector<2x8xf32>
    %794 = vector.extract_strided_slice %786 {offsets = [0, 0], sizes = [2, 16], strides = [1, 1]} : vector<2x24xf32> to vector<2x16xf32>
    %795 = arith.addf %794, %790 : vector<2x16xf32>
    %cst_180 = arith.constant 5.000000e-01 : f32
    %796 = vector.broadcast %cst_180 : f32 to vector<2x16xf32>
    %797 = arith.mulf %796, %795 : vector<2x16xf32>
    %798 = math.tanh %797 : vector<2x16xf32>
    %cst_181 = arith.constant 1.000000e+00 : f32
    %799 = vector.broadcast %cst_181 : f32 to vector<2x16xf32>
    %800 = arith.addf %798, %799 : vector<2x16xf32>
    %cst_182 = arith.constant 5.000000e-01 : f32
    %801 = vector.broadcast %cst_182 : f32 to vector<2x16xf32>
    %802 = arith.mulf %801, %800 : vector<2x16xf32>
    %803 = vector.extract_strided_slice %802 {offsets = [0, 0], sizes = [2, 8], strides = [1, 1]} : vector<2x16xf32> to vector<2x8xf32>
    %804 = vector.extract_strided_slice %802 {offsets = [0, 8], sizes = [2, 8], strides = [1, 1]} : vector<2x16xf32> to vector<2x8xf32>
    %805 = vector.extract_strided_slice %786 {offsets = [0, 16], sizes = [2, 8], strides = [1, 1]} : vector<2x24xf32> to vector<2x8xf32>
    %806 = arith.mulf %803, %793 : vector<2x8xf32>
    %807 = arith.addf %805, %806 : vector<2x8xf32>
    %808 = math.tanh %807 : vector<2x8xf32>
    %809 = arith.subf %755, %808 : vector<2x8xf32>
    %810 = arith.mulf %804, %809 : vector<2x8xf32>
    %811 = arith.addf %808, %810 : vector<2x8xf32>
    %c0_183 = arith.constant 0 : index
    %c104 = arith.constant 104 : index
    %812 = vector.load %arg7[%c0_183, %c104] : memref<2x128xf32, #tpu.memory_space<vmem>>, vector<2x8xf32>
    tpu.vector_store %arg7[%c0_183, %c104], %811 {strides = array<i32>} : memref<2x128xf32, #tpu.memory_space<vmem>>, vector<2x8xf32>,
    %813 = vector.extract_strided_slice %26 {offsets = [28, 0], sizes = [2, 24], strides = [1, 1]} : vector<32x24xf32> to vector<2x24xf32>
    %814 = arith.truncf %782 : vector<2x8xf32> to vector<2x8xbf16>
    %cst_184 = arith.constant dense<0.000000e+00> : vector<2x16xf32>
    %815 = tpu.matmul %814, %4, %cst_184 {dimension_numbers = #tpu.dot_dimension_numbers<[1], [0], [0], [1], [0, 0, 1, 1], [], []>} : vector<2x8xbf16>, vector<8x16xbf16>, vector<2x16xf32> -> vector<2x16xf32>
    %816 = vector.broadcast %9 : vector<1x16xf32> to vector<2x16xf32>
    %817 = arith.addf %815, %816 : vector<2x16xf32>
    %cst_185 = arith.constant dense<0.000000e+00> : vector<2x8xf32>
    %818 = tpu.matmul %814, %6, %cst_185 {dimension_numbers = #tpu.dot_dimension_numbers<[1], [0], [0], [1], [0, 0, 1, 1], [], []>} : vector<2x8xbf16>, vector<8x8xbf16>, vector<2x8xf32> -> vector<2x8xf32>
    %819 = vector.broadcast %10 : vector<1x8xf32> to vector<2x8xf32>
    %820 = arith.addf %818, %819 : vector<2x8xf32>
    %821 = vector.extract_strided_slice %813 {offsets = [0, 0], sizes = [2, 16], strides = [1, 1]} : vector<2x24xf32> to vector<2x16xf32>
    %822 = arith.addf %821, %817 : vector<2x16xf32>
    %cst_186 = arith.constant 5.000000e-01 : f32
    %823 = vector.broadcast %cst_186 : f32 to vector<2x16xf32>
    %824 = arith.mulf %823, %822 : vector<2x16xf32>
    %825 = math.tanh %824 : vector<2x16xf32>
    %cst_187 = arith.constant 1.000000e+00 : f32
    %826 = vector.broadcast %cst_187 : f32 to vector<2x16xf32>
    %827 = arith.addf %825, %826 : vector<2x16xf32>
    %cst_188 = arith.constant 5.000000e-01 : f32
    %828 = vector.broadcast %cst_188 : f32 to vector<2x16xf32>
    %829 = arith.mulf %828, %827 : vector<2x16xf32>
    %830 = vector.extract_strided_slice %829 {offsets = [0, 0], sizes = [2, 8], strides = [1, 1]} : vector<2x16xf32> to vector<2x8xf32>
    %831 = vector.extract_strided_slice %829 {offsets = [0, 8], sizes = [2, 8], strides = [1, 1]} : vector<2x16xf32> to vector<2x8xf32>
    %832 = vector.extract_strided_slice %813 {offsets = [0, 16], sizes = [2, 8], strides = [1, 1]} : vector<2x24xf32> to vector<2x8xf32>
    %833 = arith.mulf %830, %820 : vector<2x8xf32>
    %834 = arith.addf %832, %833 : vector<2x8xf32>
    %835 = math.tanh %834 : vector<2x8xf32>
    %836 = arith.subf %782, %835 : vector<2x8xf32>
    %837 = arith.mulf %831, %836 : vector<2x8xf32>
    %838 = arith.addf %835, %837 : vector<2x8xf32>
    %839 = arith.truncf %838 : vector<2x8xf32> to vector<2x8xbf16>
    %cst_189 = arith.constant dense<0.000000e+00> : vector<2x24xf32>
    %840 = tpu.matmul %839, %12, %cst_189 {dimension_numbers = #tpu.dot_dimension_numbers<[1], [0], [0], [1], [0, 0, 1, 1], [], []>} : vector<2x8xbf16>, vector<8x24xbf16>, vector<2x24xf32> -> vector<2x24xf32>
    %841 = vector.broadcast %18 : vector<1x24xf32> to vector<2x24xf32>
    %842 = arith.addf %840, %841 : vector<2x24xf32>
    %843 = arith.truncf %811 : vector<2x8xf32> to vector<2x8xbf16>
    %cst_190 = arith.constant dense<0.000000e+00> : vector<2x16xf32>
    %844 = tpu.matmul %843, %15, %cst_190 {dimension_numbers = #tpu.dot_dimension_numbers<[1], [0], [0], [1], [0, 0, 1, 1], [], []>} : vector<2x8xbf16>, vector<8x16xbf16>, vector<2x16xf32> -> vector<2x16xf32>
    %845 = vector.broadcast %20 : vector<1x16xf32> to vector<2x16xf32>
    %846 = arith.addf %844, %845 : vector<2x16xf32>
    %cst_191 = arith.constant dense<0.000000e+00> : vector<2x8xf32>
    %847 = tpu.matmul %843, %17, %cst_191 {dimension_numbers = #tpu.dot_dimension_numbers<[1], [0], [0], [1], [0, 0, 1, 1], [], []>} : vector<2x8xbf16>, vector<8x8xbf16>, vector<2x8xf32> -> vector<2x8xf32>
    %848 = vector.broadcast %21 : vector<1x8xf32> to vector<2x8xf32>
    %849 = arith.addf %847, %848 : vector<2x8xf32>
    %850 = vector.extract_strided_slice %842 {offsets = [0, 0], sizes = [2, 16], strides = [1, 1]} : vector<2x24xf32> to vector<2x16xf32>
    %851 = arith.addf %850, %846 : vector<2x16xf32>
    %cst_192 = arith.constant 5.000000e-01 : f32
    %852 = vector.broadcast %cst_192 : f32 to vector<2x16xf32>
    %853 = arith.mulf %852, %851 : vector<2x16xf32>
    %854 = math.tanh %853 : vector<2x16xf32>
    %cst_193 = arith.constant 1.000000e+00 : f32
    %855 = vector.broadcast %cst_193 : f32 to vector<2x16xf32>
    %856 = arith.addf %854, %855 : vector<2x16xf32>
    %cst_194 = arith.constant 5.000000e-01 : f32
    %857 = vector.broadcast %cst_194 : f32 to vector<2x16xf32>
    %858 = arith.mulf %857, %856 : vector<2x16xf32>
    %859 = vector.extract_strided_slice %858 {offsets = [0, 0], sizes = [2, 8], strides = [1, 1]} : vector<2x16xf32> to vector<2x8xf32>
    %860 = vector.extract_strided_slice %858 {offsets = [0, 8], sizes = [2, 8], strides = [1, 1]} : vector<2x16xf32> to vector<2x8xf32>
    %861 = vector.extract_strided_slice %842 {offsets = [0, 16], sizes = [2, 8], strides = [1, 1]} : vector<2x24xf32> to vector<2x8xf32>
    %862 = arith.mulf %859, %849 : vector<2x8xf32>
    %863 = arith.addf %861, %862 : vector<2x8xf32>
    %864 = math.tanh %863 : vector<2x8xf32>
    %865 = arith.subf %811, %864 : vector<2x8xf32>
    %866 = arith.mulf %860, %865 : vector<2x8xf32>
    %867 = arith.addf %864, %866 : vector<2x8xf32>
    %c0_195 = arith.constant 0 : index
    %c112 = arith.constant 112 : index
    %868 = vector.load %arg7[%c0_195, %c112] : memref<2x128xf32, #tpu.memory_space<vmem>>, vector<2x8xf32>
    tpu.vector_store %arg7[%c0_195, %c112], %867 {strides = array<i32>} : memref<2x128xf32, #tpu.memory_space<vmem>>, vector<2x8xf32>,
    %869 = vector.extract_strided_slice %26 {offsets = [30, 0], sizes = [2, 24], strides = [1, 1]} : vector<32x24xf32> to vector<2x24xf32>
    %870 = arith.truncf %838 : vector<2x8xf32> to vector<2x8xbf16>
    %cst_196 = arith.constant dense<0.000000e+00> : vector<2x16xf32>
    %871 = tpu.matmul %870, %4, %cst_196 {dimension_numbers = #tpu.dot_dimension_numbers<[1], [0], [0], [1], [0, 0, 1, 1], [], []>} : vector<2x8xbf16>, vector<8x16xbf16>, vector<2x16xf32> -> vector<2x16xf32>
    %872 = vector.broadcast %9 : vector<1x16xf32> to vector<2x16xf32>
    %873 = arith.addf %871, %872 : vector<2x16xf32>
    %cst_197 = arith.constant dense<0.000000e+00> : vector<2x8xf32>
    %874 = tpu.matmul %870, %6, %cst_197 {dimension_numbers = #tpu.dot_dimension_numbers<[1], [0], [0], [1], [0, 0, 1, 1], [], []>} : vector<2x8xbf16>, vector<8x8xbf16>, vector<2x8xf32> -> vector<2x8xf32>
    %875 = vector.broadcast %10 : vector<1x8xf32> to vector<2x8xf32>
    %876 = arith.addf %874, %875 : vector<2x8xf32>
    %877 = vector.extract_strided_slice %869 {offsets = [0, 0], sizes = [2, 16], strides = [1, 1]} : vector<2x24xf32> to vector<2x16xf32>
    %878 = arith.addf %877, %873 : vector<2x16xf32>
    %cst_198 = arith.constant 5.000000e-01 : f32
    %879 = vector.broadcast %cst_198 : f32 to vector<2x16xf32>
    %880 = arith.mulf %879, %878 : vector<2x16xf32>
    %881 = math.tanh %880 : vector<2x16xf32>
    %cst_199 = arith.constant 1.000000e+00 : f32
    %882 = vector.broadcast %cst_199 : f32 to vector<2x16xf32>
    %883 = arith.addf %881, %882 : vector<2x16xf32>
    %cst_200 = arith.constant 5.000000e-01 : f32
    %884 = vector.broadcast %cst_200 : f32 to vector<2x16xf32>
    %885 = arith.mulf %884, %883 : vector<2x16xf32>
    %886 = vector.extract_strided_slice %885 {offsets = [0, 0], sizes = [2, 8], strides = [1, 1]} : vector<2x16xf32> to vector<2x8xf32>
    %887 = vector.extract_strided_slice %885 {offsets = [0, 8], sizes = [2, 8], strides = [1, 1]} : vector<2x16xf32> to vector<2x8xf32>
    %888 = vector.extract_strided_slice %869 {offsets = [0, 16], sizes = [2, 8], strides = [1, 1]} : vector<2x24xf32> to vector<2x8xf32>
    %889 = arith.mulf %886, %876 : vector<2x8xf32>
    %890 = arith.addf %888, %889 : vector<2x8xf32>
    %891 = math.tanh %890 : vector<2x8xf32>
    %892 = arith.subf %838, %891 : vector<2x8xf32>
    %893 = arith.mulf %887, %892 : vector<2x8xf32>
    %894 = arith.addf %891, %893 : vector<2x8xf32>
    %895 = arith.truncf %894 : vector<2x8xf32> to vector<2x8xbf16>
    %cst_201 = arith.constant dense<0.000000e+00> : vector<2x24xf32>
    %896 = tpu.matmul %895, %12, %cst_201 {dimension_numbers = #tpu.dot_dimension_numbers<[1], [0], [0], [1], [0, 0, 1, 1], [], []>} : vector<2x8xbf16>, vector<8x24xbf16>, vector<2x24xf32> -> vector<2x24xf32>
    %897 = vector.broadcast %18 : vector<1x24xf32> to vector<2x24xf32>
    %898 = arith.addf %896, %897 : vector<2x24xf32>
    %899 = arith.truncf %867 : vector<2x8xf32> to vector<2x8xbf16>
    %cst_202 = arith.constant dense<0.000000e+00> : vector<2x16xf32>
    %900 = tpu.matmul %899, %15, %cst_202 {dimension_numbers = #tpu.dot_dimension_numbers<[1], [0], [0], [1], [0, 0, 1, 1], [], []>} : vector<2x8xbf16>, vector<8x16xbf16>, vector<2x16xf32> -> vector<2x16xf32>
    %901 = vector.broadcast %20 : vector<1x16xf32> to vector<2x16xf32>
    %902 = arith.addf %900, %901 : vector<2x16xf32>
    %cst_203 = arith.constant dense<0.000000e+00> : vector<2x8xf32>
    %903 = tpu.matmul %899, %17, %cst_203 {dimension_numbers = #tpu.dot_dimension_numbers<[1], [0], [0], [1], [0, 0, 1, 1], [], []>} : vector<2x8xbf16>, vector<8x8xbf16>, vector<2x8xf32> -> vector<2x8xf32>
    %904 = vector.broadcast %21 : vector<1x8xf32> to vector<2x8xf32>
    %905 = arith.addf %903, %904 : vector<2x8xf32>
    %906 = vector.extract_strided_slice %898 {offsets = [0, 0], sizes = [2, 16], strides = [1, 1]} : vector<2x24xf32> to vector<2x16xf32>
    %907 = arith.addf %906, %902 : vector<2x16xf32>
    %cst_204 = arith.constant 5.000000e-01 : f32
    %908 = vector.broadcast %cst_204 : f32 to vector<2x16xf32>
    %909 = arith.mulf %908, %907 : vector<2x16xf32>
    %910 = math.tanh %909 : vector<2x16xf32>
    %cst_205 = arith.constant 1.000000e+00 : f32
    %911 = vector.broadcast %cst_205 : f32 to vector<2x16xf32>
    %912 = arith.addf %910, %911 : vector<2x16xf32>
    %cst_206 = arith.constant 5.000000e-01 : f32
    %913 = vector.broadcast %cst_206 : f32 to vector<2x16xf32>
    %914 = arith.mulf %913, %912 : vector<2x16xf32>
    %915 = vector.extract_strided_slice %914 {offsets = [0, 0], sizes = [2, 8], strides = [1, 1]} : vector<2x16xf32> to vector<2x8xf32>
    %916 = vector.extract_strided_slice %914 {offsets = [0, 8], sizes = [2, 8], strides = [1, 1]} : vector<2x16xf32> to vector<2x8xf32>
    %917 = vector.extract_strided_slice %898 {offsets = [0, 16], sizes = [2, 8], strides = [1, 1]} : vector<2x24xf32> to vector<2x8xf32>
    %918 = arith.mulf %915, %905 : vector<2x8xf32>
    %919 = arith.addf %917, %918 : vector<2x8xf32>
    %920 = math.tanh %919 : vector<2x8xf32>
    %921 = arith.subf %867, %920 : vector<2x8xf32>
    %922 = arith.mulf %916, %921 : vector<2x8xf32>
    %923 = arith.addf %920, %922 : vector<2x8xf32>
    %c0_207 = arith.constant 0 : index
    %c120 = arith.constant 120 : index
    %924 = vector.load %arg7[%c0_207, %c120] : memref<2x128xf32, #tpu.memory_space<vmem>>, vector<2x8xf32>
    tpu.vector_store %arg7[%c0_207, %c120], %923 {strides = array<i32>} : memref<2x128xf32, #tpu.memory_space<vmem>>, vector<2x8xf32>,
    %c0_208 = arith.constant 0 : index
    %c0_209 = arith.constant 0 : index
    %925 = vector.load %arg7[%c0_208, %c0_209] : memref<2x128xf32, #tpu.memory_space<vmem>>, vector<2x128xf32>
    %c0_210 = arith.constant 0 : index
    %c0_211 = arith.constant 0 : index
    %926 = vector.load %arg4[%c0_210, %c0_211] : memref<137x70xf32, #tpu.memory_space<vmem>>, vector<128x70xf32>
    %c128 = arith.constant 128 : index
    %c0_212 = arith.constant 0 : index
    %927 = vector.load %arg4[%c128, %c0_212] : memref<137x70xf32, #tpu.memory_space<vmem>>, vector<8x70xf32>
    %c136 = arith.constant 136 : index
    %c0_213 = arith.constant 0 : index
    %928 = vector.load %arg4[%c136, %c0_213] : memref<137x70xf32, #tpu.memory_space<vmem>>, vector<1x70xf32>
    %cst_214 = arith.constant dense<0.000000e+00> : vector<2x70xf32>
    %929 = tpu.matmul %925, %926, %cst_214 {dimension_numbers = #tpu.dot_dimension_numbers<[1], [0], [0], [1], [0, 0, 1, 1], [], []>} : vector<2x128xf32>, vector<128x70xf32>, vector<2x70xf32> -> vector<2x70xf32>
    %c0_215 = arith.constant 0 : index
    %c0_216 = arith.constant 0 : index
    %930 = vector.load %arg1[%c0_215, %c0_216] : memref<2x8xf32, #tpu.memory_space<vmem>>, vector<2x8xf32>
    %cst_217 = arith.constant dense<0.000000e+00> : vector<2x70xf32>
    %931 = tpu.matmul %930, %927, %cst_217 {dimension_numbers = #tpu.dot_dimension_numbers<[1], [0], [0], [1], [0, 0, 1, 1], [], []>} : vector<2x8xf32>, vector<8x70xf32>, vector<2x70xf32> -> vector<2x70xf32>
    %932 = arith.addf %929, %931 : vector<2x70xf32>
    %933 = vector.broadcast %928 : vector<1x70xf32> to vector<2x70xf32>
    %934 = arith.addf %932, %933 : vector<2x70xf32>
    %c0_218 = arith.constant 0 : index
    %c0_219 = arith.constant 0 : index
    %935 = vector.load %arg5[%c0_218, %c0_219] : memref<71x4xf32, #tpu.memory_space<vmem>>, vector<70x4xf32>
    %c70 = arith.constant 70 : index
    %c0_220 = arith.constant 0 : index
    %936 = vector.load %arg5[%c70, %c0_220] : memref<71x4xf32, #tpu.memory_space<vmem>>, vector<1x4xf32>
    %cst_221 = arith.constant dense<0.000000e+00> : vector<2x4xf32>
    %937 = tpu.matmul %934, %935, %cst_221 {dimension_numbers = #tpu.dot_dimension_numbers<[1], [0], [0], [1], [0, 0, 1, 1], [], []>} : vector<2x70xf32>, vector<70x4xf32>, vector<2x4xf32> -> vector<2x4xf32>
    %938 = vector.broadcast %936 : vector<1x4xf32> to vector<2x4xf32>
    %939 = arith.addf %937, %938 : vector<2x4xf32>
    %cst_222 = arith.constant dense<0xFF800000> : vector<2xf32>
    %940 = vector.multi_reduction <maximumf>, %939, %cst_222 [1] : vector<2x4xf32> to vector<2xf32>
    %941 = vector.shape_cast %940 : vector<2xf32> to vector<2x1xf32>
    %942 = vector.broadcast %941 : vector<2x1xf32> to vector<2x4xf32>
    %943 = arith.subf %939, %942 : vector<2x4xf32>
    %944 = math.exp %943 : vector<2x4xf32>
    %cst_223 = arith.constant dense<0.000000e+00> : vector<2xf32>
    %945 = vector.multi_reduction <add>, %944, %cst_223 [1] : vector<2x4xf32> to vector<2xf32>
    %946 = vector.shape_cast %945 : vector<2xf32> to vector<2x1xf32>
    %947 = vector.broadcast %946 : vector<2x1xf32> to vector<2x4xf32>
    %948 = arith.divf %944, %947 : vector<2x4xf32>
    %c0_224 = arith.constant 0 : index
    %c0_225 = arith.constant 0 : index
    %949 = vector.load %arg6[%c0_224, %c0_225] : memref<2x4xf32, #tpu.memory_space<vmem>>, vector<2x4xf32>
    tpu.vector_store %arg6[%c0_224, %c0_225], %948 {strides = array<i32>} : memref<2x4xf32, #tpu.memory_space<vmem>>, vector<2x4xf32>,
    return
  }
}

</mosaic_0001>

<bundles_post_ra>
// kernel: only_rnn_forward.1
= control target key start
LH: loop header
LB: loop body
LE: loop exit
PB: predicated region body
PF: predicated region fallthrough
CT: control target
= control target key end

     0   :  { %vm48_vm0 = vcmask 130048   ;;  %v5888_v10 = vmov 0.0   ;;  %vm5889_vm1 = vmmov 0   ;;  %vm115_vm2 = vcmask 1043456   ;;  %s5890_s11 = smov 112   ;;  %s7000_s0 = inlined_call_operand.vmem [shape: f32[32,16], index: 0, kind: input, shape index: {}]   ;;  %s7001_s1 = inlined_call_operand.vmem [shape: f32[2,8], index: 1, kind: input, shape index: {}]   ;;  %s7002_s2 = inlined_call_operand.vmem [shape: f32[4,8], index: 2, kind: input, shape index: {}]   ;;  %s7003_s3 = inlined_call_operand.vmem [shape: f32[44,24], index: 3, kind: input, shape index: {}]   ;;  %s7004_s4 = inlined_call_operand.vmem [shape: f32[137,70], index: 4, kind: input, shape index: {}]   ;;  %s7005_s5 = inlined_call_operand.vmem [shape: f32[71,4], index: 5, kind: input, shape index: {}]   ;;  %s7006_s6 = inlined_call_operand.hbm [shape: f32[2,4], index: 6, kind: output, shape index: {}]  }
   0x1   :  { %v28_v0 = vld [vmem:[%s7003_s3 + $0x10] sm:$0xff]  ;;  %v25_v1 = vld [vmem:[%s7003_s3] sm:$0xff]  ;;  %v26_v3 = vld [vmem:[%s7003_s3 + $0x8] sm:$0xff]  ;;  %5136 = vmatprep.subr.bf16.mxu0 %v5888_v10  ;;  %5138 = vmatprep.mubr.msk.bf16.mxu0 %vm5889_vm1, %v5888_v10 }
   0x2   :  { %v29_v2 = vpack.c.bf16 %v28_v0, %v28_v0  ;;  %v38_v4 = vld [vmem:[%s7000_s0] sm:$0xff]  ;;  %v39_v5 = vld [vmem:[%s7000_s0 + $0x8] sm:$0xff]  ;;  %v27_v6 = vpack.c.bf16 %v26_v3, %v25_v1  ;;  %v40_v8 = vld [vmem:[%s7000_s0 + $0x10] sm:$0xff] }
   0x3   :  { %v42_v7 = vpack.c.bf16 %v39_v5, %v38_v4  ;;  %v41_v9 = vld [vmem:[%s7000_s0 + $0x18] sm:$0xff] }
   0x4   :  { %160 = vrot.lane.b32.xlu0 %v29_v2, %s5890_s11 }
   0x5   :  { %11 = vsyncpa [#allocation4], 0  ;;  %5124 = vmatprep.subr.bf16.mxu1 %v27_v6  ;;  %5126 = vmatprep.mubr.msk.bf16.mxu1 %vm48_vm0, %v42_v7  ;;  %v43_v11 = vpack.c.bf16 %v41_v9, %v40_v8  ;;  %v5971_v12 = vld [vmem:[%s7003_s3 + $0x19] ss:$0 sm:$0xff]  ;;  %v5974_v13 = vsel %vm115_vm2, %v29_v2, 0  ;;  %v32_v14 = vld [vmem:[%s7003_s3 + $0x1a] sm:$0xff] }
   0x6   :  { %5125 = vmatpush3.bf16.msra.mxu1 %v27_v6  ;;  %v104_v15 = vld [vmem:[%s7002_s2] sm:$0x3]  ;;  %v33_v16 = vpack.c.bf16 %v32_v14, %v32_v14  ;;  %vm111_vm3 = vcmask 64512   ;;  %v4841_v21 = vld [vmem:[%s7003_s3 + $0x18] ss:$0 sm:$0xff]  ;;  %s5891_s19 = smov 16  }
   0x7   :  { %5130 = vmatprep.subr.bf16.mxu1 %v5888_v10  ;;  %v106_v17 = vpack.c.bf16 %v104_v15, %v104_v15  ;;  %s5892_s20 = smov 8   ;;  %v34_v52 = vld [vmem:[%s7003_s3 + $0x22] sm:$0xff]  ;;  %v6056_v62 = vld [vmem:[%s7003_s3 + $0x2b] ss:$0 sm:$0xff]  ;;  %v6086_v6 = vld [vmem:[%s7003_s3 + $0x2a] ss:$0 sm:$0xff] }
   0x8   :  { %163 = vrot.lane.b32.xlu0 %v5971_v12, %s5890_s11  ;;  %v5991_v18 = vsel %vm115_vm2, %v33_v16, 0  ;;  %v6032_v53 = vld [vmem:[%s7002_s2 + $0x2] sm:$0x3]  ;;  %v35_v54 = vpack.c.bf16 %v34_v52, %v34_v52  ;;  %s5893_s28 = smov 120   ;;  %s5895_s17 = smov 40   ;;  %vm422_vm4 = vcmask 58368  }
   0x9   :  { %5127 = vmatmul.mubr.msk.bf16.vlgmr.msra.gmra.mrb[0].mxu1 %vm48_vm0, %v43_v11  ;;  %v290_v56 = vpack.c.bf16 %v6032_v53, %v6032_v53  ;;  %s5896_s18 = smov 56   ;;  %s5897_s21 = smov 72   ;;  %vm699_vm5 = vcmask 123968   ;;  %vm972_vm6 = vcmask 189568   ;;  %vm1249_vm7 = vcmask 255168  }
   0xa   :  { %5131 = vmatpush3.bf16.msra.mxu1 %v5974_v13  ;;  %5132 = vmatprep.mubr.msk.bf16.mxu1 %vm5889_vm1, %v5888_v10  ;;  %v6035_v55 = vsel %vm115_vm2, %v35_v54, 0  ;;  %s5898_s22 = smov 88   ;;  %s5900_s27 = smov 48   ;;  %vm1519_vm8 = vcmask 320768   ;;  %vm1796_vm9 = vcmask 386368   ;;  %vm2073_vm10 = vcmask 451968  }
   0xb   :  { %5142 = vmatprep.subr.bf16.mxu1 %v5888_v10  ;;  %s5902_s9 = smov 64   ;;  %s5903_s14 = smov 80   ;;  %vm2350_vm11 = vcmask 517568   ;;  %vm2620_vm12 = vcmask 583168   ;;  %vm2897_vm13 = vcmask 648768   ;;  %vm3174_vm14 = vcmask 714368  }
   0xc   :  { %vm3451_vm15 = vcmask 779968   ;;  %vm3721_vm0 = vcmask 845568  }
  0x11   :  { %5133 = vmatmul.mubr.msk.bf16.vlgmr.msra.gmra.mrb[4].mxu1 %vm111_vm3, %v106_v17 }
  0x12   :  { %5143 = vmatpush3.bf16.msra.mxu1 %v5991_v18  ;;  %5144 = vmatprep.mubr.msk.bf16.mxu1 %vm5889_vm1, %v5888_v10 }
  0x13   :  { %5154 = vmatprep.subr.bf16.mxu1 %v5888_v10 }
  0x76   :  { %v161_v19 = vpop.permute.xlu0 %160 }
  0x77   :  { %v5999_v20 = vsel %vm115_vm2, %v161_v19, 0 }
  0x78   :  { %5137 = vmatpush3.bf16.msra.mxu0 %v5999_v20 }
  0x79   :  { %5148 = vmatprep.subr.bf16.mxu0 %v5888_v10 }
  0x7a   :  { %v6019_v39 = vpop.permute.xlu0 %163 }
  0x7b   :  { %5139 = vmatmul.mubr.msk.bf16.vlgmr.msra.gmra.mrb[0].mxu0 %vm111_vm3, %v106_v17 }
  0x7c   :  { %5150 = vmatprep.mubr.msk.bf16.mxu0 %vm5889_vm1, %v5888_v10  ;;  %5149 = vmatpush3.bf16.msra.mxu0 %v6035_v55 }
  0x7d   :  { %5160 = vmatprep.subr.bf16.mxu0 %v5888_v10 }
  0x83   :  { %5151 = vmatmul.mubr.msk.bf16.vlgmr.msra.gmra.mrb[4].mxu0 %vm111_vm3, %v290_v56 }
  0x84   :  { %5161 = vmatpush3.bf16.msra.mxu0 %v5974_v13  ;;  %5162 = vmatprep.mubr.msk.bf16.mxu0 %vm5889_vm1, %v5888_v10 }
  0x85   :  { %5172 = vmatprep.subr.bf16.mxu0 %v5888_v10 }
  0xdc   :  { %v5128_v22 = vpop.f32.mrb[0].mxu1 }
  0xdd   :  { %v6009_v23 = vadd.f32 %v5128_v22, %v4841_v21  ;;  %v89_v24 = vpop.f32.mrb[1].mxu1 }
  0xde   :  { %v5129_v25 = vpop.f32.mrb[2].mxu1  ;;  %v6015_v33 = vadd.f32 %v4841_v21, %v89_v24 }
  0xdf   :  { %v6011_v26 = vadd.f32 %v5129_v25, %v4841_v21  ;;  %v92_v27 = vpop.f32.mrb[3].mxu1 }
  0xe0   :  { %v6013_v28 = vadd.f32 %v4841_v21, %v92_v27 }
  0xe4   :  { %v153_v29 = vpop.f32.mrb[4].mxu1 }
  0xe5   :  { %v5134_v30 = vpop.f32.mrb[5].mxu1  ;;  %v154_v34 = vadd.f32 %v5971_v12, %v153_v29 }
  0xe6   :  { %v156_v31 = vpop.f32.mrb[6].mxu1 }
  0xe7   :  { %v5135_v32 = vpop.f32.mrb[7].mxu1  ;;  %v209_v35 = vadd.f32 %v154_v34, %v6015_v33 }
  0xe9   :  { %v210_v36 = vmul.f32 0.5, %v209_v35 }
  0xeb   :  { %5726 = vtanh.f32 %v210_v36 }
  0xf5   :  { %v5727_v37 = vpop.eup %5726 }
  0xf6   :  { %v212_v38 = vadd.f32 1.0, %v5727_v37 }
  0xf8   :  { %v213_v43 = vmul.f32 0.5, %v212_v38 }
 0x14e   :  { %v203_v40 = vpop.f32.mrb[0].mxu0 }
 0x14f   :  { %v5140_v41 = vpop.f32.mrb[1].mxu0  ;;  %v204_v42 = vadd.f32 %v203_v40, %v6019_v39 }
 0x150   :  { %v206_v44 = vpop.f32.mrb[2].mxu0 }
 0x151   :  { %v5141_v45 = vpop.f32.mrb[3].mxu0  ;;  %v214_v46 = vmul.f32 %v213_v43, %v204_v42 }
 0x153   :  { %216 = vrot.lane.b32.xlu1 %v214_v46, %s5891_s19 }
 0x156   :  { %v335_v63 = vpop.f32.mrb[4].mxu0 }
 0x157   :  { %v5152_v0 = vpop.f32.mrb[5].mxu0  ;;  %v336_v7 = vadd.f32 %v6056_v62, %v335_v63 }
 0x158   :  { %v338_v1 = vpop.f32.mrb[6].mxu0 }
 0x159   :  { %v5153_v2 = vpop.f32.mrb[7].mxu0 }
 0x1c5   :  { %v217_v47 = vpop.permute.xlu1 %216 }
 0x1c6   :  { %v219_v48 = vadd.f32 %v217_v47, %v6015_v33 }
 0x1c8   :  { %5728 = vtanh.f32 %v219_v48 }
 0x1d2   :  { %v5729_v49 = vpop.eup %5728 }
 0x1d3   :  { %222 = vrot.lane.b32.xlu1 %v5729_v49, %s5890_s11 }
 0x245   :  { %v223_v50 = vpop.permute.xlu1 %222 }
 0x246   :  { %v225_v51 = vsub.f32 %v104_v15, %v223_v50 }
 0x248   :  { %227 = vrot.lane.b32.xlu0 %v225_v51, %s5892_s20 }
 0x2ba   :  { %v228_v57 = vpop.permute.xlu0 %227 }
 0x2bb   :  { %v230_v58 = vmul.f32 %v228_v57, %v213_v43 }
 0x2bd   :  { %232 = vrot.lane.b32.xlu1 %v230_v58, %s5892_s20 }
 0x2c1   :  { %342 = vrot.lane.b32.xlu1 %v35_v54, %s5890_s11 }
 0x32f   :  { %v233_v59 = vpop.permute.xlu1 %232 }
 0x330   :  { %v6048_v60 = vadd.f32 %v5729_v49, %v233_v59 }
 0x332   :  { %v236_v61 = vpack.c.bf16 %v6048_v60, %v6048_v60 }
 0x333   :  { %v343_v3 = vpop.permute.xlu1 %342 }
 0x334   :  { %242 = vrot.lane.b32.xlu0 %v236_v61, %s5890_s11  ;;  %v6061_v4 = vsel %vm115_vm2, %v343_v3, 0  ;;  %vm4275_vm2 = vcmask 976768  }
 0x338   :  { %345 = vrot.lane.b32.xlu0 %v6056_v62, %s5890_s11 }
 0x3a6   :  { %v243_v5 = vpop.permute.xlu0 %242 }
 0x3a7   :  { %5145 = vmatmul.mubr.msk.bf16.vlgmr.msra.gmra.mrb[8].mxu1 %vm111_vm3, %v243_v5  ;;  %5163 = vmatmul.mubr.msk.bf16.vlgmr.msra.gmra.mrb[8].mxu0 %vm111_vm3, %v243_v5 }
 0x3a8   :  { %5155 = vmatpush3.bf16.msra.mxu1 %v6061_v4  ;;  %5156 = vmatprep.mubr.msk.bf16.mxu1 %vm5889_vm1, %v5888_v10 }
 0x3a9   :  { %5166 = vmatprep.subr.bf16.mxu1 %v5888_v10  ;;  %5173 = vmatpush3.bf16.msra.mxu0 %v5991_v18 }
 0x3aa   :  { %5174 = vmatprep.mubr.msk.bf16.mxu0 %vm5889_vm1, %v5888_v10  ;;  %5184 = vmatprep.subr.bf16.mxu0 %v5888_v10  ;;  %v6092_v36 = vpop.permute.xlu0 %345 }
 0x3af   :  { %5157 = vmatmul.mubr.msk.bf16.vlgmr.msra.gmra.mrb[12].mxu1 %vm111_vm3, %v290_v56 }
 0x3b0   :  { %5167 = vmatpush3.bf16.msra.mxu1 %v5999_v20  ;;  %5168 = vmatprep.mubr.msk.bf16.mxu1 %vm5889_vm1, %v5888_v10 }
 0x3b1   :  { %5178 = vmatprep.subr.bf16.mxu1 %v5888_v10 }
 0x3b7   :  { %5169 = vmatmul.mubr.msk.bf16.vlgmr.msra.gmra.mrb[16].mxu1 %vm111_vm3, %v243_v5 }
 0x3b8   :  { %5179 = vmatpush3.bf16.msra.mxu1 %v6035_v55  ;;  %5180 = vmatprep.mubr.msk.bf16.mxu1 %vm5889_vm1, %v5888_v10 }
 0x3b9   :  { %5190 = vmatprep.subr.bf16.mxu1 %v5888_v10 }
 0x47a   :  { %v284_v8 = vpop.f32.mrb[8].mxu1  ;;  %v458_v9 = vpop.f32.mrb[8].mxu0 }
 0x47b   :  { %v285_v11 = vadd.f32 %v6086_v6, %v284_v8  ;;  %v459_v14 = vadd.f32 %v5971_v12, %v458_v9  ;;  %v5146_v15 = vpop.f32.mrb[9].mxu1  ;;  %v5164_v16 = vpop.f32.mrb[9].mxu0 }
 0x47c   :  { %v287_v17 = vpop.f32.mrb[10].mxu1  ;;  %v461_v19 = vpop.f32.mrb[10].mxu0 }
 0x47d   :  { %v391_v21 = vadd.f32 %v336_v7, %v285_v11  ;;  %v505_v22 = vrot.slane %v459_v14, 6  ;;  %v5147_v24 = vpop.f32.mrb[11].mxu1  ;;  %v5165_v25 = vpop.f32.mrb[11].mxu0 }
 0x47f   :  { %v392_v27 = vmul.f32 0.5, %v391_v21  ;;  %v507_v29 = vadd.f32 %v505_v22, %v6015_v33 }
 0x481   :  { %5730 = vtanh.f32 %v392_v27  ;;  %v508_v30 = vmul.f32 0.5, %v507_v29 }
 0x482   :  { %v385_v31 = vpop.f32.mrb[12].mxu1 }
 0x483   :  { %5732 = vtanh.f32 %v508_v30  ;;  %v5158_v32 = vpop.f32.mrb[13].mxu1  ;;  %v386_v44 = vadd.f32 %v385_v31, %v6092_v36 }
 0x484   :  { %v388_v34 = vpop.f32.mrb[14].mxu1 }
 0x485   :  { %v5159_v35 = vpop.f32.mrb[15].mxu1 }
 0x48a   :  { %v498_v37 = vpop.f32.mrb[16].mxu1 }
 0x48b   :  { %v5731_v38 = vpop.eup %5730  ;;  %v5170_v40 = vpop.f32.mrb[17].mxu1  ;;  %v499_v42 = vadd.f32 %v498_v37, %v6019_v39 }
 0x48c   :  { %v394_v41 = vadd.f32 1.0, %v5731_v38  ;;  %v501_v43 = vpop.f32.mrb[18].mxu1 }
 0x48d   :  { %v5733_v45 = vpop.eup %5732  ;;  %v5171_v46 = vpop.f32.mrb[19].mxu1  ;;  %v513_v50 = vrot.slane %v499_v42, 6 }
 0x48e   :  { %v510_v47 = vadd.f32 1.0, %v5733_v45  ;;  %v395_v48 = vmul.f32 0.5, %v394_v41 }
 0x490   :  { %v511_v49 = vmul.f32 0.5, %v510_v47  ;;  %v396_v51 = vmul.f32 %v395_v48, %v386_v44 }
 0x492   :  { %v515_v52 = vmul.f32 %v513_v50, %v511_v49  ;;  %398 = vrot.lane.b32.xlu1 %v396_v51, %s5891_s19 }
 0x494   :  { %517 = vrot.lane.b32.xlu0 %v515_v52, %s5891_s19 }
 0x504   :  { %v399_v54 = vpop.permute.xlu1 %398 }
 0x505   :  { %v401_v56 = vadd.f32 %v399_v54, %v285_v11 }
 0x506   :  { %v518_v57 = vpop.permute.xlu0 %517 }
 0x507   :  { %5734 = vtanh.f32 %v401_v56  ;;  %v520_v58 = vadd.f32 %v518_v57, %v6015_v33 }
 0x509   :  { %5736 = vtanh.f32 %v520_v58 }
 0x511   :  { %v5735_v59 = vpop.eup %5734 }
 0x512   :  { %404 = vrot.lane.b32.xlu1 %v5735_v59, %s5890_s11 }
 0x513   :  { %v5737_v61 = vpop.eup %5736 }
 0x514   :  { %v523_v63 = vrot.slane %v5737_v61, 2 }
 0x516   :  { %v525_v0 = vsub.f32 %v6048_v60, %v523_v63 }
 0x518   :  { %v527_v1 = vrot.slane %v525_v0, 6 }
 0x51a   :  { %528 = vrot.lane.b32.xlu1 %v527_v1, %s5893_s28 }
 0x584   :  { %v405_v2 = vpop.permute.xlu1 %404 }
 0x585   :  { %v407_v3 = vsub.f32 %v6032_v53, %v405_v2 }
 0x587   :  { %409 = vrot.lane.b32.xlu0 %v407_v3, %s5892_s20 }
 0x58c   :  { %v529_v5 = vpop.permute.xlu1 %528 }
 0x58d   :  { %v531_v7 = vmul.f32 %v529_v5, %v511_v49 }
 0x58f   :  { %533 = vrot.lane.b32.xlu1 %v531_v7, %s5892_s20 }
 0x5f9   :  { %v410_v8 = vpop.permute.xlu0 %409 }
 0x5fa   :  { %v412_v9 = vmul.f32 %v410_v8, %v395_v48 }
 0x5fc   :  { %414 = vrot.lane.b32.xlu0 %v412_v9, %s5892_s20 }
 0x601   :  { %v534_v11 = vpop.permute.xlu1 %533 }
 0x602   :  { %v6106_v14 = vadd.f32 %v5737_v61, %v534_v11 }
 0x604   :  { %v537_v60 = vpack.c.bf16 %v6106_v14, %v6106_v14 }
 0x606   :  { %v539_v15 = vrot.slane %v537_v60, 1 }
 0x608   :  { %540 = vrot.lane.b32.xlu1 %v539_v15, %s5890_s11 }
 0x66e   :  { %v415_v53 = vpop.permute.xlu0 %414 }
 0x66f   :  { %v6111_v16 = vadd.f32 %v5735_v59, %v415_v53 }
 0x671   :  { %v585_v17 = vpack.c.bf16 %v6111_v16, %v6111_v16 }
 0x673   :  { %587 = vrot.lane.b32.xlu0 %v585_v17, %s5890_s11 }
 0x67a   :  { %v541_v19 = vpop.permute.xlu1 %540 }
 0x67b   :  { %5175 = vmatmul.mubr.msk.bf16.vlgmr.msra.gmra.mrb[12].mxu0 %vm111_vm3, %v541_v19 }
 0x67c   :  { %5185 = vmatpush3.bf16.msra.mxu0 %v6061_v4  ;;  %5186 = vmatprep.mubr.msk.bf16.mxu0 %vm5889_vm1, %v5888_v10 }
 0x67d   :  { %5196 = vmatprep.subr.bf16.mxu0 %v5888_v10 }
 0x6e5   :  { %v588_v21 = vpop.permute.xlu0 %587 }
 0x6e6   :  { %5181 = vmatmul.mubr.msk.bf16.vlgmr.msra.gmra.mrb[20].mxu1 %vm111_vm3, %v588_v21  ;;  %5187 = vmatmul.mubr.msk.bf16.vlgmr.msra.gmra.mrb[16].mxu0 %vm111_vm3, %v588_v21 }
 0x6e7   :  { %5191 = vmatpush3.bf16.msra.mxu1 %v5974_v13  ;;  %5197 = vmatpush3.bf16.msra.mxu0 %v5999_v20 }
 0x6e8   :  { %5192 = vmatprep.mubr.msk.bf16.mxu1 %vm5889_vm1, %v5888_v10  ;;  %5198 = vmatprep.mubr.msk.bf16.mxu0 %vm5889_vm1, %v5888_v10 }
 0x6e9   :  { %5208 = vmatprep.subr.bf16.mxu0 %v5888_v10  ;;  %5202 = vmatprep.subr.bf16.mxu1 %v5888_v10 }
 0x6ee   :  { %5193 = vmatmul.mubr.msk.bf16.vlgmr.msra.gmra.mrb[24].mxu1 %vm111_vm3, %v541_v19  ;;  %5199 = vmatmul.mubr.msk.bf16.vlgmr.msra.gmra.mrb[20].mxu0 %vm111_vm3, %v541_v19 }
 0x6ef   :  { %5209 = vmatpush3.bf16.msra.mxu0 %v6035_v55  ;;  %5210 = vmatprep.mubr.msk.bf16.mxu0 %vm5889_vm1, %v5888_v10 }
 0x6f0   :  { %5220 = vmatprep.subr.bf16.mxu0 %v5888_v10  ;;  %5203 = vmatpush3.bf16.msra.mxu1 %v5991_v18 }
 0x6f1   :  { %5204 = vmatprep.mubr.msk.bf16.mxu1 %vm5889_vm1, %v5888_v10  ;;  %5214 = vmatprep.subr.bf16.mxu1 %v5888_v10 }
 0x74e   :  { %v579_v22 = vpop.f32.mrb[12].mxu0 }
 0x74f   :  { %v5176_v24 = vpop.f32.mrb[13].mxu0  ;;  %v580_v31 = vadd.f32 %v6086_v6, %v579_v22 }
 0x750   :  { %v582_v25 = vpop.f32.mrb[14].mxu0 }
 0x751   :  { %v5177_v27 = vpop.f32.mrb[15].mxu0 }
 0x7b9   :  { %v626_v29 = vpop.f32.mrb[20].mxu1  ;;  %v666_v30 = vpop.f32.mrb[16].mxu0 }
 0x7ba   :  { %v627_v32 = vadd.f32 %v6056_v62, %v626_v29  ;;  %v5182_v34 = vpop.f32.mrb[21].mxu1  ;;  %v5188_v35 = vpop.f32.mrb[17].mxu0  ;;  %v667_v61 = vadd.f32 %v666_v30, %v6092_v36 }
 0x7bb   :  { %v629_v37 = vpop.f32.mrb[22].mxu1  ;;  %v669_v38 = vpop.f32.mrb[18].mxu0 }
 0x7bc   :  { %v672_v40 = vadd.f32 %v627_v32, %v580_v31  ;;  %v5183_v41 = vpop.f32.mrb[23].mxu1  ;;  %v5189_v42 = vpop.f32.mrb[19].mxu0 }
 0x7be   :  { %v673_v43 = vmul.f32 0.5, %v672_v40 }
 0x7c0   :  { %5738 = vtanh.f32 %v673_v43 }
 0x7c1   :  { %v735_v44 = vpop.f32.mrb[24].mxu1  ;;  %v775_v45 = vpop.f32.mrb[20].mxu0 }
 0x7c2   :  { %v736_v46 = vadd.f32 %v5971_v12, %v735_v44  ;;  %v5194_v47 = vpop.f32.mrb[25].mxu1  ;;  %v5200_v48 = vpop.f32.mrb[21].mxu0  ;;  %v776_v1 = vadd.f32 %v775_v45, %v6019_v39 }
 0x7c3   :  { %v738_v49 = vpop.f32.mrb[26].mxu1  ;;  %v778_v50 = vpop.f32.mrb[22].mxu0 }
 0x7c4   :  { %v782_v51 = vrot.slane %v736_v46, 4  ;;  %v5195_v52 = vpop.f32.mrb[27].mxu1  ;;  %v5201_v54 = vpop.f32.mrb[23].mxu0  ;;  %v790_v7 = vrot.slane %v776_v1, 4 }
 0x7c6   :  { %v784_v56 = vadd.f32 %v782_v51, %v6015_v33 }
 0x7c8   :  { %v785_v57 = vmul.f32 0.5, %v784_v56 }
 0x7ca   :  { %v5739_v58 = vpop.eup %5738  ;;  %5740 = vtanh.f32 %v785_v57 }
 0x7cb   :  { %v675_v59 = vadd.f32 1.0, %v5739_v58 }
 0x7cd   :  { %v676_v63 = vmul.f32 0.5, %v675_v59 }
 0x7cf   :  { %v677_v0 = vmul.f32 %v676_v63, %v667_v61 }
 0x7d1   :  { %679 = vrot.lane.b32.xlu0 %v677_v0, %s5891_s19 }
 0x7d4   :  { %v5741_v2 = vpop.eup %5740 }
 0x7d5   :  { %v787_v3 = vadd.f32 1.0, %v5741_v2 }
 0x7d7   :  { %v788_v5 = vmul.f32 0.5, %v787_v3 }
 0x7d9   :  { %v792_v8 = vmul.f32 %v790_v7, %v788_v5 }
 0x7db   :  { %794 = vrot.lane.b32.xlu1 %v792_v8, %s5891_s19 }
 0x843   :  { %v680_v9 = vpop.permute.xlu0 %679 }
 0x844   :  { %v682_v11 = vadd.f32 %v680_v9, %v580_v31 }
 0x846   :  { %5742 = vtanh.f32 %v682_v11 }
 0x84d   :  { %v795_v60 = vpop.permute.xlu1 %794 }
 0x84e   :  { %v797_v15 = vadd.f32 %v795_v60, %v6015_v33 }
 0x850   :  { %v5743_v53 = vpop.eup %5742  ;;  %5744 = vtanh.f32 %v797_v15 }
 0x851   :  { %v684_v17 = vsub.f32 %v6111_v16, %v5743_v53 }
 0x853   :  { %686 = vrot.lane.b32.xlu0 %v684_v17, %s5893_s28 }
 0x85a   :  { %v5745_v19 = vpop.eup %5744 }
 0x85b   :  { %v800_v21 = vrot.slane %v5745_v19, 2 }
 0x85d   :  { %v802_v22 = vsub.f32 %v6106_v14, %v800_v21 }
 0x85f   :  { %v804_v24 = vrot.slane %v802_v22, 6 }
 0x861   :  { %805 = vrot.lane.b32.xlu1 %v804_v24, %s5893_s28 }
 0x8c5   :  { %v687_v25 = vpop.permute.xlu0 %686 }
 0x8c6   :  { %v689_v27 = vmul.f32 %v687_v25, %v676_v63 }
 0x8c8   :  { %691 = vrot.lane.b32.xlu0 %v689_v27, %s5892_s20 }
 0x8d3   :  { %v806_v29 = vpop.permute.xlu1 %805 }
 0x8d4   :  { %v808_v30 = vmul.f32 %v806_v29, %v788_v5 }
 0x8d6   :  { %810 = vrot.lane.b32.xlu1 %v808_v30, %s5892_s20 }
 0x93a   :  { %v692_v31 = vpop.permute.xlu0 %691 }
 0x93b   :  { %v6156_v32 = vadd.f32 %v5743_v53, %v692_v31 }
 0x93d   :  { %v862_v34 = vpack.c.bf16 %v6156_v32, %v6156_v32 }
 0x93f   :  { %864 = vrot.lane.b32.xlu0 %v862_v34, %s5890_s11 }
 0x948   :  { %v811_v14 = vpop.permute.xlu1 %810 }
 0x949   :  { %v6161_v35 = vadd.f32 %v5745_v19, %v811_v14 }
 0x94b   :  { %v814_v37 = vpack.c.bf16 %v6161_v35, %v6161_v35 }
 0x94d   :  { %v816_v38 = vrot.slane %v814_v37, 2 }
 0x94f   :  { %817 = vrot.lane.b32.xlu1 %v816_v38, %s5890_s11 }
 0x9b1   :  { %v865_v40 = vpop.permute.xlu0 %864 }
 0x9b2   :  { %5211 = vmatmul.mubr.msk.bf16.vlgmr.msra.gmra.mrb[24].mxu0 %vm111_vm3, %v865_v40 }
 0x9b3   :  { %5221 = vmatpush3.bf16.msra.mxu0 %v5974_v13  ;;  %5222 = vmatprep.mubr.msk.bf16.mxu0 %vm5889_vm1, %v5888_v10 }
 0x9b4   :  { %5232 = vmatprep.subr.bf16.mxu0 %v5888_v10 }
 0x9c1   :  { %v818_v41 = vpop.permute.xlu1 %817 }
 0x9c2   :  { %5205 = vmatmul.mubr.msk.bf16.vlgmr.msra.gmra.mrb[28].mxu1 %vm111_vm3, %v818_v41  ;;  %5223 = vmatmul.mubr.msk.bf16.vlgmr.msra.gmra.mrb[28].mxu0 %vm111_vm3, %v818_v41 }
 0x9c3   :  { %5215 = vmatpush3.bf16.msra.mxu1 %v6061_v4  ;;  %5216 = vmatprep.mubr.msk.bf16.mxu1 %vm5889_vm1, %v5888_v10 }
 0x9c4   :  { %5226 = vmatprep.subr.bf16.mxu1 %v5888_v10  ;;  %5233 = vmatpush3.bf16.msra.mxu0 %v5991_v18 }
 0x9c5   :  { %5234 = vmatprep.mubr.msk.bf16.mxu0 %vm5889_vm1, %v5888_v10  ;;  %5244 = vmatprep.subr.bf16.mxu0 %v5888_v10 }
 0x9ca   :  { %5217 = vmatmul.mubr.msk.bf16.vlgmr.msra.gmra.mrb[32].mxu1 %vm111_vm3, %v865_v40 }
 0x9cb   :  { %5227 = vmatpush3.bf16.msra.mxu1 %v5999_v20  ;;  %5228 = vmatprep.mubr.msk.bf16.mxu1 %vm5889_vm1, %v5888_v10 }
 0x9cc   :  { %5238 = vmatprep.subr.bf16.mxu1 %v5888_v10 }
 0x9d2   :  { %5229 = vmatmul.mubr.msk.bf16.vlgmr.msra.gmra.mrb[36].mxu1 %vm111_vm3, %v818_v41 }
 0x9d3   :  { %5239 = vmatpush3.bf16.msra.mxu1 %v6035_v55  ;;  %5240 = vmatprep.mubr.msk.bf16.mxu1 %vm5889_vm1, %v5888_v10 }
 0x9d4   :  { %5250 = vmatprep.subr.bf16.mxu1 %v5888_v10 }
 0xa85   :  { %v903_v42 = vpop.f32.mrb[24].mxu0 }
 0xa86   :  { %v5212_v43 = vpop.f32.mrb[25].mxu0  ;;  %v904_v48 = vadd.f32 %v6056_v62, %v903_v42 }
 0xa87   :  { %v906_v44 = vpop.f32.mrb[26].mxu0 }
 0xa88   :  { %v5213_v45 = vpop.f32.mrb[27].mxu0 }
 0xa95   :  { %v856_v46 = vpop.f32.mrb[28].mxu1  ;;  %v1008_v47 = vpop.f32.mrb[28].mxu0 }
 0xa96   :  { %v857_v49 = vadd.f32 %v6086_v6, %v856_v46  ;;  %v1009_v50 = vadd.f32 %v5971_v12, %v1008_v47  ;;  %v5206_v51 = vpop.f32.mrb[29].mxu1  ;;  %v5224_v52 = vpop.f32.mrb[29].mxu0 }
 0xa97   :  { %v859_v54 = vpop.f32.mrb[30].mxu1  ;;  %v1011_v56 = vpop.f32.mrb[30].mxu0 }
 0xa98   :  { %v949_v57 = vadd.f32 %v904_v48, %v857_v49  ;;  %v1055_v58 = vrot.slane %v1009_v50, 2  ;;  %v5207_v59 = vpop.f32.mrb[31].mxu1  ;;  %v5225_v61 = vpop.f32.mrb[31].mxu0 }
 0xa9a   :  { %v950_v63 = vmul.f32 0.5, %v949_v57  ;;  %v1057_v0 = vadd.f32 %v1055_v58, %v6015_v33 }
 0xa9c   :  { %5746 = vtanh.f32 %v950_v63  ;;  %v1058_v1 = vmul.f32 0.5, %v1057_v0 }
 0xa9d   :  { %v943_v2 = vpop.f32.mrb[32].mxu1 }
 0xa9e   :  { %5748 = vtanh.f32 %v1058_v1  ;;  %v5218_v3 = vpop.f32.mrb[33].mxu1  ;;  %v944_v21 = vadd.f32 %v943_v2, %v6092_v36 }
 0xa9f   :  { %v946_v5 = vpop.f32.mrb[34].mxu1 }
 0xaa0   :  { %v5219_v7 = vpop.f32.mrb[35].mxu1 }
 0xaa5   :  { %v1048_v8 = vpop.f32.mrb[36].mxu1 }
 0xaa6   :  { %v5747_v9 = vpop.eup %5746  ;;  %v5230_v11 = vpop.f32.mrb[37].mxu1  ;;  %v1049_v15 = vadd.f32 %v1048_v8, %v6019_v39 }
 0xaa7   :  { %v952_v60 = vadd.f32 1.0, %v5747_v9  ;;  %v1051_v53 = vpop.f32.mrb[38].mxu1 }
 0xaa8   :  { %v5749_v17 = vpop.eup %5748  ;;  %v5231_v19 = vpop.f32.mrb[39].mxu1  ;;  %v1063_v29 = vrot.slane %v1049_v15, 2 }
 0xaa9   :  { %v953_v22 = vmul.f32 0.5, %v952_v60  ;;  %v1060_v24 = vadd.f32 1.0, %v5749_v17 }
 0xaab   :  { %v954_v25 = vmul.f32 %v953_v22, %v944_v21  ;;  %v1061_v27 = vmul.f32 0.5, %v1060_v24 }
 0xaad   :  { %v1065_v30 = vmul.f32 %v1063_v29, %v1061_v27  ;;  %956 = vrot.lane.b32.xlu1 %v954_v25, %s5891_s19 }
 0xaaf   :  { %1067 = vrot.lane.b32.xlu0 %v1065_v30, %s5891_s19 }
 0xb1f   :  { %v957_v31 = vpop.permute.xlu1 %956 }
 0xb20   :  { %v959_v34 = vadd.f32 %v957_v31, %v857_v49 }
 0xb21   :  { %v1068_v14 = vpop.permute.xlu0 %1067 }
 0xb22   :  { %5750 = vtanh.f32 %v959_v34  ;;  %v1070_v37 = vadd.f32 %v1068_v14, %v6015_v33 }
 0xb24   :  { %5752 = vtanh.f32 %v1070_v37 }
 0xb2c   :  { %v5751_v38 = vpop.eup %5750 }
 0xb2d   :  { %v961_v40 = vsub.f32 %v6156_v32, %v5751_v38 }
 0xb2e   :  { %v5753_v41 = vpop.eup %5752 }
 0xb2f   :  { %963 = vrot.lane.b32.xlu0 %v961_v40, %s5893_s28  ;;  %v1073_v42 = vrot.slane %v5753_v41, 2 }
 0xb31   :  { %v1075_v43 = vsub.f32 %v6161_v35, %v1073_v42 }
 0xb33   :  { %v1077_v44 = vrot.slane %v1075_v43, 6 }
 0xb35   :  { %1078 = vrot.lane.b32.xlu1 %v1077_v44, %s5893_s28 }
 0xba1   :  { %v964_v45 = vpop.permute.xlu0 %963 }
 0xba2   :  { %v966_v46 = vmul.f32 %v964_v45, %v953_v22 }
 0xba4   :  { %968 = vrot.lane.b32.xlu0 %v966_v46, %s5892_s20 }
 0xba7   :  { %v1079_v47 = vpop.permute.xlu1 %1078 }
 0xba8   :  { %v1081_v48 = vmul.f32 %v1079_v47, %v1061_v27 }
 0xbaa   :  { %1083 = vrot.lane.b32.xlu1 %v1081_v48, %s5892_s20 }
 0xc16   :  { %v969_v33 = vpop.permute.xlu0 %968 }
 0xc17   :  { %v6206_v49 = vadd.f32 %v5751_v38, %v969_v33 }
 0xc19   :  { %v1135_v50 = vpack.c.bf16 %v6206_v49, %v6206_v49 }
 0xc1b   :  { %1137 = vrot.lane.b32.xlu0 %v1135_v50, %s5890_s11 }
 0xc1c   :  { %v1084_v35 = vpop.permute.xlu1 %1083 }
 0xc1d   :  { %v6211_v51 = vadd.f32 %v5753_v41, %v1084_v35 }
 0xc1f   :  { %v1087_v52 = vpack.c.bf16 %v6211_v51, %v6211_v51 }
 0xc21   :  { %v1089_v54 = vrot.slane %v1087_v52, 3 }
 0xc23   :  { %1090 = vrot.lane.b32.xlu1 %v1089_v54, %s5890_s11 }
 0xc8d   :  { %v1138_v56 = vpop.permute.xlu0 %1137 }
 0xc8e   :  { %5241 = vmatmul.mubr.msk.bf16.vlgmr.msra.gmra.mrb[40].mxu1 %vm111_vm3, %v1138_v56 }
 0xc8f   :  { %5251 = vmatpush3.bf16.msra.mxu1 %v5974_v13  ;;  %5252 = vmatprep.mubr.msk.bf16.mxu1 %vm5889_vm1, %v5888_v10 }
 0xc90   :  { %5262 = vmatprep.subr.bf16.mxu1 %v5888_v10 }
 0xc95   :  { %v1091_v57 = vpop.permute.xlu1 %1090 }
 0xc96   :  { %5235 = vmatmul.mubr.msk.bf16.vlgmr.msra.gmra.mrb[32].mxu0 %vm111_vm3, %v1091_v57  ;;  %5253 = vmatmul.mubr.msk.bf16.vlgmr.msra.gmra.mrb[44].mxu1 %vm111_vm3, %v1091_v57 }
 0xc97   :  { %5245 = vmatpush3.bf16.msra.mxu0 %v6061_v4  ;;  %5246 = vmatprep.mubr.msk.bf16.mxu0 %vm5889_vm1, %v5888_v10 }
 0xc98   :  { %5256 = vmatprep.subr.bf16.mxu0 %v5888_v10  ;;  %5263 = vmatpush3.bf16.msra.mxu1 %v5991_v18 }
 0xc99   :  { %5264 = vmatprep.mubr.msk.bf16.mxu1 %vm5889_vm1, %v5888_v10  ;;  %5274 = vmatprep.subr.bf16.mxu1 %v5888_v10 }
 0xc9e   :  { %5247 = vmatmul.mubr.msk.bf16.vlgmr.msra.gmra.mrb[36].mxu0 %vm111_vm3, %v1138_v56 }
 0xc9f   :  { %5257 = vmatpush3.bf16.msra.mxu0 %v5999_v20  ;;  %5258 = vmatprep.mubr.msk.bf16.mxu0 %vm5889_vm1, %v5888_v10 }
 0xca0   :  { %5268 = vmatprep.subr.bf16.mxu0 %v5888_v10 }
 0xca6   :  { %5259 = vmatmul.mubr.msk.bf16.vlgmr.msra.gmra.mrb[40].mxu0 %vm111_vm3, %v1091_v57 }
 0xca7   :  { %5269 = vmatpush3.bf16.msra.mxu0 %v6035_v55  ;;  %5270 = vmatprep.mubr.msk.bf16.mxu0 %vm5889_vm1, %v5888_v10 }
 0xca8   :  { %5280 = vmatprep.subr.bf16.mxu0 %v5888_v10 }
 0xd61   :  { %v1176_v58 = vpop.f32.mrb[40].mxu1 }
 0xd62   :  { %v5242_v59 = vpop.f32.mrb[41].mxu1  ;;  %v1177_v2 = vadd.f32 %v6056_v62, %v1176_v58 }
 0xd63   :  { %v1179_v61 = vpop.f32.mrb[42].mxu1 }
 0xd64   :  { %v5243_v63 = vpop.f32.mrb[43].mxu1 }
 0xd69   :  { %v1129_v0 = vpop.f32.mrb[32].mxu0  ;;  %v1285_v1 = vpop.f32.mrb[44].mxu1 }
 0xd6a   :  { %v1130_v3 = vadd.f32 %v6086_v6, %v1129_v0  ;;  %v1286_v5 = vadd.f32 %v5971_v12, %v1285_v1  ;;  %v5236_v7 = vpop.f32.mrb[33].mxu0  ;;  %v5254_v8 = vpop.f32.mrb[45].mxu1 }
 0xd6b   :  { %v1132_v9 = vpop.f32.mrb[34].mxu0  ;;  %v1288_v11 = vpop.f32.mrb[46].mxu1 }
 0xd6c   :  { %v1222_v60 = vadd.f32 %v1177_v2, %v1130_v3  ;;  %v1331_v15 = vadd.f32 %v1286_v5, %v6013_v28  ;;  %v5237_v53 = vpop.f32.mrb[35].mxu0  ;;  %v5255_v17 = vpop.f32.mrb[47].mxu1 }
 0xd6e   :  { %v1223_v19 = vmul.f32 0.5, %v1222_v60  ;;  %v1332_v21 = vmul.f32 0.5, %v1331_v15 }
 0xd70   :  { %5754 = vtanh.f32 %v1223_v19 }
 0xd71   :  { %5756 = vtanh.f32 %v1332_v21  ;;  %v1216_v22 = vpop.f32.mrb[36].mxu0 }
 0xd72   :  { %v5248_v24 = vpop.f32.mrb[37].mxu0  ;;  %v1217_v41 = vadd.f32 %v1216_v22, %v6092_v36 }
 0xd73   :  { %v1219_v25 = vpop.f32.mrb[38].mxu0 }
 0xd74   :  { %v5249_v27 = vpop.f32.mrb[39].mxu0 }
 0xd79   :  { %v1325_v29 = vpop.f32.mrb[40].mxu0 }
 0xd7a   :  { %v5755_v30 = vpop.eup %5754  ;;  %v5260_v31 = vpop.f32.mrb[41].mxu0  ;;  %v1326_v43 = vadd.f32 %v1325_v29, %v6019_v39 }
 0xd7b   :  { %v5757_v34 = vpop.eup %5756  ;;  %v1225_v14 = vadd.f32 1.0, %v5755_v30  ;;  %v1328_v37 = vpop.f32.mrb[42].mxu0 }
 0xd7c   :  { %v1334_v38 = vadd.f32 1.0, %v5757_v34  ;;  %v5261_v40 = vpop.f32.mrb[43].mxu0 }
 0xd7d   :  { %v1226_v42 = vmul.f32 0.5, %v1225_v14 }
 0xd7e   :  { %v1335_v44 = vmul.f32 0.5, %v1334_v38 }
 0xd7f   :  { %v1227_v45 = vmul.f32 %v1226_v42, %v1217_v41 }
 0xd80   :  { %v1336_v46 = vmul.f32 %v1335_v44, %v1326_v43 }
 0xd81   :  { %1229 = vrot.lane.b32.xlu0 %v1227_v45, %s5891_s19 }
 0xd82   :  { %1338 = vrot.lane.b32.xlu1 %v1336_v46, %s5891_s19 }
 0xdf3   :  { %v1230_v47 = vpop.permute.xlu0 %1229 }
 0xdf4   :  { %v1232_v48 = vadd.f32 %v1230_v47, %v1130_v3  ;;  %v1339_v33 = vpop.permute.xlu1 %1338 }
 0xdf5   :  { %v1341_v50 = vadd.f32 %v1339_v33, %v6013_v28 }
 0xdf6   :  { %5758 = vtanh.f32 %v1232_v48 }
 0xdf7   :  { %5760 = vtanh.f32 %v1341_v50 }
 0xe00   :  { %v5759_v35 = vpop.eup %5758 }
 0xe01   :  { %v5761_v52 = vpop.eup %5760  ;;  %v1234_v54 = vsub.f32 %v6206_v49, %v5759_v35 }
 0xe02   :  { %v1344_v56 = vrot.slane %v5761_v52, 2 }
 0xe03   :  { %1236 = vrot.lane.b32.xlu0 %v1234_v54, %s5893_s28 }
 0xe04   :  { %v1346_v57 = vsub.f32 %v6211_v51, %v1344_v56 }
 0xe06   :  { %v1348_v58 = vrot.slane %v1346_v57, 6 }
 0xe08   :  { %1349 = vrot.lane.b32.xlu1 %v1348_v58, %s5893_s28 }
 0xe75   :  { %v1237_v59 = vpop.permute.xlu0 %1236 }
 0xe76   :  { %v1239_v61 = vmul.f32 %v1237_v59, %v1226_v42 }
 0xe78   :  { %1241 = vrot.lane.b32.xlu0 %v1239_v61, %s5892_s20 }
 0xe7a   :  { %v1350_v63 = vpop.permute.xlu1 %1349 }
 0xe7b   :  { %v1352_v0 = vmul.f32 %v1350_v63, %v1335_v44 }
 0xe7d   :  { %1354 = vrot.lane.b32.xlu1 %v1352_v0, %s5892_s20 }
 0xeea   :  { %v1242_v1 = vpop.permute.xlu0 %1241 }
 0xeeb   :  { %v6256_v2 = vadd.f32 %v5759_v35, %v1242_v1 }
 0xeed   :  { %v1405_v3 = vpack.c.bf16 %v6256_v2, %v6256_v2 }
 0xeef   :  { %v1355_v5 = vpop.permute.xlu1 %1354  ;;  %1407 = vrot.lane.b32.xlu0 %v1405_v3, %s5890_s11 }
 0xef0   :  { %v6261_v51 = vadd.f32 %v5761_v52, %v1355_v5 }
 0xef2   :  { %v1358_v7 = vpack.c.bf16 %v6261_v51, %v6261_v51 }
 0xef4   :  { %1360 = vrot.lane.b32.xlu1 %v1358_v7, %s5890_s11 }
 0xf61   :  { %v1408_v8 = vpop.permute.xlu0 %1407 }
 0xf62   :  { %5271 = vmatmul.mubr.msk.bf16.vlgmr.msra.gmra.mrb[44].mxu0 %vm111_vm3, %v1408_v8 }
 0xf63   :  { %5281 = vmatpush3.bf16.msra.mxu0 %v5974_v13  ;;  %5282 = vmatprep.mubr.msk.bf16.mxu0 %vm5889_vm1, %v5888_v10 }
 0xf64   :  { %5292 = vmatprep.subr.bf16.mxu0 %v5888_v10 }
 0xf66   :  { %v1361_v9 = vpop.permute.xlu1 %1360 }
 0xf67   :  { %5265 = vmatmul.mubr.msk.bf16.vlgmr.msra.gmra.mrb[48].mxu1 %vm111_vm3, %v1361_v9 }
 0xf68   :  { %5275 = vmatpush3.bf16.msra.mxu1 %v6061_v4  ;;  %5276 = vmatprep.mubr.msk.bf16.mxu1 %vm5889_vm1, %v5888_v10 }
 0xf69   :  { %5286 = vmatprep.subr.bf16.mxu1 %v5888_v10 }
 0xf6a   :  { %5283 = vmatmul.mubr.msk.bf16.vlgmr.msra.gmra.mrb[48].mxu0 %vm111_vm3, %v1361_v9 }
 0xf6b   :  { %5293 = vmatpush3.bf16.msra.mxu0 %v5991_v18  ;;  %5294 = vmatprep.mubr.msk.bf16.mxu0 %vm5889_vm1, %v5888_v10 }
 0xf6c   :  { %5304 = vmatprep.subr.bf16.mxu0 %v5888_v10 }
 0xf6f   :  { %5277 = vmatmul.mubr.msk.bf16.vlgmr.msra.gmra.mrb[52].mxu1 %vm111_vm3, %v1408_v8 }
 0xf70   :  { %5287 = vmatpush3.bf16.msra.mxu1 %v5999_v20  ;;  %5288 = vmatprep.mubr.msk.bf16.mxu1 %vm5889_vm1, %v5888_v10 }
 0xf71   :  { %5298 = vmatprep.subr.bf16.mxu1 %v5888_v10 }
 0xf77   :  { %5289 = vmatmul.mubr.msk.bf16.vlgmr.msra.gmra.mrb[56].mxu1 %vm111_vm3, %v1361_v9 }
 0xf78   :  { %5299 = vmatpush3.bf16.msra.mxu1 %v6035_v55  ;;  %5300 = vmatprep.mubr.msk.bf16.mxu1 %vm5889_vm1, %v5888_v10 }
 0xf79   :  { %5310 = vmatprep.subr.bf16.mxu1 %v5888_v10 }
0x1035   :  { %v1446_v11 = vpop.f32.mrb[44].mxu0 }
0x1036   :  { %v5272_v60 = vpop.f32.mrb[45].mxu0  ;;  %v1447_v19 = vadd.f32 %v6056_v62, %v1446_v11 }
0x1037   :  { %v1449_v15 = vpop.f32.mrb[46].mxu0 }
0x1038   :  { %v5273_v53 = vpop.f32.mrb[47].mxu0 }
0x103a   :  { %v1399_v17 = vpop.f32.mrb[48].mxu1 }
0x103b   :  { %v1400_v21 = vadd.f32 %v6086_v6, %v1399_v17  ;;  %v5266_v22 = vpop.f32.mrb[49].mxu1 }
0x103c   :  { %v1402_v24 = vpop.f32.mrb[50].mxu1 }
0x103d   :  { %v1492_v25 = vadd.f32 %v1447_v19, %v1400_v21  ;;  %v5267_v27 = vpop.f32.mrb[51].mxu1  ;;  %v1555_v29 = vpop.f32.mrb[48].mxu0 }
0x103e   :  { %v1556_v30 = vadd.f32 %v5971_v12, %v1555_v29  ;;  %v5284_v31 = vpop.f32.mrb[49].mxu0 }
0x103f   :  { %v1493_v34 = vmul.f32 0.5, %v1492_v25  ;;  %v1558_v14 = vpop.f32.mrb[50].mxu0 }
0x1040   :  { %v1602_v37 = vrot.slane %v1556_v30, 6  ;;  %v5285_v38 = vpop.f32.mrb[51].mxu0 }
0x1041   :  { %5762 = vtanh.f32 %v1493_v34 }
0x1042   :  { %v1604_v40 = vadd.f32 %v1602_v37, %v6013_v28  ;;  %v1486_v41 = vpop.f32.mrb[52].mxu1 }
0x1043   :  { %v5278_v42 = vpop.f32.mrb[53].mxu1  ;;  %v1487_v35 = vadd.f32 %v1486_v41, %v6092_v36 }
0x1044   :  { %v1605_v43 = vmul.f32 0.5, %v1604_v40  ;;  %v1489_v44 = vpop.f32.mrb[54].mxu1 }
0x1045   :  { %v5279_v45 = vpop.f32.mrb[55].mxu1 }
0x1046   :  { %5764 = vtanh.f32 %v1605_v43  ;;  %v6346_v45 = vld [vmem:[%s7003_s3 + $0x19] ss:$0 sm:$0xff] }
0x104a   :  { %v1595_v46 = vpop.f32.mrb[56].mxu1 }
0x104b   :  { %v5763_v47 = vpop.eup %5762  ;;  %v5290_v48 = vpop.f32.mrb[57].mxu1  ;;  %v1596_v54 = vadd.f32 %v1595_v46, %v6019_v39 }
0x104c   :  { %v1495_v33 = vadd.f32 1.0, %v5763_v47  ;;  %v1598_v50 = vpop.f32.mrb[58].mxu1 }
0x104d   :  { %v5291_v12 = vpop.f32.mrb[59].mxu1  ;;  %v1610_v61 = vrot.slane %v1596_v54, 6 }
0x104e   :  { %v1496_v52 = vmul.f32 0.5, %v1495_v33 }
0x1050   :  { %v5765_v56 = vpop.eup %5764  ;;  %v1497_v57 = vmul.f32 %v1496_v52, %v1487_v35 }
0x1051   :  { %v1607_v58 = vadd.f32 1.0, %v5765_v56 }
0x1052   :  { %1499 = vrot.lane.b32.xlu0 %v1497_v57, %s5891_s19 }
0x1053   :  { %v1608_v59 = vmul.f32 0.5, %v1607_v58 }
0x1055   :  { %v1612_v63 = vmul.f32 %v1610_v61, %v1608_v59 }
0x1057   :  { %1614 = vrot.lane.b32.xlu1 %v1612_v63, %s5891_s19 }
0x10c4   :  { %v1500_v0 = vpop.permute.xlu0 %1499 }
0x10c5   :  { %v1502_v1 = vadd.f32 %v1500_v0, %v1400_v21 }
0x10c7   :  { %5766 = vtanh.f32 %v1502_v1 }
0x10c9   :  { %v1615_v3 = vpop.permute.xlu1 %1614 }
0x10ca   :  { %v1617_v5 = vadd.f32 %v1615_v3, %v6013_v28 }
0x10cc   :  { %5768 = vtanh.f32 %v1617_v5 }
0x10d1   :  { %v5767_v7 = vpop.eup %5766 }
0x10d2   :  { %v1504_v8 = vsub.f32 %v6256_v2, %v5767_v7 }
0x10d4   :  { %1506 = vrot.lane.b32.xlu0 %v1504_v8, %s5893_s28 }
0x10d6   :  { %v5769_v9 = vpop.eup %5768 }
0x10d7   :  { %v1620_v11 = vrot.slane %v5769_v9, 2 }
0x10d9   :  { %v1622_v60 = vsub.f32 %v6261_v51, %v1620_v11 }
0x10db   :  { %v1624_v15 = vrot.slane %v1622_v60, 6 }
0x10dd   :  { %1625 = vrot.lane.b32.xlu1 %v1624_v15, %s5893_s28 }
0x1146   :  { %v1507_v53 = vpop.permute.xlu0 %1506 }
0x1147   :  { %v1509_v17 = vmul.f32 %v1507_v53, %v1496_v52 }
0x1149   :  { %1511 = vrot.lane.b32.xlu0 %v1509_v17, %s5892_s20 }
0x114f   :  { %v1626_v19 = vpop.permute.xlu1 %1625 }
0x1150   :  { %v1628_v21 = vmul.f32 %v1626_v19, %v1608_v59 }
0x1152   :  { %1630 = vrot.lane.b32.xlu1 %v1628_v21, %s5892_s20 }
0x11bb   :  { %v1512_v22 = vpop.permute.xlu0 %1511 }
0x11bc   :  { %v6306_v24 = vadd.f32 %v5767_v7, %v1512_v22 }
0x11be   :  { %v1682_v25 = vpack.c.bf16 %v6306_v24, %v6306_v24 }
0x11c0   :  { %1684 = vrot.lane.b32.xlu0 %v1682_v25, %s5890_s11 }
0x11c4   :  { %v1631_v51 = vpop.permute.xlu1 %1630 }
0x11c5   :  { %v6311_v27 = vadd.f32 %v5769_v9, %v1631_v51 }
0x11c7   :  { %v1634_v29 = vpack.c.bf16 %v6311_v27, %v6311_v27 }
0x11c9   :  { %v1636_v30 = vrot.slane %v1634_v29, 1 }
0x11cb   :  { %1637 = vrot.lane.b32.xlu1 %v1636_v30, %s5890_s11 }
0x1232   :  { %v1685_v31 = vpop.permute.xlu0 %1684 }
0x1233   :  { %5301 = vmatmul.mubr.msk.bf16.vlgmr.msra.gmra.mrb[60].mxu1 %vm111_vm3, %v1685_v31 }
0x1234   :  { %5311 = vmatpush3.bf16.msra.mxu1 %v5974_v13  ;;  %5312 = vmatprep.mubr.msk.bf16.mxu1 %vm5889_vm1, %v5888_v10 }
0x1235   :  { %5322 = vmatprep.subr.bf16.mxu1 %v5888_v10 }
0x123d   :  { %v1638_v34 = vpop.permute.xlu1 %1637 }
0x123e   :  { %5295 = vmatmul.mubr.msk.bf16.vlgmr.msra.gmra.mrb[52].mxu0 %vm111_vm3, %v1638_v34  ;;  %5313 = vmatmul.mubr.msk.bf16.vlgmr.msra.gmra.mrb[64].mxu1 %vm111_vm3, %v1638_v34 }
0x123f   :  { %5305 = vmatpush3.bf16.msra.mxu0 %v6061_v4  ;;  %5306 = vmatprep.mubr.msk.bf16.mxu0 %vm5889_vm1, %v5888_v10 }
0x1240   :  { %5316 = vmatprep.subr.bf16.mxu0 %v5888_v10  ;;  %5323 = vmatpush3.bf16.msra.mxu1 %v5991_v18 }
0x1241   :  { %5324 = vmatprep.mubr.msk.bf16.mxu1 %vm5889_vm1, %v5888_v10  ;;  %5334 = vmatprep.subr.bf16.mxu1 %v5888_v10 }
0x1246   :  { %5307 = vmatmul.mubr.msk.bf16.vlgmr.msra.gmra.mrb[56].mxu0 %vm111_vm3, %v1685_v31 }
0x1247   :  { %5317 = vmatpush3.bf16.msra.mxu0 %v5999_v20  ;;  %5318 = vmatprep.mubr.msk.bf16.mxu0 %vm5889_vm1, %v5888_v10 }
0x1248   :  { %5328 = vmatprep.subr.bf16.mxu0 %v5888_v10 }
0x124e   :  { %5319 = vmatmul.mubr.msk.bf16.vlgmr.msra.gmra.mrb[60].mxu0 %vm111_vm3, %v1638_v34 }
0x124f   :  { %5329 = vmatpush3.bf16.msra.mxu0 %v6035_v55  ;;  %5330 = vmatprep.mubr.msk.bf16.mxu0 %vm5889_vm1, %v5888_v10 }
0x1250   :  { %5340 = vmatprep.subr.bf16.mxu0 %v5888_v10 }
0x1306   :  { %v1723_v14 = vpop.f32.mrb[60].mxu1 }
0x1307   :  { %v5302_v37 = vpop.f32.mrb[61].mxu1  ;;  %v1724_v43 = vadd.f32 %v6056_v62, %v1723_v14 }
0x1308   :  { %v1726_v38 = vpop.f32.mrb[62].mxu1 }
0x1309   :  { %v5303_v40 = vpop.f32.mrb[63].mxu1 }
0x1311   :  { %v1676_v41 = vpop.f32.mrb[52].mxu0  ;;  %v1832_v42 = vpop.f32.mrb[64].mxu1 }
0x1312   :  { %v1677_v44 = vadd.f32 %v6086_v6, %v1676_v41  ;;  %v1833_v46 = vadd.f32 %v6346_v45, %v1832_v42  ;;  %v5296_v47 = vpop.f32.mrb[53].mxu0  ;;  %v5314_v48 = vpop.f32.mrb[65].mxu1 }
0x1313   :  { %v1679_v33 = vpop.f32.mrb[54].mxu0  ;;  %v1835_v50 = vpop.f32.mrb[66].mxu1 }
0x1314   :  { %v1769_v12 = vadd.f32 %v1724_v43, %v1677_v44  ;;  %v1879_v35 = vrot.slane %v1833_v46, 4  ;;  %v5297_v52 = vpop.f32.mrb[55].mxu0  ;;  %v5315_v54 = vpop.f32.mrb[67].mxu1 }
0x1316   :  { %v1770_v56 = vmul.f32 0.5, %v1769_v12  ;;  %v1881_v62 = vadd.f32 %v1879_v35, %v6013_v28 }
0x1318   :  { %5770 = vtanh.f32 %v1770_v56  ;;  %v1882_v6 = vmul.f32 0.5, %v1881_v62 }
0x1319   :  { %v1763_v57 = vpop.f32.mrb[56].mxu0 }
0x131a   :  { %5772 = vtanh.f32 %v1882_v6  ;;  %v5308_v58 = vpop.f32.mrb[57].mxu0  ;;  %v1764_v11 = vadd.f32 %v1763_v57, %v6092_v36 }
0x131b   :  { %v1766_v59 = vpop.f32.mrb[58].mxu0  ;;  %v6399_v58 = vld [vmem:[%s7003_s3 + $0x2b] ss:$0 sm:$0xff] }
0x131c   :  { %v5309_v61 = vpop.f32.mrb[59].mxu0 }
0x131d   :  { %v6405_v61 = vld [vmem:[%s7003_s3 + $0x2a] ss:$0 sm:$0xff] }
0x1321   :  { %v1872_v63 = vpop.f32.mrb[60].mxu0 }
0x1322   :  { %v5771_v0 = vpop.eup %5770  ;;  %v5320_v1 = vpop.f32.mrb[61].mxu0  ;;  %v1873_v5 = vadd.f32 %v1872_v63, %v6019_v39 }
0x1323   :  { %v1772_v3 = vadd.f32 1.0, %v5771_v0  ;;  %v1875_v7 = vpop.f32.mrb[62].mxu0 }
0x1324   :  { %v5773_v8 = vpop.eup %5772  ;;  %v5321_v9 = vpop.f32.mrb[63].mxu0  ;;  %v1887_v19 = vrot.slane %v1873_v5, 4 }
0x1325   :  { %v1773_v60 = vmul.f32 0.5, %v1772_v3  ;;  %v1884_v15 = vadd.f32 1.0, %v5773_v8 }
0x1327   :  { %v1774_v53 = vmul.f32 %v1773_v60, %v1764_v11  ;;  %v1885_v17 = vmul.f32 0.5, %v1884_v15 }
0x1329   :  { %v1889_v21 = vmul.f32 %v1887_v19, %v1885_v17  ;;  %1776 = vrot.lane.b32.xlu0 %v1774_v53, %s5891_s19 }
0x132b   :  { %1891 = vrot.lane.b32.xlu1 %v1889_v21, %s5891_s19 }
0x139b   :  { %v1777_v22 = vpop.permute.xlu0 %1776 }
0x139c   :  { %v1779_v25 = vadd.f32 %v1777_v22, %v1677_v44 }
0x139d   :  { %v1892_v51 = vpop.permute.xlu1 %1891 }
0x139e   :  { %5774 = vtanh.f32 %v1779_v25  ;;  %v1894_v29 = vadd.f32 %v1892_v51, %v6013_v28 }
0x13a0   :  { %5776 = vtanh.f32 %v1894_v29 }
0x13a8   :  { %v5775_v30 = vpop.eup %5774 }
0x13a9   :  { %v1781_v31 = vsub.f32 %v6306_v24, %v5775_v30 }
0x13aa   :  { %v5777_v34 = vpop.eup %5776 }
0x13ab   :  { %1783 = vrot.lane.b32.xlu0 %v1781_v31, %s5893_s28  ;;  %v1897_v14 = vrot.slane %v5777_v34, 2 }
0x13ad   :  { %v1899_v37 = vsub.f32 %v6311_v27, %v1897_v14 }
0x13af   :  { %v1901_v38 = vrot.slane %v1899_v37, 6 }
0x13b1   :  { %1902 = vrot.lane.b32.xlu1 %v1901_v38, %s5893_s28 }
0x141d   :  { %v1784_v40 = vpop.permute.xlu0 %1783 }
0x141e   :  { %v1786_v41 = vmul.f32 %v1784_v40, %v1773_v60 }
0x1420   :  { %1788 = vrot.lane.b32.xlu0 %v1786_v41, %s5892_s20 }
0x1423   :  { %v1903_v42 = vpop.permute.xlu1 %1902 }
0x1424   :  { %v1905_v43 = vmul.f32 %v1903_v42, %v1885_v17 }
0x1426   :  { %1907 = vrot.lane.b32.xlu1 %v1905_v43, %s5892_s20 }
0x1492   :  { %v1789_v44 = vpop.permute.xlu0 %1788 }
0x1493   :  { %v6361_v46 = vadd.f32 %v5775_v30, %v1789_v44 }
0x1495   :  { %v1959_v47 = vpack.c.bf16 %v6361_v46, %v6361_v46 }
0x1497   :  { %1961 = vrot.lane.b32.xlu0 %v1959_v47, %s5890_s11 }
0x1498   :  { %v1908_v27 = vpop.permute.xlu1 %1907 }
0x1499   :  { %v6366_v48 = vadd.f32 %v5777_v34, %v1908_v27 }
0x149b   :  { %v1911_v33 = vpack.c.bf16 %v6366_v48, %v6366_v48 }
0x149d   :  { %v1913_v50 = vrot.slane %v1911_v33, 2 }
0x149f   :  { %1914 = vrot.lane.b32.xlu1 %v1913_v50, %s5890_s11 }
0x1509   :  { %v1962_v12 = vpop.permute.xlu0 %1961 }
0x150a   :  { %5331 = vmatmul.mubr.msk.bf16.vlgmr.msra.gmra.mrb[64].mxu0 %vm111_vm3, %v1962_v12 }
0x150b   :  { %5341 = vmatpush3.bf16.msra.mxu0 %v5974_v13  ;;  %5342 = vmatprep.mubr.msk.bf16.mxu0 %vm5889_vm1, %v5888_v10 }
0x150c   :  { %5352 = vmatprep.subr.bf16.mxu0 %v5888_v10 }
0x1511   :  { %v1915_v35 = vpop.permute.xlu1 %1914 }
0x1512   :  { %5325 = vmatmul.mubr.msk.bf16.vlgmr.msra.gmra.mrb[68].mxu1 %vm111_vm3, %v1915_v35  ;;  %5343 = vmatmul.mubr.msk.bf16.vlgmr.msra.gmra.mrb[68].mxu0 %vm111_vm3, %v1915_v35 }
0x1513   :  { %5335 = vmatpush3.bf16.msra.mxu1 %v6061_v4  ;;  %5336 = vmatprep.mubr.msk.bf16.mxu1 %vm5889_vm1, %v5888_v10 }
0x1514   :  { %5346 = vmatprep.subr.bf16.mxu1 %v5888_v10  ;;  %5353 = vmatpush3.bf16.msra.mxu0 %v5991_v18 }
0x1515   :  { %5354 = vmatprep.mubr.msk.bf16.mxu0 %vm5889_vm1, %v5888_v10  ;;  %5364 = vmatprep.subr.bf16.mxu0 %v5888_v10 }
0x151a   :  { %5337 = vmatmul.mubr.msk.bf16.vlgmr.msra.gmra.mrb[72].mxu1 %vm111_vm3, %v1962_v12 }
0x151b   :  { %5347 = vmatpush3.bf16.msra.mxu1 %v5999_v20  ;;  %5348 = vmatprep.mubr.msk.bf16.mxu1 %vm5889_vm1, %v5888_v10 }
0x151c   :  { %5358 = vmatprep.subr.bf16.mxu1 %v5888_v10 }
0x1522   :  { %5349 = vmatmul.mubr.msk.bf16.vlgmr.msra.gmra.mrb[76].mxu1 %vm111_vm3, %v1915_v35 }
0x1523   :  { %5359 = vmatpush3.bf16.msra.mxu1 %v6035_v55  ;;  %5360 = vmatprep.mubr.msk.bf16.mxu1 %vm5889_vm1, %v5888_v10 }
0x1524   :  { %5370 = vmatprep.subr.bf16.mxu1 %v5888_v10 }
0x15dd   :  { %v2000_v52 = vpop.f32.mrb[64].mxu0 }
0x15de   :  { %v5332_v54 = vpop.f32.mrb[65].mxu0  ;;  %v2001_v59 = vadd.f32 %v6399_v58, %v2000_v52 }
0x15df   :  { %v2003_v56 = vpop.f32.mrb[66].mxu0 }
0x15e0   :  { %v5333_v62 = vpop.f32.mrb[67].mxu0 }
0x15e5   :  { %v1953_v6 = vpop.f32.mrb[68].mxu1  ;;  %v2109_v57 = vpop.f32.mrb[68].mxu0 }
0x15e6   :  { %v1954_v63 = vadd.f32 %v6405_v61, %v1953_v6  ;;  %v2110_v0 = vadd.f32 %v6346_v45, %v2109_v57  ;;  %v5326_v1 = vpop.f32.mrb[69].mxu1  ;;  %v5344_v3 = vpop.f32.mrb[69].mxu0 }
0x15e7   :  { %v1956_v5 = vpop.f32.mrb[70].mxu1  ;;  %v2112_v7 = vpop.f32.mrb[70].mxu0 }
0x15e8   :  { %v2046_v8 = vadd.f32 %v2001_v59, %v1954_v63  ;;  %v2156_v9 = vrot.slane %v2110_v0, 2  ;;  %v5327_v11 = vpop.f32.mrb[71].mxu1  ;;  %v5345_v60 = vpop.f32.mrb[71].mxu0 }
0x15ea   :  { %v2047_v15 = vmul.f32 0.5, %v2046_v8  ;;  %v2158_v53 = vadd.f32 %v2156_v9, %v6013_v28 }
0x15ec   :  { %5778 = vtanh.f32 %v2047_v15  ;;  %v2159_v17 = vmul.f32 0.5, %v2158_v53 }
0x15ed   :  { %v2040_v19 = vpop.f32.mrb[72].mxu1 }
0x15ee   :  { %5780 = vtanh.f32 %v2159_v17  ;;  %v5338_v21 = vpop.f32.mrb[73].mxu1  ;;  %v2041_v40 = vadd.f32 %v2040_v19, %v6092_v36 }
0x15ef   :  { %v2043_v22 = vpop.f32.mrb[74].mxu1 }
0x15f0   :  { %v5339_v25 = vpop.f32.mrb[75].mxu1 }
0x15f5   :  { %v2149_v51 = vpop.f32.mrb[76].mxu1 }
0x15f6   :  { %v5779_v29 = vpop.eup %5778  ;;  %v5350_v30 = vpop.f32.mrb[77].mxu1  ;;  %v2150_v34 = vadd.f32 %v2149_v51, %v6019_v39 }
0x15f7   :  { %v2049_v31 = vadd.f32 1.0, %v5779_v29  ;;  %v2152_v14 = vpop.f32.mrb[78].mxu1 }
0x15f8   :  { %v5781_v37 = vpop.eup %5780  ;;  %v5351_v38 = vpop.f32.mrb[79].mxu1  ;;  %v2164_v47 = vrot.slane %v2150_v34, 2 }
0x15f9   :  { %v2050_v41 = vmul.f32 0.5, %v2049_v31  ;;  %v2161_v42 = vadd.f32 1.0, %v5781_v37 }
0x15fb   :  { %v2051_v43 = vmul.f32 %v2050_v41, %v2041_v40  ;;  %v2162_v44 = vmul.f32 0.5, %v2161_v42 }
0x15fd   :  { %v2166_v27 = vmul.f32 %v2164_v47, %v2162_v44  ;;  %2053 = vrot.lane.b32.xlu1 %v2051_v43, %s5891_s19 }
0x15ff   :  { %2168 = vrot.lane.b32.xlu0 %v2166_v27, %s5891_s19 }
0x166f   :  { %v2054_v33 = vpop.permute.xlu1 %2053 }
0x1670   :  { %v2056_v50 = vadd.f32 %v2054_v33, %v1954_v63 }
0x1671   :  { %v2169_v12 = vpop.permute.xlu0 %2168 }
0x1672   :  { %5782 = vtanh.f32 %v2056_v50  ;;  %v2171_v35 = vadd.f32 %v2169_v12, %v6013_v28 }
0x1674   :  { %5784 = vtanh.f32 %v2171_v35 }
0x167c   :  { %v5783_v52 = vpop.eup %5782 }
0x167d   :  { %v2058_v54 = vsub.f32 %v6361_v46, %v5783_v52 }
0x167e   :  { %v5785_v56 = vpop.eup %5784 }
0x167f   :  { %2060 = vrot.lane.b32.xlu0 %v2058_v54, %s5893_s28  ;;  %v2174_v62 = vrot.slane %v5785_v56, 2 }
0x1681   :  { %v2176_v6 = vsub.f32 %v6366_v48, %v2174_v62 }
0x1683   :  { %v2178_v57 = vrot.slane %v2176_v6, 6 }
0x1685   :  { %2179 = vrot.lane.b32.xlu1 %v2178_v57, %s5893_s28 }
0x16f1   :  { %v2061_v59 = vpop.permute.xlu0 %2060 }
0x16f2   :  { %v2063_v0 = vmul.f32 %v2061_v59, %v2050_v41 }
0x16f4   :  { %2065 = vrot.lane.b32.xlu0 %v2063_v0, %s5892_s20 }
0x16f7   :  { %v2180_v63 = vpop.permute.xlu1 %2179 }
0x16f8   :  { %v2182_v1 = vmul.f32 %v2180_v63, %v2162_v44 }
0x16fa   :  { %2184 = vrot.lane.b32.xlu1 %v2182_v1, %s5892_s20 }
0x1766   :  { %v2066_v28 = vpop.permute.xlu0 %2065 }
0x1767   :  { %v6421_v3 = vadd.f32 %v5783_v52, %v2066_v28 }
0x1769   :  { %v2236_v5 = vpack.c.bf16 %v6421_v3, %v6421_v3 }
0x176b   :  { %2238 = vrot.lane.b32.xlu0 %v2236_v5, %s5890_s11 }
0x176c   :  { %v2185_v48 = vpop.permute.xlu1 %2184 }
0x176d   :  { %v6426_v7 = vadd.f32 %v5785_v56, %v2185_v48 }
0x176f   :  { %v2188_v8 = vpack.c.bf16 %v6426_v7, %v6426_v7 }
0x1771   :  { %v2190_v9 = vrot.slane %v2188_v8, 3 }
0x1773   :  { %2191 = vrot.lane.b32.xlu1 %v2190_v9, %s5890_s11 }
0x17dd   :  { %v2239_v11 = vpop.permute.xlu0 %2238 }
0x17de   :  { %5361 = vmatmul.mubr.msk.bf16.vlgmr.msra.gmra.mrb[80].mxu1 %vm111_vm3, %v2239_v11 }
0x17df   :  { %5371 = vmatpush3.bf16.msra.mxu1 %v5974_v13  ;;  %5372 = vmatprep.mubr.msk.bf16.mxu1 %vm5889_vm1, %v5888_v10 }
0x17e0   :  { %5382 = vmatprep.subr.bf16.mxu1 %v5888_v10 }
0x17e5   :  { %v2192_v60 = vpop.permute.xlu1 %2191 }
0x17e6   :  { %5355 = vmatmul.mubr.msk.bf16.vlgmr.msra.gmra.mrb[72].mxu0 %vm111_vm3, %v2192_v60  ;;  %5373 = vmatmul.mubr.msk.bf16.vlgmr.msra.gmra.mrb[84].mxu1 %vm111_vm3, %v2192_v60 }
0x17e7   :  { %5365 = vmatpush3.bf16.msra.mxu0 %v6061_v4  ;;  %5366 = vmatprep.mubr.msk.bf16.mxu0 %vm5889_vm1, %v5888_v10 }
0x17e8   :  { %5376 = vmatprep.subr.bf16.mxu0 %v5888_v10  ;;  %5383 = vmatpush3.bf16.msra.mxu1 %v5991_v18 }
0x17e9   :  { %5384 = vmatprep.mubr.msk.bf16.mxu1 %vm5889_vm1, %v5888_v10  ;;  %5394 = vmatprep.subr.bf16.mxu1 %v5888_v10 }
0x17ee   :  { %5367 = vmatmul.mubr.msk.bf16.vlgmr.msra.gmra.mrb[76].mxu0 %vm111_vm3, %v2239_v11 }
0x17ef   :  { %5377 = vmatpush3.bf16.msra.mxu0 %v5999_v20  ;;  %5378 = vmatprep.mubr.msk.bf16.mxu0 %vm5889_vm1, %v5888_v10 }
0x17f0   :  { %5388 = vmatprep.subr.bf16.mxu0 %v5888_v10 }
0x17f6   :  { %5379 = vmatmul.mubr.msk.bf16.vlgmr.msra.gmra.mrb[80].mxu0 %vm111_vm3, %v2192_v60 }
0x17f7   :  { %5389 = vmatpush3.bf16.msra.mxu0 %v6035_v55  ;;  %5390 = vmatprep.mubr.msk.bf16.mxu0 %vm5889_vm1, %v5888_v10 }
0x17f8   :  { %5400 = vmatprep.subr.bf16.mxu0 %v5888_v10 }
0x18b1   :  { %v2277_v15 = vpop.f32.mrb[80].mxu1 }
0x18b2   :  { %v5362_v53 = vpop.f32.mrb[81].mxu1  ;;  %v2278_v25 = vadd.f32 %v6399_v58, %v2277_v15 }
0x18b3   :  { %v2280_v17 = vpop.f32.mrb[82].mxu1 }
0x18b4   :  { %v5363_v19 = vpop.f32.mrb[83].mxu1 }
0x18b9   :  { %v2230_v21 = vpop.f32.mrb[72].mxu0  ;;  %v2386_v22 = vpop.f32.mrb[84].mxu1 }
0x18ba   :  { %v2231_v51 = vadd.f32 %v6405_v61, %v2230_v21  ;;  %v2387_v29 = vadd.f32 %v6346_v45, %v2386_v22  ;;  %v5356_v30 = vpop.f32.mrb[73].mxu0  ;;  %v5374_v31 = vpop.f32.mrb[85].mxu1 }
0x18bb   :  { %v2233_v34 = vpop.f32.mrb[74].mxu0  ;;  %v2389_v14 = vpop.f32.mrb[86].mxu1 }
0x18bc   :  { %v2323_v37 = vadd.f32 %v2278_v25, %v2231_v51  ;;  %v2432_v38 = vadd.f32 %v2387_v29, %v6009_v23  ;;  %v5357_v40 = vpop.f32.mrb[75].mxu0  ;;  %v5375_v41 = vpop.f32.mrb[87].mxu1 }
0x18be   :  { %v2324_v42 = vmul.f32 0.5, %v2323_v37  ;;  %v2433_v43 = vmul.f32 0.5, %v2432_v38 }
0x18c0   :  { %5786 = vtanh.f32 %v2324_v42 }
0x18c1   :  { %5788 = vtanh.f32 %v2433_v43  ;;  %v2317_v44 = vpop.f32.mrb[76].mxu0 }
0x18c2   :  { %v5368_v47 = vpop.f32.mrb[77].mxu0  ;;  %v2318_v57 = vadd.f32 %v2317_v44, %v6092_v36 }
0x18c3   :  { %v2320_v27 = vpop.f32.mrb[78].mxu0 }
0x18c4   :  { %v5369_v33 = vpop.f32.mrb[79].mxu0 }
0x18c9   :  { %v2426_v50 = vpop.f32.mrb[80].mxu0 }
0x18ca   :  { %v5787_v12 = vpop.eup %5786  ;;  %v5380_v35 = vpop.f32.mrb[81].mxu0  ;;  %v2427_v0 = vadd.f32 %v2426_v50, %v6019_v39 }
0x18cb   :  { %v5789_v52 = vpop.eup %5788  ;;  %v2326_v54 = vadd.f32 1.0, %v5787_v12  ;;  %v2429_v56 = vpop.f32.mrb[82].mxu0 }
0x18cc   :  { %v2435_v62 = vadd.f32 1.0, %v5789_v52  ;;  %v5381_v6 = vpop.f32.mrb[83].mxu0 }
0x18cd   :  { %v2327_v59 = vmul.f32 0.5, %v2326_v54 }
0x18ce   :  { %v2436_v63 = vmul.f32 0.5, %v2435_v62 }
0x18cf   :  { %v2328_v1 = vmul.f32 %v2327_v59, %v2318_v57 }
0x18d0   :  { %v2437_v28 = vmul.f32 %v2436_v63, %v2427_v0 }
0x18d1   :  { %2330 = vrot.lane.b32.xlu0 %v2328_v1, %s5891_s19 }
0x18d2   :  { %2439 = vrot.lane.b32.xlu1 %v2437_v28, %s5891_s19 }
0x1943   :  { %v2331_v5 = vpop.permute.xlu0 %2330 }
0x1944   :  { %v2333_v48 = vadd.f32 %v2331_v5, %v2231_v51  ;;  %v2440_v8 = vpop.permute.xlu1 %2439 }
0x1945   :  { %v2442_v9 = vadd.f32 %v2440_v8, %v6009_v23 }
0x1946   :  { %5790 = vtanh.f32 %v2333_v48 }
0x1947   :  { %5792 = vtanh.f32 %v2442_v9 }
0x1950   :  { %v5791_v11 = vpop.eup %5790 }
0x1951   :  { %v5793_v60 = vpop.eup %5792  ;;  %v2335_v15 = vsub.f32 %v6421_v3, %v5791_v11 }
0x1952   :  { %v2445_v53 = vrot.slane %v5793_v60, 2 }
0x1953   :  { %2337 = vrot.lane.b32.xlu0 %v2335_v15, %s5893_s28 }
0x1954   :  { %v2447_v17 = vsub.f32 %v6426_v7, %v2445_v53 }
0x1956   :  { %v2449_v19 = vrot.slane %v2447_v17, 6 }
0x1958   :  { %2450 = vrot.lane.b32.xlu1 %v2449_v19, %s5893_s28 }
0x19c5   :  { %v2338_v21 = vpop.permute.xlu0 %2337 }
0x19c6   :  { %v2340_v22 = vmul.f32 %v2338_v21, %v2327_v59 }
0x19c8   :  { %2342 = vrot.lane.b32.xlu0 %v2340_v22, %s5892_s20 }
0x19ca   :  { %v2451_v25 = vpop.permute.xlu1 %2450 }
0x19cb   :  { %v2453_v51 = vmul.f32 %v2451_v25, %v2436_v63 }
0x19cd   :  { %2455 = vrot.lane.b32.xlu1 %v2453_v51, %s5892_s20 }
0x1a3a   :  { %v2343_v29 = vpop.permute.xlu0 %2342 }
0x1a3b   :  { %v6471_v30 = vadd.f32 %v5791_v11, %v2343_v29 }
0x1a3d   :  { %v2506_v31 = vpack.c.bf16 %v6471_v30, %v6471_v30 }
0x1a3f   :  { %v2456_v34 = vpop.permute.xlu1 %2455  ;;  %2508 = vrot.lane.b32.xlu0 %v2506_v31, %s5890_s11 }
0x1a40   :  { %v6476_v7 = vadd.f32 %v5793_v60, %v2456_v34 }
0x1a42   :  { %v2459_v14 = vpack.c.bf16 %v6476_v7, %v6476_v7 }
0x1a44   :  { %2461 = vrot.lane.b32.xlu1 %v2459_v14, %s5890_s11 }
0x1ab1   :  { %v2509_v37 = vpop.permute.xlu0 %2508 }
0x1ab2   :  { %5391 = vmatmul.mubr.msk.bf16.vlgmr.msra.gmra.mrb[84].mxu0 %vm111_vm3, %v2509_v37 }
0x1ab3   :  { %5401 = vmatpush3.bf16.msra.mxu0 %v5974_v13  ;;  %5402 = vmatprep.mubr.msk.bf16.mxu0 %vm5889_vm1, %v5888_v10 }
0x1ab4   :  { %5412 = vmatprep.subr.bf16.mxu0 %v5888_v10 }
0x1ab6   :  { %v2462_v38 = vpop.permute.xlu1 %2461 }
0x1ab7   :  { %5385 = vmatmul.mubr.msk.bf16.vlgmr.msra.gmra.mrb[88].mxu1 %vm111_vm3, %v2462_v38 }
0x1ab8   :  { %5395 = vmatpush3.bf16.msra.mxu1 %v6061_v4  ;;  %5396 = vmatprep.mubr.msk.bf16.mxu1 %vm5889_vm1, %v5888_v10 }
0x1ab9   :  { %5406 = vmatprep.subr.bf16.mxu1 %v5888_v10 }
0x1aba   :  { %5403 = vmatmul.mubr.msk.bf16.vlgmr.msra.gmra.mrb[88].mxu0 %vm111_vm3, %v2462_v38 }
0x1abb   :  { %5413 = vmatpush3.bf16.msra.mxu0 %v5991_v18  ;;  %5414 = vmatprep.mubr.msk.bf16.mxu0 %vm5889_vm1, %v5888_v10 }
0x1abc   :  { %5424 = vmatprep.subr.bf16.mxu0 %v5888_v10 }
0x1abf   :  { %5397 = vmatmul.mubr.msk.bf16.vlgmr.msra.gmra.mrb[92].mxu1 %vm111_vm3, %v2509_v37 }
0x1ac0   :  { %5407 = vmatpush3.bf16.msra.mxu1 %v5999_v20  ;;  %5408 = vmatprep.mubr.msk.bf16.mxu1 %vm5889_vm1, %v5888_v10 }
0x1ac1   :  { %5418 = vmatprep.subr.bf16.mxu1 %v5888_v10 }
0x1ac7   :  { %5409 = vmatmul.mubr.msk.bf16.vlgmr.msra.gmra.mrb[96].mxu1 %vm111_vm3, %v2462_v38 }
0x1ac8   :  { %5419 = vmatpush3.bf16.msra.mxu1 %v6035_v55  ;;  %5420 = vmatprep.mubr.msk.bf16.mxu1 %vm5889_vm1, %v5888_v10 }
0x1ac9   :  { %5430 = vmatprep.subr.bf16.mxu1 %v5888_v10 }
0x1b85   :  { %v2547_v40 = vpop.f32.mrb[84].mxu0 }
0x1b86   :  { %v5392_v41 = vpop.f32.mrb[85].mxu0  ;;  %v2548_v47 = vadd.f32 %v6399_v58, %v2547_v40 }
0x1b87   :  { %v2550_v42 = vpop.f32.mrb[86].mxu0 }
0x1b88   :  { %v5393_v43 = vpop.f32.mrb[87].mxu0 }
0x1b8a   :  { %v2500_v44 = vpop.f32.mrb[88].mxu1 }
0x1b8b   :  { %v2501_v27 = vadd.f32 %v6405_v61, %v2500_v44  ;;  %v5386_v33 = vpop.f32.mrb[89].mxu1 }
0x1b8c   :  { %v2503_v50 = vpop.f32.mrb[90].mxu1 }
0x1b8d   :  { %v2593_v12 = vadd.f32 %v2548_v47, %v2501_v27  ;;  %v5387_v35 = vpop.f32.mrb[91].mxu1  ;;  %v2656_v52 = vpop.f32.mrb[88].mxu0 }
0x1b8e   :  { %v2657_v54 = vadd.f32 %v6346_v45, %v2656_v52  ;;  %v5404_v56 = vpop.f32.mrb[89].mxu0 }
0x1b8f   :  { %v2594_v62 = vmul.f32 0.5, %v2593_v12  ;;  %v2659_v6 = vpop.f32.mrb[90].mxu0 }
0x1b90   :  { %v2703_v57 = vrot.slane %v2657_v54, 6  ;;  %v5405_v59 = vpop.f32.mrb[91].mxu0 }
0x1b91   :  { %5794 = vtanh.f32 %v2594_v62 }
0x1b92   :  { %v2705_v0 = vadd.f32 %v2703_v57, %v6009_v23  ;;  %v2587_v63 = vpop.f32.mrb[92].mxu1 }
0x1b93   :  { %v5398_v1 = vpop.f32.mrb[93].mxu1  ;;  %v2588_v17 = vadd.f32 %v2587_v63, %v6092_v36 }
0x1b94   :  { %v2706_v28 = vmul.f32 0.5, %v2705_v0  ;;  %v2590_v5 = vpop.f32.mrb[94].mxu1 }
0x1b95   :  { %v5399_v48 = vpop.f32.mrb[95].mxu1 }
0x1b96   :  { %5796 = vtanh.f32 %v2706_v28 }
0x1b9a   :  { %v2696_v8 = vpop.f32.mrb[96].mxu1 }
0x1b9b   :  { %v5795_v9 = vpop.eup %5794  ;;  %v5410_v11 = vpop.f32.mrb[97].mxu1  ;;  %v2697_v21 = vadd.f32 %v2696_v8, %v6019_v39 }
0x1b9c   :  { %v2596_v60 = vadd.f32 1.0, %v5795_v9  ;;  %v2699_v15 = vpop.f32.mrb[98].mxu1 }
0x1b9d   :  { %v5411_v53 = vpop.f32.mrb[99].mxu1  ;;  %v2711_v31 = vrot.slane %v2697_v21, 6 }
0x1b9e   :  { %v2597_v19 = vmul.f32 0.5, %v2596_v60 }
0x1ba0   :  { %v5797_v22 = vpop.eup %5796  ;;  %v2598_v25 = vmul.f32 %v2597_v19, %v2588_v17 }
0x1ba1   :  { %v2708_v51 = vadd.f32 1.0, %v5797_v22 }
0x1ba2   :  { %2600 = vrot.lane.b32.xlu0 %v2598_v25, %s5891_s19 }
0x1ba3   :  { %v2709_v29 = vmul.f32 0.5, %v2708_v51 }
0x1ba5   :  { %v2713_v34 = vmul.f32 %v2711_v31, %v2709_v29 }
0x1ba7   :  { %2715 = vrot.lane.b32.xlu1 %v2713_v34, %s5891_s19 }
0x1c14   :  { %v2601_v14 = vpop.permute.xlu0 %2600 }
0x1c15   :  { %v2603_v37 = vadd.f32 %v2601_v14, %v2501_v27 }
0x1c17   :  { %5798 = vtanh.f32 %v2603_v37 }
0x1c19   :  { %v2716_v38 = vpop.permute.xlu1 %2715 }
0x1c1a   :  { %v2718_v40 = vadd.f32 %v2716_v38, %v6009_v23 }
0x1c1c   :  { %5800 = vtanh.f32 %v2718_v40 }
0x1c21   :  { %v5799_v41 = vpop.eup %5798 }
0x1c22   :  { %v2605_v42 = vsub.f32 %v6471_v30, %v5799_v41 }
0x1c24   :  { %2607 = vrot.lane.b32.xlu0 %v2605_v42, %s5893_s28 }
0x1c26   :  { %v5801_v43 = vpop.eup %5800 }
0x1c27   :  { %v2721_v44 = vrot.slane %v5801_v43, 2 }
0x1c29   :  { %v2723_v47 = vsub.f32 %v6476_v7, %v2721_v44 }
0x1c2b   :  { %v2725_v33 = vrot.slane %v2723_v47, 6 }
0x1c2d   :  { %2726 = vrot.lane.b32.xlu1 %v2725_v33, %s5893_s28 }
0x1c96   :  { %v2608_v50 = vpop.permute.xlu0 %2607 }
0x1c97   :  { %v2610_v12 = vmul.f32 %v2608_v50, %v2597_v19 }
0x1c99   :  { %2612 = vrot.lane.b32.xlu0 %v2610_v12, %s5892_s20 }
0x1c9f   :  { %v2727_v27 = vpop.permute.xlu1 %2726 }
0x1ca0   :  { %v2729_v35 = vmul.f32 %v2727_v27, %v2709_v29 }
0x1ca2   :  { %2731 = vrot.lane.b32.xlu1 %v2729_v35, %s5892_s20 }
0x1d0b   :  { %v2613_v52 = vpop.permute.xlu0 %2612 }
0x1d0c   :  { %v6521_v54 = vadd.f32 %v5799_v41, %v2613_v52 }
0x1d0e   :  { %v2783_v56 = vpack.c.bf16 %v6521_v54, %v6521_v54 }
0x1d10   :  { %2785 = vrot.lane.b32.xlu0 %v2783_v56, %s5890_s11 }
0x1d14   :  { %v2732_v7 = vpop.permute.xlu1 %2731 }
0x1d15   :  { %v6526_v62 = vadd.f32 %v5801_v43, %v2732_v7 }
0x1d17   :  { %v2735_v6 = vpack.c.bf16 %v6526_v62, %v6526_v62 }
0x1d19   :  { %v2737_v57 = vrot.slane %v2735_v6, 1 }
0x1d1b   :  { %2738 = vrot.lane.b32.xlu1 %v2737_v57, %s5890_s11 }
0x1d82   :  { %v2786_v59 = vpop.permute.xlu0 %2785 }
0x1d83   :  { %5421 = vmatmul.mubr.msk.bf16.vlgmr.msra.gmra.mrb[100].mxu1 %vm111_vm3, %v2786_v59 }
0x1d84   :  { %5431 = vmatpush3.bf16.msra.mxu1 %v5974_v13  ;;  %5432 = vmatprep.mubr.msk.bf16.mxu1 %vm5889_vm1, %v5888_v10 }
0x1d85   :  { %5442 = vmatprep.subr.bf16.mxu1 %v5888_v10 }
0x1d8d   :  { %v2739_v0 = vpop.permute.xlu1 %2738 }
0x1d8e   :  { %5415 = vmatmul.mubr.msk.bf16.vlgmr.msra.gmra.mrb[92].mxu0 %vm111_vm3, %v2739_v0  ;;  %5433 = vmatmul.mubr.msk.bf16.vlgmr.msra.gmra.mrb[104].mxu1 %vm111_vm3, %v2739_v0 }
0x1d8f   :  { %5425 = vmatpush3.bf16.msra.mxu0 %v6061_v4  ;;  %5426 = vmatprep.mubr.msk.bf16.mxu0 %vm5889_vm1, %v5888_v10 }
0x1d90   :  { %5436 = vmatprep.subr.bf16.mxu0 %v5888_v10  ;;  %5443 = vmatpush3.bf16.msra.mxu1 %v5991_v18 }
0x1d91   :  { %5444 = vmatprep.mubr.msk.bf16.mxu1 %vm5889_vm1, %v5888_v10  ;;  %5454 = vmatprep.subr.bf16.mxu1 %v5888_v10 }
0x1d96   :  { %5427 = vmatmul.mubr.msk.bf16.vlgmr.msra.gmra.mrb[96].mxu0 %vm111_vm3, %v2786_v59 }
0x1d97   :  { %5437 = vmatpush3.bf16.msra.mxu0 %v5999_v20  ;;  %5438 = vmatprep.mubr.msk.bf16.mxu0 %vm5889_vm1, %v5888_v10 }
0x1d98   :  { %5448 = vmatprep.subr.bf16.mxu0 %v5888_v10 }
0x1d9e   :  { %5439 = vmatmul.mubr.msk.bf16.vlgmr.msra.gmra.mrb[100].mxu0 %vm111_vm3, %v2739_v0 }
0x1d9f   :  { %5449 = vmatpush3.bf16.msra.mxu0 %v6035_v55  ;;  %5450 = vmatprep.mubr.msk.bf16.mxu0 %vm5889_vm1, %v5888_v10 }
0x1da0   :  { %5460 = vmatprep.subr.bf16.mxu0 %v5888_v10 }
0x1e56   :  { %v2824_v63 = vpop.f32.mrb[100].mxu1 }
0x1e57   :  { %v5422_v1 = vpop.f32.mrb[101].mxu1  ;;  %v2825_v9 = vadd.f32 %v6399_v58, %v2824_v63 }
0x1e58   :  { %v2827_v28 = vpop.f32.mrb[102].mxu1 }
0x1e59   :  { %v5423_v5 = vpop.f32.mrb[103].mxu1 }
0x1e61   :  { %v2777_v48 = vpop.f32.mrb[92].mxu0  ;;  %v2933_v8 = vpop.f32.mrb[104].mxu1 }
0x1e62   :  { %v2778_v11 = vadd.f32 %v6405_v61, %v2777_v48  ;;  %v2934_v60 = vadd.f32 %v6346_v45, %v2933_v8  ;;  %v5416_v15 = vpop.f32.mrb[93].mxu0  ;;  %v5434_v53 = vpop.f32.mrb[105].mxu1 }
0x1e63   :  { %v2780_v17 = vpop.f32.mrb[94].mxu0  ;;  %v2936_v19 = vpop.f32.mrb[106].mxu1 }
0x1e64   :  { %v2870_v21 = vadd.f32 %v2825_v9, %v2778_v11  ;;  %v2980_v22 = vrot.slane %v2934_v60, 4  ;;  %v5417_v25 = vpop.f32.mrb[95].mxu0  ;;  %v5435_v51 = vpop.f32.mrb[107].mxu1 }
0x1e66   :  { %v2871_v29 = vmul.f32 0.5, %v2870_v21  ;;  %v2982_v31 = vadd.f32 %v2980_v22, %v6009_v23 }
0x1e68   :  { %5802 = vtanh.f32 %v2871_v29  ;;  %v2983_v34 = vmul.f32 0.5, %v2982_v31 }
0x1e69   :  { %v2864_v14 = vpop.f32.mrb[96].mxu0 }
0x1e6a   :  { %5804 = vtanh.f32 %v2983_v34  ;;  %v5428_v37 = vpop.f32.mrb[97].mxu0  ;;  %v2865_v27 = vadd.f32 %v2864_v14, %v6092_v36 }
0x1e6b   :  { %v2867_v38 = vpop.f32.mrb[98].mxu0 }
0x1e6c   :  { %v5429_v40 = vpop.f32.mrb[99].mxu0 }
0x1e71   :  { %v2973_v41 = vpop.f32.mrb[100].mxu0 }
0x1e72   :  { %v5803_v42 = vpop.eup %5802  ;;  %v5440_v43 = vpop.f32.mrb[101].mxu0  ;;  %v2974_v47 = vadd.f32 %v2973_v41, %v6019_v39 }
0x1e73   :  { %v2873_v44 = vadd.f32 1.0, %v5803_v42  ;;  %v2976_v33 = vpop.f32.mrb[102].mxu0 }
0x1e74   :  { %v5805_v50 = vpop.eup %5804  ;;  %v5441_v12 = vpop.f32.mrb[103].mxu0  ;;  %v2988_v6 = vrot.slane %v2974_v47, 4 }
0x1e75   :  { %v2874_v35 = vmul.f32 0.5, %v2873_v44  ;;  %v2985_v52 = vadd.f32 1.0, %v5805_v50 }
0x1e77   :  { %v2875_v56 = vmul.f32 %v2874_v35, %v2865_v27  ;;  %v2986_v7 = vmul.f32 0.5, %v2985_v52 }
0x1e79   :  { %v2990_v57 = vmul.f32 %v2988_v6, %v2986_v7  ;;  %2877 = vrot.lane.b32.xlu0 %v2875_v56, %s5891_s19 }
0x1e7b   :  { %2992 = vrot.lane.b32.xlu1 %v2990_v57, %s5891_s19 }
0x1eeb   :  { %v2878_v59 = vpop.permute.xlu0 %2877 }
0x1eec   :  { %v2880_v0 = vadd.f32 %v2878_v59, %v2778_v11 }
0x1eed   :  { %v2993_v63 = vpop.permute.xlu1 %2992 }
0x1eee   :  { %5806 = vtanh.f32 %v2880_v0  ;;  %v2995_v1 = vadd.f32 %v2993_v63, %v6009_v23 }
0x1ef0   :  { %5808 = vtanh.f32 %v2995_v1 }
0x1ef8   :  { %v5807_v28 = vpop.eup %5806 }
0x1ef9   :  { %v2882_v5 = vsub.f32 %v6521_v54, %v5807_v28 }
0x1efa   :  { %v5809_v48 = vpop.eup %5808 }
0x1efb   :  { %2884 = vrot.lane.b32.xlu0 %v2882_v5, %s5893_s28  ;;  %v2998_v8 = vrot.slane %v5809_v48, 2 }
0x1efd   :  { %v3000_v9 = vsub.f32 %v6526_v62, %v2998_v8 }
0x1eff   :  { %v3002_v60 = vrot.slane %v3000_v9, 6 }
0x1f01   :  { %3003 = vrot.lane.b32.xlu1 %v3002_v60, %s5893_s28 }
0x1f6d   :  { %v2885_v15 = vpop.permute.xlu0 %2884 }
0x1f6e   :  { %v2887_v53 = vmul.f32 %v2885_v15, %v2874_v35 }
0x1f70   :  { %2889 = vrot.lane.b32.xlu0 %v2887_v53, %s5892_s20 }
0x1f73   :  { %v3004_v11 = vpop.permute.xlu1 %3003 }
0x1f74   :  { %v3006_v17 = vmul.f32 %v3004_v11, %v2986_v7 }
0x1f76   :  { %3008 = vrot.lane.b32.xlu1 %v3006_v17, %s5892_s20 }
0x1fe2   :  { %v2890_v19 = vpop.permute.xlu0 %2889 }
0x1fe3   :  { %v6571_v21 = vadd.f32 %v5807_v28, %v2890_v19 }
0x1fe5   :  { %v3060_v22 = vpack.c.bf16 %v6571_v21, %v6571_v21 }
0x1fe7   :  { %3062 = vrot.lane.b32.xlu0 %v3060_v22, %s5890_s11 }
0x1fe8   :  { %v3009_v62 = vpop.permute.xlu1 %3008 }
0x1fe9   :  { %v6576_v25 = vadd.f32 %v5809_v48, %v3009_v62 }
0x1feb   :  { %v3012_v51 = vpack.c.bf16 %v6576_v25, %v6576_v25 }
0x1fed   :  { %v3014_v29 = vrot.slane %v3012_v51, 2 }
0x1fef   :  { %3015 = vrot.lane.b32.xlu1 %v3014_v29, %s5890_s11 }
0x2059   :  { %v3063_v31 = vpop.permute.xlu0 %3062 }
0x205a   :  { %5451 = vmatmul.mubr.msk.bf16.vlgmr.msra.gmra.mrb[104].mxu0 %vm111_vm3, %v3063_v31 }
0x205b   :  { %5461 = vmatpush3.bf16.msra.mxu0 %v5974_v13  ;;  %5462 = vmatprep.mubr.msk.bf16.mxu0 %vm5889_vm1, %v5888_v10 }
0x205c   :  { %5472 = vmatprep.subr.bf16.mxu0 %v5888_v10 }
0x2061   :  { %v3016_v34 = vpop.permute.xlu1 %3015 }
0x2062   :  { %5445 = vmatmul.mubr.msk.bf16.vlgmr.msra.gmra.mrb[108].mxu1 %vm111_vm3, %v3016_v34  ;;  %5463 = vmatmul.mubr.msk.bf16.vlgmr.msra.gmra.mrb[108].mxu0 %vm111_vm3, %v3016_v34 }
0x2063   :  { %5455 = vmatpush3.bf16.msra.mxu1 %v6061_v4  ;;  %5456 = vmatprep.mubr.msk.bf16.mxu1 %vm5889_vm1, %v5888_v10 }
0x2064   :  { %5466 = vmatprep.subr.bf16.mxu1 %v5888_v10  ;;  %5473 = vmatpush3.bf16.msra.mxu0 %v5991_v18 }
0x2065   :  { %5474 = vmatprep.mubr.msk.bf16.mxu0 %vm5889_vm1, %v5888_v10  ;;  %5484 = vmatprep.subr.bf16.mxu0 %v5888_v10 }
0x206a   :  { %5457 = vmatmul.mubr.msk.bf16.vlgmr.msra.gmra.mrb[112].mxu1 %vm111_vm3, %v3063_v31 }
0x206b   :  { %5467 = vmatpush3.bf16.msra.mxu1 %v5999_v20  ;;  %5468 = vmatprep.mubr.msk.bf16.mxu1 %vm5889_vm1, %v5888_v10 }
0x206c   :  { %5478 = vmatprep.subr.bf16.mxu1 %v5888_v10 }
0x2072   :  { %5469 = vmatmul.mubr.msk.bf16.vlgmr.msra.gmra.mrb[116].mxu1 %vm111_vm3, %v3016_v34 }
0x2073   :  { %5479 = vmatpush3.bf16.msra.mxu1 %v6035_v55  ;;  %5480 = vmatprep.mubr.msk.bf16.mxu1 %vm5889_vm1, %v5888_v10 }
0x2074   :  { %5490 = vmatprep.subr.bf16.mxu1 %v5888_v10 }
0x212d   :  { %v3101_v14 = vpop.f32.mrb[104].mxu0 }
0x212e   :  { %v5452_v37 = vpop.f32.mrb[105].mxu0  ;;  %v3102_v43 = vadd.f32 %v6399_v58, %v3101_v14 }
0x212f   :  { %v3104_v38 = vpop.f32.mrb[106].mxu0 }
0x2130   :  { %v5453_v40 = vpop.f32.mrb[107].mxu0 }
0x2135   :  { %v3054_v41 = vpop.f32.mrb[108].mxu1  ;;  %v3210_v42 = vpop.f32.mrb[108].mxu0 }
0x2136   :  { %v3055_v44 = vadd.f32 %v6405_v61, %v3054_v41  ;;  %v3211_v47 = vadd.f32 %v6346_v45, %v3210_v42  ;;  %v5446_v33 = vpop.f32.mrb[109].mxu1  ;;  %v5464_v50 = vpop.f32.mrb[109].mxu0 }
0x2137   :  { %v3057_v12 = vpop.f32.mrb[110].mxu1  ;;  %v3213_v27 = vpop.f32.mrb[110].mxu0 }
0x2138   :  { %v3147_v35 = vadd.f32 %v3102_v43, %v3055_v44  ;;  %v3257_v52 = vrot.slane %v3211_v47, 2  ;;  %v5447_v56 = vpop.f32.mrb[111].mxu1  ;;  %v5465_v7 = vpop.f32.mrb[111].mxu0 }
0x213a   :  { %v3148_v6 = vmul.f32 0.5, %v3147_v35  ;;  %v3259_v57 = vadd.f32 %v3257_v52, %v6009_v23 }
0x213c   :  { %5810 = vtanh.f32 %v3148_v6  ;;  %v3260_v59 = vmul.f32 0.5, %v3259_v57 }
0x213d   :  { %v3141_v0 = vpop.f32.mrb[112].mxu1 }
0x213e   :  { %5812 = vtanh.f32 %v3260_v59  ;;  %v5458_v63 = vpop.f32.mrb[113].mxu1  ;;  %v3142_v11 = vadd.f32 %v3141_v0, %v6092_v36 }
0x213f   :  { %v3144_v1 = vpop.f32.mrb[114].mxu1 }
0x2140   :  { %v5459_v28 = vpop.f32.mrb[115].mxu1 }
0x2145   :  { %v3250_v5 = vpop.f32.mrb[116].mxu1 }
0x2146   :  { %v5811_v45 = vpop.eup %5810  ;;  %v5470_v48 = vpop.f32.mrb[117].mxu1  ;;  %v3251_v9 = vadd.f32 %v3250_v5, %v6019_v39 }
0x2147   :  { %v3150_v8 = vadd.f32 1.0, %v5811_v45  ;;  %v3253_v60 = vpop.f32.mrb[118].mxu1 }
0x2148   :  { %v5813_v15 = vpop.eup %5812  ;;  %v5471_v53 = vpop.f32.mrb[119].mxu1  ;;  %v3265_v51 = vrot.slane %v3251_v9, 2 }
0x2149   :  { %v3151_v17 = vmul.f32 0.5, %v3150_v8  ;;  %v3262_v19 = vadd.f32 1.0, %v5813_v15  ;;  %v6661_v8 = vld [vmem:[%s7003_s3 + $0x19] ss:$0 sm:$0xff] }
0x214b   :  { %v3152_v22 = vmul.f32 %v3151_v17, %v3142_v11  ;;  %v3263_v62 = vmul.f32 0.5, %v3262_v19 }
0x214d   :  { %v3267_v29 = vmul.f32 %v3265_v51, %v3263_v62  ;;  %3154 = vrot.lane.b32.xlu1 %v3152_v22, %s5891_s19 }
0x214f   :  { %3269 = vrot.lane.b32.xlu0 %v3267_v29, %s5891_s19 }
0x21bf   :  { %v3155_v31 = vpop.permute.xlu1 %3154 }
0x21c0   :  { %v3157_v34 = vadd.f32 %v3155_v31, %v3055_v44 }
0x21c1   :  { %v3270_v14 = vpop.permute.xlu0 %3269 }
0x21c2   :  { %5814 = vtanh.f32 %v3157_v34  ;;  %v3272_v37 = vadd.f32 %v3270_v14, %v6009_v23 }
0x21c4   :  { %5816 = vtanh.f32 %v3272_v37 }
0x21cc   :  { %v5815_v38 = vpop.eup %5814 }
0x21cd   :  { %v3159_v40 = vsub.f32 %v6571_v21, %v5815_v38 }
0x21ce   :  { %v5817_v41 = vpop.eup %5816 }
0x21cf   :  { %3161 = vrot.lane.b32.xlu0 %v3159_v40, %s5893_s28  ;;  %v3275_v42 = vrot.slane %v5817_v41, 2 }
0x21d1   :  { %v3277_v43 = vsub.f32 %v6576_v25, %v3275_v42 }
0x21d3   :  { %v3279_v47 = vrot.slane %v3277_v43, 6 }
0x21d5   :  { %3280 = vrot.lane.b32.xlu1 %v3279_v47, %s5893_s28 }
0x2241   :  { %v3162_v33 = vpop.permute.xlu0 %3161 }
0x2242   :  { %v3164_v50 = vmul.f32 %v3162_v33, %v3151_v17 }
0x2244   :  { %3166 = vrot.lane.b32.xlu0 %v3164_v50, %s5892_s20 }
0x2247   :  { %v3281_v44 = vpop.permute.xlu1 %3280 }
0x2248   :  { %v3283_v12 = vmul.f32 %v3281_v44, %v3263_v62 }
0x224a   :  { %3285 = vrot.lane.b32.xlu1 %v3283_v12, %s5892_s20 }
0x22b6   :  { %v3167_v23 = vpop.permute.xlu0 %3166 }
0x22b7   :  { %v6621_v27 = vadd.f32 %v5815_v38, %v3167_v23 }
0x22b9   :  { %v3337_v35 = vpack.c.bf16 %v6621_v27, %v6621_v27 }
0x22bb   :  { %3339 = vrot.lane.b32.xlu0 %v3337_v35, %s5890_s11 }
0x22bc   :  { %v3286_v25 = vpop.permute.xlu1 %3285 }
0x22bd   :  { %v6626_v52 = vadd.f32 %v5817_v41, %v3286_v25 }
0x22bf   :  { %v3289_v56 = vpack.c.bf16 %v6626_v52, %v6626_v52 }
0x22c1   :  { %v3291_v7 = vrot.slane %v3289_v56, 3 }
0x22c3   :  { %3292 = vrot.lane.b32.xlu1 %v3291_v7, %s5890_s11 }
0x232d   :  { %v3340_v6 = vpop.permute.xlu0 %3339 }
0x232e   :  { %5481 = vmatmul.mubr.msk.bf16.vlgmr.msra.gmra.mrb[120].mxu1 %vm111_vm3, %v3340_v6 }
0x232f   :  { %5491 = vmatpush3.bf16.msra.mxu1 %v5974_v13  ;;  %5492 = vmatprep.mubr.msk.bf16.mxu1 %vm5889_vm1, %v5888_v10 }
0x2330   :  { %5502 = vmatprep.subr.bf16.mxu1 %v5888_v10 }
0x2335   :  { %v3293_v57 = vpop.permute.xlu1 %3292 }
0x2336   :  { %5475 = vmatmul.mubr.msk.bf16.vlgmr.msra.gmra.mrb[112].mxu0 %vm111_vm3, %v3293_v57  ;;  %5493 = vmatmul.mubr.msk.bf16.vlgmr.msra.gmra.mrb[124].mxu1 %vm111_vm3, %v3293_v57 }
0x2337   :  { %5485 = vmatpush3.bf16.msra.mxu0 %v6061_v4  ;;  %5486 = vmatprep.mubr.msk.bf16.mxu0 %vm5889_vm1, %v5888_v10 }
0x2338   :  { %5496 = vmatprep.subr.bf16.mxu0 %v5888_v10  ;;  %5503 = vmatpush3.bf16.msra.mxu1 %v5991_v18 }
0x2339   :  { %5504 = vmatprep.mubr.msk.bf16.mxu1 %vm5889_vm1, %v5888_v10  ;;  %5514 = vmatprep.subr.bf16.mxu1 %v5888_v10 }
0x233e   :  { %5487 = vmatmul.mubr.msk.bf16.vlgmr.msra.gmra.mrb[116].mxu0 %vm111_vm3, %v3340_v6 }
0x233f   :  { %5497 = vmatpush3.bf16.msra.mxu0 %v5999_v20  ;;  %5498 = vmatprep.mubr.msk.bf16.mxu0 %vm5889_vm1, %v5888_v10 }
0x2340   :  { %5508 = vmatprep.subr.bf16.mxu0 %v5888_v10 }
0x2346   :  { %5499 = vmatmul.mubr.msk.bf16.vlgmr.msra.gmra.mrb[120].mxu0 %vm111_vm3, %v3293_v57 }
0x2347   :  { %5509 = vmatpush3.bf16.msra.mxu0 %v6035_v55  ;;  %5510 = vmatprep.mubr.msk.bf16.mxu0 %vm5889_vm1, %v5888_v10 }
0x2348   :  { %5520 = vmatprep.subr.bf16.mxu0 %v5888_v10 }
0x2401   :  { %v3378_v59 = vpop.f32.mrb[120].mxu1 }
0x2402   :  { %v5482_v0 = vpop.f32.mrb[121].mxu1  ;;  %v3379_v45 = vadd.f32 %v6399_v58, %v3378_v59 }
0x2403   :  { %v3381_v63 = vpop.f32.mrb[122].mxu1 }
0x2404   :  { %v5483_v1 = vpop.f32.mrb[123].mxu1 }
0x2409   :  { %v3331_v28 = vpop.f32.mrb[112].mxu0  ;;  %v3487_v5 = vpop.f32.mrb[124].mxu1 }
0x240a   :  { %v3332_v48 = vadd.f32 %v6405_v61, %v3331_v28  ;;  %v3488_v9 = vadd.f32 %v6661_v8, %v3487_v5  ;;  %v5476_v60 = vpop.f32.mrb[113].mxu0  ;;  %v5494_v15 = vpop.f32.mrb[125].mxu1 }
0x240b   :  { %v3334_v53 = vpop.f32.mrb[114].mxu0  ;;  %v3490_v11 = vpop.f32.mrb[126].mxu1 }
0x240c   :  { %v3424_v17 = vadd.f32 %v3379_v45, %v3332_v48  ;;  %v3533_v19 = vadd.f32 %v3488_v9, %v6011_v26  ;;  %v5477_v22 = vpop.f32.mrb[115].mxu0  ;;  %v5495_v62 = vpop.f32.mrb[127].mxu1 }
0x240e   :  { %v3425_v51 = vmul.f32 0.5, %v3424_v17  ;;  %v3534_v58 = vmul.f32 0.5, %v3533_v19 }
0x2410   :  { %5818 = vtanh.f32 %v3425_v51 }
0x2411   :  { %5820 = vtanh.f32 %v3534_v58  ;;  %v3418_v61 = vpop.f32.mrb[116].mxu0 }
0x2412   :  { %v5488_v29 = vpop.f32.mrb[117].mxu0  ;;  %v3419_v33 = vadd.f32 %v3418_v61, %v6092_v36 }
0x2413   :  { %v3421_v31 = vpop.f32.mrb[118].mxu0 }
0x2414   :  { %v5489_v34 = vpop.f32.mrb[119].mxu0  ;;  %v6714_v31 = vld [vmem:[%s7003_s3 + $0x2b] ss:$0 sm:$0xff] }
0x2419   :  { %v3527_v14 = vpop.f32.mrb[120].mxu0 }
0x241a   :  { %v5819_v37 = vpop.eup %5818  ;;  %v5500_v38 = vpop.f32.mrb[121].mxu0  ;;  %v3528_v44 = vadd.f32 %v3527_v14, %v6019_v39  ;;  %v6720_v14 = vld [vmem:[%s7003_s3 + $0x2a] ss:$0 sm:$0xff]  ;;  %s5894_s3 = smov 24  }
0x241b   :  { %v5821_v40 = vpop.eup %5820  ;;  %v3427_v41 = vadd.f32 1.0, %v5819_v37  ;;  %v3530_v42 = vpop.f32.mrb[122].mxu0 }
0x241c   :  { %v3536_v43 = vadd.f32 1.0, %v5821_v40  ;;  %v5501_v47 = vpop.f32.mrb[123].mxu0 }
0x241d   :  { %v3428_v50 = vmul.f32 0.5, %v3427_v41 }
0x241e   :  { %v3537_v12 = vmul.f32 0.5, %v3536_v43 }
0x241f   :  { %v3429_v23 = vmul.f32 %v3428_v50, %v3419_v33 }
0x2420   :  { %v3538_v35 = vmul.f32 %v3537_v12, %v3528_v44 }
0x2421   :  { %3431 = vrot.lane.b32.xlu0 %v3429_v23, %s5891_s19 }
0x2422   :  { %3540 = vrot.lane.b32.xlu1 %v3538_v35, %s5891_s19 }
0x2493   :  { %v3432_v25 = vpop.permute.xlu0 %3431 }
0x2494   :  { %v3434_v56 = vadd.f32 %v3432_v25, %v3332_v48  ;;  %v3541_v7 = vpop.permute.xlu1 %3540 }
0x2495   :  { %v3543_v6 = vadd.f32 %v3541_v7, %v6011_v26 }
0x2496   :  { %5822 = vtanh.f32 %v3434_v56 }
0x2497   :  { %5824 = vtanh.f32 %v3543_v6 }
0x24a0   :  { %v5823_v57 = vpop.eup %5822 }
0x24a1   :  { %v5825_v59 = vpop.eup %5824  ;;  %v3436_v0 = vsub.f32 %v6621_v27, %v5823_v57 }
0x24a2   :  { %v3546_v63 = vrot.slane %v5825_v59, 2 }
0x24a3   :  { %3438 = vrot.lane.b32.xlu0 %v3436_v0, %s5893_s28 }
0x24a4   :  { %v3548_v1 = vsub.f32 %v6626_v52, %v3546_v63 }
0x24a6   :  { %v3550_v28 = vrot.slane %v3548_v1, 6 }
0x24a8   :  { %3551 = vrot.lane.b32.xlu1 %v3550_v28, %s5893_s28 }
0x2515   :  { %v3439_v5 = vpop.permute.xlu0 %3438 }
0x2516   :  { %v3441_v45 = vmul.f32 %v3439_v5, %v3428_v50 }
0x2518   :  { %3443 = vrot.lane.b32.xlu0 %v3441_v45, %s5892_s20 }
0x251a   :  { %v3552_v48 = vpop.permute.xlu1 %3551 }
0x251b   :  { %v3554_v9 = vmul.f32 %v3552_v48, %v3537_v12 }
0x251d   :  { %3556 = vrot.lane.b32.xlu1 %v3554_v9, %s5892_s20 }
0x258a   :  { %v3444_v60 = vpop.permute.xlu0 %3443 }
0x258b   :  { %v6676_v15 = vadd.f32 %v5823_v57, %v3444_v60 }
0x258d   :  { %v3607_v53 = vpack.c.bf16 %v6676_v15, %v6676_v15 }
0x258f   :  { %v3557_v11 = vpop.permute.xlu1 %3556  ;;  %3609 = vrot.lane.b32.xlu0 %v3607_v53, %s5890_s11 }
0x2590   :  { %v6681_v52 = vadd.f32 %v5825_v59, %v3557_v11 }
0x2592   :  { %v3560_v17 = vpack.c.bf16 %v6681_v52, %v6681_v52 }
0x2594   :  { %3562 = vrot.lane.b32.xlu1 %v3560_v17, %s5890_s11 }
0x2601   :  { %v3610_v19 = vpop.permute.xlu0 %3609 }
0x2602   :  { %5511 = vmatmul.mubr.msk.bf16.vlgmr.msra.gmra.mrb[124].mxu0 %vm111_vm3, %v3610_v19 }
0x2603   :  { %5521 = vmatpush3.bf16.msra.mxu0 %v5974_v13  ;;  %5522 = vmatprep.mubr.msk.bf16.mxu0 %vm5889_vm1, %v5888_v10 }
0x2604   :  { %5532 = vmatprep.subr.bf16.mxu0 %v5888_v10 }
0x2606   :  { %v3563_v22 = vpop.permute.xlu1 %3562 }
0x2607   :  { %5505 = vmatmul.mubr.msk.bf16.vlgmr.msra.gmra.mrb[128].mxu1 %vm111_vm3, %v3563_v22 }
0x2608   :  { %5515 = vmatpush3.bf16.msra.mxu1 %v6061_v4  ;;  %5516 = vmatprep.mubr.msk.bf16.mxu1 %vm5889_vm1, %v5888_v10 }
0x2609   :  { %5526 = vmatprep.subr.bf16.mxu1 %v5888_v10 }
0x260a   :  { %5523 = vmatmul.mubr.msk.bf16.vlgmr.msra.gmra.mrb[128].mxu0 %vm111_vm3, %v3563_v22 }
0x260b   :  { %5533 = vmatpush3.bf16.msra.mxu0 %v5991_v18  ;;  %5534 = vmatprep.mubr.msk.bf16.mxu0 %vm5889_vm1, %v5888_v10 }
0x260c   :  { %5544 = vmatprep.subr.bf16.mxu0 %v5888_v10 }
0x260f   :  { %5517 = vmatmul.mubr.msk.bf16.vlgmr.msra.gmra.mrb[132].mxu1 %vm111_vm3, %v3610_v19 }
0x2610   :  { %5527 = vmatpush3.bf16.msra.mxu1 %v5999_v20  ;;  %5528 = vmatprep.mubr.msk.bf16.mxu1 %vm5889_vm1, %v5888_v10 }
0x2611   :  { %5538 = vmatprep.subr.bf16.mxu1 %v5888_v10 }
0x2617   :  { %5529 = vmatmul.mubr.msk.bf16.vlgmr.msra.gmra.mrb[136].mxu1 %vm111_vm3, %v3563_v22 }
0x2618   :  { %5539 = vmatpush3.bf16.msra.mxu1 %v6035_v55  ;;  %5540 = vmatprep.mubr.msk.bf16.mxu1 %vm5889_vm1, %v5888_v10 }
0x2619   :  { %5550 = vmatprep.subr.bf16.mxu1 %v5888_v10 }
0x26d5   :  { %v3648_v62 = vpop.f32.mrb[124].mxu0 }
0x26d6   :  { %v5512_v51 = vpop.f32.mrb[125].mxu0  ;;  %v3649_v34 = vadd.f32 %v6714_v31, %v3648_v62 }
0x26d7   :  { %v3651_v58 = vpop.f32.mrb[126].mxu0 }
0x26d8   :  { %v5513_v61 = vpop.f32.mrb[127].mxu0 }
0x26da   :  { %v3601_v29 = vpop.f32.mrb[128].mxu1 }
0x26db   :  { %v3602_v37 = vadd.f32 %v6720_v14, %v3601_v29  ;;  %v5506_v38 = vpop.f32.mrb[129].mxu1 }
0x26dc   :  { %v3604_v40 = vpop.f32.mrb[130].mxu1 }
0x26dd   :  { %v3694_v41 = vadd.f32 %v3649_v34, %v3602_v37  ;;  %v5507_v42 = vpop.f32.mrb[131].mxu1  ;;  %v3757_v43 = vpop.f32.mrb[128].mxu0 }
0x26de   :  { %v3758_v47 = vadd.f32 %v6661_v8, %v3757_v43  ;;  %v5524_v33 = vpop.f32.mrb[129].mxu0 }
0x26df   :  { %v3695_v50 = vmul.f32 0.5, %v3694_v41  ;;  %v3760_v44 = vpop.f32.mrb[130].mxu0 }
0x26e0   :  { %v3804_v12 = vrot.slane %v3758_v47, 6  ;;  %v5525_v23 = vpop.f32.mrb[131].mxu0 }
0x26e1   :  { %5826 = vtanh.f32 %v3695_v50 }
0x26e2   :  { %v3806_v35 = vadd.f32 %v3804_v12, %v6011_v26  ;;  %v3688_v25 = vpop.f32.mrb[132].mxu1 }
0x26e3   :  { %v5518_v56 = vpop.f32.mrb[133].mxu1  ;;  %v3689_v45 = vadd.f32 %v3688_v25, %v6092_v36 }
0x26e4   :  { %v3807_v7 = vmul.f32 0.5, %v3806_v35  ;;  %v3691_v6 = vpop.f32.mrb[134].mxu1 }
0x26e5   :  { %v5519_v57 = vpop.f32.mrb[135].mxu1 }
0x26e6   :  { %5828 = vtanh.f32 %v3807_v7 }
0x26ea   :  { %v3797_v59 = vpop.f32.mrb[136].mxu1 }
0x26eb   :  { %v5827_v0 = vpop.eup %5826  ;;  %v5530_v63 = vpop.f32.mrb[137].mxu1  ;;  %v3798_v9 = vadd.f32 %v3797_v59, %v6019_v39 }
0x26ec   :  { %v3697_v1 = vadd.f32 1.0, %v5827_v0  ;;  %v3800_v28 = vpop.f32.mrb[138].mxu1 }
0x26ed   :  { %v5531_v5 = vpop.f32.mrb[139].mxu1  ;;  %v3812_v19 = vrot.slane %v3798_v9, 6 }
0x26ee   :  { %v3698_v48 = vmul.f32 0.5, %v3697_v1 }
0x26f0   :  { %v5829_v60 = vpop.eup %5828  ;;  %v3699_v53 = vmul.f32 %v3698_v48, %v3689_v45 }
0x26f1   :  { %v3809_v11 = vadd.f32 1.0, %v5829_v60 }
0x26f2   :  { %3701 = vrot.lane.b32.xlu0 %v3699_v53, %s5891_s19 }
0x26f3   :  { %v3810_v17 = vmul.f32 0.5, %v3809_v11 }
0x26f5   :  { %v3814_v22 = vmul.f32 %v3812_v19, %v3810_v17 }
0x26f7   :  { %3816 = vrot.lane.b32.xlu1 %v3814_v22, %s5891_s19 }
0x2764   :  { %v3702_v62 = vpop.permute.xlu0 %3701 }
0x2765   :  { %v3704_v51 = vadd.f32 %v3702_v62, %v3602_v37 }
0x2767   :  { %5830 = vtanh.f32 %v3704_v51 }
0x2769   :  { %v3817_v58 = vpop.permute.xlu1 %3816 }
0x276a   :  { %v3819_v61 = vadd.f32 %v3817_v58, %v6011_v26 }
0x276c   :  { %5832 = vtanh.f32 %v3819_v61 }
0x2771   :  { %v5831_v29 = vpop.eup %5830 }
0x2772   :  { %v3706_v34 = vsub.f32 %v6676_v15, %v5831_v29 }
0x2774   :  { %3708 = vrot.lane.b32.xlu0 %v3706_v34, %s5893_s28 }
0x2776   :  { %v5833_v38 = vpop.eup %5832 }
0x2777   :  { %v3822_v40 = vrot.slane %v5833_v38, 2 }
0x2779   :  { %v3824_v41 = vsub.f32 %v6681_v52, %v3822_v40 }
0x277b   :  { %v3826_v42 = vrot.slane %v3824_v41, 6 }
0x277d   :  { %3827 = vrot.lane.b32.xlu1 %v3826_v42, %s5893_s28 }
0x27e6   :  { %v3709_v43 = vpop.permute.xlu0 %3708 }
0x27e7   :  { %v3711_v47 = vmul.f32 %v3709_v43, %v3698_v48 }
0x27e9   :  { %3713 = vrot.lane.b32.xlu0 %v3711_v47, %s5892_s20 }
0x27ef   :  { %v3828_v37 = vpop.permute.xlu1 %3827 }
0x27f0   :  { %v3830_v33 = vmul.f32 %v3828_v37, %v3810_v17 }
0x27f2   :  { %3832 = vrot.lane.b32.xlu1 %v3830_v33, %s5892_s20 }
0x285b   :  { %v3714_v50 = vpop.permute.xlu0 %3713 }
0x285c   :  { %v6736_v44 = vadd.f32 %v5831_v29, %v3714_v50 }
0x285e   :  { %v3884_v12 = vpack.c.bf16 %v6736_v44, %v6736_v44 }
0x2860   :  { %3886 = vrot.lane.b32.xlu0 %v3884_v12, %s5890_s11 }
0x2864   :  { %v3833_v52 = vpop.permute.xlu1 %3832 }
0x2865   :  { %v6741_v23 = vadd.f32 %v5833_v38, %v3833_v52 }
0x2867   :  { %v3836_v35 = vpack.c.bf16 %v6741_v23, %v6741_v23 }
0x2869   :  { %v3838_v25 = vrot.slane %v3836_v35, 1 }
0x286b   :  { %3839 = vrot.lane.b32.xlu1 %v3838_v25, %s5890_s11 }
0x28d2   :  { %v3887_v56 = vpop.permute.xlu0 %3886 }
0x28d3   :  { %5541 = vmatmul.mubr.msk.bf16.vlgmr.msra.gmra.mrb[140].mxu1 %vm111_vm3, %v3887_v56 }
0x28d4   :  { %5551 = vmatpush3.bf16.msra.mxu1 %v5974_v13  ;;  %5552 = vmatprep.mubr.msk.bf16.mxu1 %vm5889_vm1, %v5888_v10 }
0x28d5   :  { %5562 = vmatprep.subr.bf16.mxu1 %v5888_v10 }
0x28dd   :  { %v3840_v7 = vpop.permute.xlu1 %3839 }
0x28de   :  { %5535 = vmatmul.mubr.msk.bf16.vlgmr.msra.gmra.mrb[132].mxu0 %vm111_vm3, %v3840_v7  ;;  %5553 = vmatmul.mubr.msk.bf16.vlgmr.msra.gmra.mrb[144].mxu1 %vm111_vm3, %v3840_v7 }
0x28df   :  { %5545 = vmatpush3.bf16.msra.mxu0 %v6061_v4  ;;  %5546 = vmatprep.mubr.msk.bf16.mxu0 %vm5889_vm1, %v5888_v10 }
0x28e0   :  { %5556 = vmatprep.subr.bf16.mxu0 %v5888_v10  ;;  %5563 = vmatpush3.bf16.msra.mxu1 %v5991_v18 }
0x28e1   :  { %5564 = vmatprep.mubr.msk.bf16.mxu1 %vm5889_vm1, %v5888_v10  ;;  %5574 = vmatprep.subr.bf16.mxu1 %v5888_v10 }
0x28e6   :  { %5547 = vmatmul.mubr.msk.bf16.vlgmr.msra.gmra.mrb[136].mxu0 %vm111_vm3, %v3887_v56 }
0x28e7   :  { %5557 = vmatpush3.bf16.msra.mxu0 %v5999_v20  ;;  %5558 = vmatprep.mubr.msk.bf16.mxu0 %vm5889_vm1, %v5888_v10 }
0x28e8   :  { %5568 = vmatprep.subr.bf16.mxu0 %v5888_v10 }
0x28ee   :  { %5559 = vmatmul.mubr.msk.bf16.vlgmr.msra.gmra.mrb[140].mxu0 %vm111_vm3, %v3840_v7 }
0x28ef   :  { %5569 = vmatpush3.bf16.msra.mxu0 %v6035_v55  ;;  %5570 = vmatprep.mubr.msk.bf16.mxu0 %vm5889_vm1, %v5888_v10 }
0x28f0   :  { %5580 = vmatprep.subr.bf16.mxu0 %v5888_v10 }
0x29a6   :  { %v3925_v6 = vpop.f32.mrb[140].mxu1 }
0x29a7   :  { %v5542_v57 = vpop.f32.mrb[141].mxu1  ;;  %v3926_v28 = vadd.f32 %v6714_v31, %v3925_v6 }
0x29a8   :  { %v3928_v59 = vpop.f32.mrb[142].mxu1 }
0x29a9   :  { %v5543_v0 = vpop.f32.mrb[143].mxu1 }
0x29b1   :  { %v3878_v63 = vpop.f32.mrb[132].mxu0  ;;  %v4034_v1 = vpop.f32.mrb[144].mxu1 }
0x29b2   :  { %v3879_v5 = vadd.f32 %v6720_v14, %v3878_v63  ;;  %v4035_v45 = vadd.f32 %v6661_v8, %v4034_v1  ;;  %v5536_v48 = vpop.f32.mrb[133].mxu0  ;;  %v5554_v9 = vpop.f32.mrb[145].mxu1 }
0x29b3   :  { %v3881_v60 = vpop.f32.mrb[134].mxu0  ;;  %v4037_v53 = vpop.f32.mrb[146].mxu1 }
0x29b4   :  { %v3971_v11 = vadd.f32 %v3926_v28, %v3879_v5  ;;  %v4081_v17 = vrot.slane %v4035_v45, 4  ;;  %v5537_v19 = vpop.f32.mrb[135].mxu0  ;;  %v5555_v22 = vpop.f32.mrb[147].mxu1 }
0x29b6   :  { %v3972_v62 = vmul.f32 0.5, %v3971_v11  ;;  %v4083_v51 = vadd.f32 %v4081_v17, %v6011_v26 }
0x29b8   :  { %5834 = vtanh.f32 %v3972_v62  ;;  %v4084_v58 = vmul.f32 0.5, %v4083_v51 }
0x29b9   :  { %v3965_v61 = vpop.f32.mrb[136].mxu0 }
0x29ba   :  { %5836 = vtanh.f32 %v4084_v58  ;;  %v5548_v29 = vpop.f32.mrb[137].mxu0  ;;  %v3966_v12 = vadd.f32 %v3965_v61, %v6092_v36 }
0x29bb   :  { %v3968_v34 = vpop.f32.mrb[138].mxu0 }
0x29bc   :  { %v5549_v38 = vpop.f32.mrb[139].mxu0 }
0x29c1   :  { %v4074_v40 = vpop.f32.mrb[140].mxu0 }
0x29c2   :  { %v5835_v41 = vpop.eup %5834  ;;  %v5560_v42 = vpop.f32.mrb[141].mxu0  ;;  %v4075_v47 = vadd.f32 %v4074_v40, %v6019_v39 }
0x29c3   :  { %v3974_v43 = vadd.f32 1.0, %v5835_v41  ;;  %v4077_v37 = vpop.f32.mrb[142].mxu0 }
0x29c4   :  { %v5837_v33 = vpop.eup %5836  ;;  %v5561_v50 = vpop.f32.mrb[143].mxu0  ;;  %v4089_v7 = vrot.slane %v4075_v47, 4 }
0x29c5   :  { %v3975_v52 = vmul.f32 0.5, %v3974_v43  ;;  %v4086_v35 = vadd.f32 1.0, %v5837_v33 }
0x29c7   :  { %v3976_v25 = vmul.f32 %v3975_v52, %v3966_v12  ;;  %v4087_v56 = vmul.f32 0.5, %v4086_v35 }
0x29c9   :  { %v4091_v6 = vmul.f32 %v4089_v7, %v4087_v56  ;;  %3978 = vrot.lane.b32.xlu0 %v3976_v25, %s5891_s19 }
0x29cb   :  { %4093 = vrot.lane.b32.xlu1 %v4091_v6, %s5891_s19 }
0x2a3b   :  { %v3979_v57 = vpop.permute.xlu0 %3978 }
0x2a3c   :  { %v3981_v59 = vadd.f32 %v3979_v57, %v3879_v5 }
0x2a3d   :  { %v4094_v0 = vpop.permute.xlu1 %4093 }
0x2a3e   :  { %5838 = vtanh.f32 %v3981_v59  ;;  %v4096_v63 = vadd.f32 %v4094_v0, %v6011_v26 }
0x2a40   :  { %5840 = vtanh.f32 %v4096_v63 }
0x2a48   :  { %v5839_v1 = vpop.eup %5838 }
0x2a49   :  { %v3983_v28 = vsub.f32 %v6736_v44, %v5839_v1 }
0x2a4a   :  { %v5841_v45 = vpop.eup %5840 }
0x2a4b   :  { %3985 = vrot.lane.b32.xlu0 %v3983_v28, %s5893_s28  ;;  %v4099_v48 = vrot.slane %v5841_v45, 2 }
0x2a4d   :  { %v4101_v9 = vsub.f32 %v6741_v23, %v4099_v48 }
0x2a4f   :  { %v4103_v60 = vrot.slane %v4101_v9, 6 }
0x2a51   :  { %4104 = vrot.lane.b32.xlu1 %v4103_v60, %s5893_s28 }
0x2abd   :  { %v3986_v53 = vpop.permute.xlu0 %3985 }
0x2abe   :  { %v3988_v11 = vmul.f32 %v3986_v53, %v3975_v52 }
0x2ac0   :  { %3990 = vrot.lane.b32.xlu0 %v3988_v11, %s5892_s20 }
0x2ac3   :  { %v4105_v5 = vpop.permute.xlu1 %4104 }
0x2ac4   :  { %v4107_v17 = vmul.f32 %v4105_v5, %v4087_v56 }
0x2ac6   :  { %4109 = vrot.lane.b32.xlu1 %v4107_v17, %s5892_s20 }
0x2b32   :  { %v3991_v19 = vpop.permute.xlu0 %3990 }
0x2b33   :  { %v6786_v22 = vadd.f32 %v5839_v1, %v3991_v19 }
0x2b35   :  { %v4161_v62 = vpack.c.bf16 %v6786_v22, %v6786_v22 }
0x2b37   :  { %4163 = vrot.lane.b32.xlu0 %v4161_v62, %s5890_s11 }
0x2b38   :  { %v4110_v23 = vpop.permute.xlu1 %4109 }
0x2b39   :  { %v6791_v51 = vadd.f32 %v5841_v45, %v4110_v23 }
0x2b3b   :  { %v4113_v58 = vpack.c.bf16 %v6791_v51, %v6791_v51 }
0x2b3d   :  { %v4115_v61 = vrot.slane %v4113_v58, 2 }
0x2b3f   :  { %4116 = vrot.lane.b32.xlu1 %v4115_v61, %s5890_s11 }
0x2ba9   :  { %v4164_v29 = vpop.permute.xlu0 %4163 }
0x2baa   :  { %5571 = vmatmul.mubr.msk.bf16.vlgmr.msra.gmra.mrb[144].mxu0 %vm111_vm3, %v4164_v29 }
0x2bab   :  { %5581 = vmatpush3.bf16.msra.mxu0 %v5974_v13  ;;  %5582 = vmatprep.mubr.msk.bf16.mxu0 %vm5889_vm1, %v5888_v10 }
0x2bac   :  { %5592 = vmatprep.subr.bf16.mxu0 %v5888_v10 }
0x2bb1   :  { %v4117_v34 = vpop.permute.xlu1 %4116 }
0x2bb2   :  { %5565 = vmatmul.mubr.msk.bf16.vlgmr.msra.gmra.mrb[148].mxu1 %vm111_vm3, %v4117_v34  ;;  %5583 = vmatmul.mubr.msk.bf16.vlgmr.msra.gmra.mrb[148].mxu0 %vm111_vm3, %v4117_v34 }
0x2bb3   :  { %5575 = vmatpush3.bf16.msra.mxu1 %v6061_v4  ;;  %5576 = vmatprep.mubr.msk.bf16.mxu1 %vm5889_vm1, %v5888_v10 }
0x2bb4   :  { %5586 = vmatprep.subr.bf16.mxu1 %v5888_v10  ;;  %5593 = vmatpush3.bf16.msra.mxu0 %v5991_v18 }
0x2bb5   :  { %5594 = vmatprep.mubr.msk.bf16.mxu0 %vm5889_vm1, %v5888_v10  ;;  %5604 = vmatprep.subr.bf16.mxu0 %v5888_v10 }
0x2bba   :  { %5577 = vmatmul.mubr.msk.bf16.vlgmr.msra.gmra.mrb[152].mxu1 %vm111_vm3, %v4164_v29 }
0x2bbb   :  { %5587 = vmatpush3.bf16.msra.mxu1 %v5999_v20  ;;  %5588 = vmatprep.mubr.msk.bf16.mxu1 %vm5889_vm1, %v5888_v10 }
0x2bbc   :  { %5598 = vmatprep.subr.bf16.mxu1 %v5888_v10 }
0x2bc2   :  { %5589 = vmatmul.mubr.msk.bf16.vlgmr.msra.gmra.mrb[156].mxu1 %vm111_vm3, %v4117_v34 }
0x2bc3   :  { %5599 = vmatpush3.bf16.msra.mxu1 %v6035_v55  ;;  %5600 = vmatprep.mubr.msk.bf16.mxu1 %vm5889_vm1, %v5888_v10 }
0x2bc4   :  { %5610 = vmatprep.subr.mxu1 %v5888_v10 }
0x2c7d   :  { %v4202_v13 = vpop.f32.mrb[144].mxu0 }
0x2c7e   :  { %v5572_v18 = vpop.f32.mrb[145].mxu0  ;;  %v4203_v42 = vadd.f32 %v6714_v31, %v4202_v13 }
0x2c7f   :  { %v4205_v38 = vpop.f32.mrb[146].mxu0 }
0x2c80   :  { %v5573_v40 = vpop.f32.mrb[147].mxu0 }
0x2c85   :  { %v4155_v41 = vpop.f32.mrb[148].mxu1  ;;  %v4311_v20 = vpop.f32.mrb[148].mxu0 }
0x2c86   :  { %v4156_v43 = vadd.f32 %v6720_v14, %v4155_v41  ;;  %v4312_v47 = vadd.f32 %v6661_v8, %v4311_v20  ;;  %v5566_v37 = vpop.f32.mrb[149].mxu1  ;;  %v5584_v33 = vpop.f32.mrb[149].mxu0 }
0x2c87   :  { %v4158_v55 = vpop.f32.mrb[150].mxu1  ;;  %v4314_v50 = vpop.f32.mrb[150].mxu0 }
0x2c88   :  { %v4248_v12 = vadd.f32 %v4203_v42, %v4156_v43  ;;  %v4358_v52 = vrot.slane %v4312_v47, 2  ;;  %v5567_v35 = vpop.f32.mrb[151].mxu1  ;;  %v5585_v25 = vpop.f32.mrb[151].mxu0 }
0x2c8a   :  { %v4249_v56 = vmul.f32 0.5, %v4248_v12  ;;  %v4360_v7 = vadd.f32 %v4358_v52, %v6011_v26 }
0x2c8c   :  { %5842 = vtanh.f32 %v4249_v56  ;;  %v4361_v6 = vmul.f32 0.5, %v4360_v7 }
0x2c8d   :  { %v4242_v57 = vpop.f32.mrb[152].mxu1 }
0x2c8e   :  { %5844 = vtanh.f32 %v4361_v6  ;;  %v5578_v59 = vpop.f32.mrb[153].mxu1  ;;  %v4243_v11 = vadd.f32 %v4242_v57, %v6092_v36 }
0x2c8f   :  { %v4245_v0 = vpop.f32.mrb[154].mxu1 }
0x2c90   :  { %v5579_v63 = vpop.f32.mrb[155].mxu1 }
0x2c95   :  { %v4351_v1 = vpop.f32.mrb[156].mxu1 }
0x2c96   :  { %v5843_v8 = vpop.eup %5842  ;;  %v5590_v28 = vpop.f32.mrb[157].mxu1  ;;  %v4352_v48 = vadd.f32 %v4351_v1, %v6019_v39 }
0x2c97   :  { %v4251_v45 = vadd.f32 1.0, %v5843_v8  ;;  %v4354_v9 = vpop.f32.mrb[158].mxu1 }
0x2c98   :  { %v5845_v60 = vpop.eup %5844  ;;  %v5591_v53 = vpop.f32.mrb[159].mxu1  ;;  %v4366_v23 = vrot.slane %v4352_v48, 2 }
0x2c99   :  { %v4252_v5 = vmul.f32 0.5, %v4251_v45  ;;  %v4363_v17 = vadd.f32 1.0, %v5845_v60 }
0x2c9b   :  { %v4253_v19 = vmul.f32 %v4252_v5, %v4243_v11  ;;  %v4364_v62 = vmul.f32 0.5, %v4363_v17 }
0x2c9d   :  { %v4368_v58 = vmul.f32 %v4366_v23, %v4364_v62  ;;  %4255 = vrot.lane.b32.xlu1 %v4253_v19, %s5891_s19 }
0x2c9f   :  { %4370 = vrot.lane.b32.xlu0 %v4368_v58, %s5891_s19 }
0x2d0f   :  { %v4256_v61 = vpop.permute.xlu1 %4255 }
0x2d10   :  { %v4258_v29 = vadd.f32 %v4256_v61, %v4156_v43 }
0x2d11   :  { %v4371_v34 = vpop.permute.xlu0 %4370 }
0x2d12   :  { %5846 = vtanh.f32 %v4258_v29  ;;  %v4373_v39 = vadd.f32 %v4371_v34, %v6011_v26  ;;  %v4561_v29 = vld [vmem:[%s7004_s4 + $0x30] sm:$0xff]  ;;  %v4562_v34 = vld [vmem:[%s7004_s4 + $0x38] sm:$0xff] }
0x2d14   :  { %5848 = vtanh.f32 %v4373_v39  ;;  %v5681_v39 = vpack.c.bf16 %v4562_v34, %v4561_v29 }
0x2d1c   :  { %v5847_v13 = vpop.eup %5846 }
0x2d1d   :  { %v4260_v18 = vsub.f32 %v6786_v22, %v5847_v13 }
0x2d1e   :  { %v5849_v38 = vpop.eup %5848 }
0x2d1f   :  { %4262 = vrot.lane.b32.xlu1 %v4260_v18, %s5893_s28  ;;  %v4376_v40 = vrot.slane %v5849_v38, 2 }
0x2d21   :  { %v4378_v41 = vsub.f32 %v6791_v51, %v4376_v40 }
0x2d23   :  { %v4380_v20 = vrot.slane %v4378_v41, 6  ;;  %v4571_v41 = vld [vmem:[%s7004_s4 + $0x80] sm:$0xff] }
0x2d25   :  { %4381 = vrot.lane.b32.xlu0 %v4380_v20, %s5893_s28  ;;  %v4567_v20 = vld [vmem:[%s7004_s4 + $0x60] sm:$0xff] }
0x2d91   :  { %v4263_v42 = vpop.permute.xlu1 %4262 }
0x2d92   :  { %v4265_v47 = vmul.f32 %v4263_v42, %v4252_v5  ;;  %v4568_v42 = vld [vmem:[%s7004_s4 + $0x68] sm:$0xff] }
0x2d94   :  { %4267 = vrot.lane.b32.xlu1 %v4265_v47, %s5892_s20  ;;  %v5690_v47 = vpack.c.bf16 %v4568_v42, %v4567_v20 }
0x2d97   :  { %v4382_v43 = vpop.permute.xlu0 %4381 }
0x2d98   :  { %v4384_v37 = vmul.f32 %v4382_v43, %v4364_v62  ;;  %v4569_v43 = vld [vmem:[%s7004_s4 + $0x70] sm:$0xff] }
0x2d9a   :  { %4386 = vrot.lane.b32.xlu0 %v4384_v37, %s5892_s20  ;;  %v4570_v37 = vld [vmem:[%s7004_s4 + $0x78] sm:$0xff] }
0x2e06   :  { %v4268_v26 = vpop.permute.xlu1 %4267 }
0x2e07   :  { %v6836_v33 = vadd.f32 %v5847_v13, %v4268_v26  ;;  %v4564_v13 = vld [vmem:[%s7004_s4 + $0x48] sm:$0xff]  ;;  %v4573_v26 = vld [vmem:[%s7001_s1] sm:$0x3] }
0x2e09   :  { %v4438_v55 = vpack.c.bf16 %v6836_v33, %v6836_v33 }
0x2e0b   :  { %4440 = vrot.lane.b32.xlu1 %v4438_v55, %s5890_s11 }
0x2e0c   :  { %v4387_v51 = vpop.permute.xlu0 %4386 }
0x2e0d   :  { %v4389_v50 = vadd.f32 %v5849_v38, %v4387_v51  ;;  %v4566_v38 = vld [vmem:[%s7004_s4 + $0x58] sm:$0xff]  ;;  %v4722_v51 = vld [vmem:[%s7005_s5] sm:$0xff] }
0x2e0f   :  { %v4390_v12 = vpack.c.bf16 %v4389_v50, %v4389_v50  ;;  %v4723_v50 = vld [vmem:[%s7005_s5 + $0x8] sm:$0xff] }
0x2e11   :  { %v4392_v52 = vrot.slane %v4390_v12, 3  ;;  %v4724_v12 = vld [vmem:[%s7005_s5 + $0x10] sm:$0xff] }
0x2e13   :  { %4393 = vrot.lane.b32.xlu0 %v4392_v52, %s5890_s11  ;;  %v5696_v52 = vpack.c.bf16 %v4723_v50, %v4722_v51 }
0x2e7d   :  { %v4441_v35 = vpop.permute.xlu1 %4440 }
0x2e7e   :  { %5601 = vmatmul.mubr.msk.bf16.vlgmr.msra.gmra.mrb[160].mxu1 %vm111_vm3, %v4441_v35 }
0x2e7f   :  { %5612 = vmatprep.mubr.msk.f32.mxu1 %vm5889_vm1, %v5888_v10  ;;  %5611 = vmatpush3.msra.mxu1 %v4571_v41 }
0x2e85   :  { %v4394_v25 = vpop.permute.xlu0 %4393 }
0x2e86   :  { %5595 = vmatmul.mubr.msk.bf16.vlgmr.msra.gmra.mrb[152].mxu0 %vm111_vm3, %v4394_v25  ;;  %5613 = vmatmul.mubr.msk.f32.vlgmr.msra.gmra.mrb[164].mxu1 %vm111_vm3, %v4573_v26 }
0x2e87   :  { %5605 = vmatpush3.bf16.msra.mxu0 %v6061_v4  ;;  %5606 = vmatprep.mubr.msk.bf16.mxu0 %vm5889_vm1, %v5888_v10 }
0x2e88   :  { %5668 = vmatprep.mubr.msk.f32.mxu1 %vm5889_vm1, %v5888_v10 }
0x2e8e   :  { %5607 = vmatmul.mubr.msk.bf16.vlgmr.msra.gmra.mrb[156].mxu0 %vm111_vm3, %v4441_v35  ;;  %v4725_v35 = vld [vmem:[%s7005_s5 + $0x18] sm:$0xff]  ;;  %vm4552_vm3 = vcmask 1042368  }
0x2e8f   :  { %5647 = vmatprep.mubr.msk.f32.mxu0 %vm5889_vm1, %v5888_v10  ;;  %vm3998_vm1 = vcmask 911168  }
0x2f51   :  { %v4479_v56 = vpop.f32.mrb[160].mxu1 }
0x2f52   :  { %v5602_v7 = vpop.f32.mrb[161].mxu1  ;;  %v4480_v0 = vadd.f32 %v6714_v31, %v4479_v56 }
0x2f53   :  { %v4482_v6 = vpop.f32.mrb[162].mxu1 }
0x2f54   :  { %v5603_v57 = vpop.f32.mrb[163].mxu1  ;;  %v5699_v6 = vpack.c.bf16 %v4725_v35, %v4724_v12 }
0x2f55   :  { %v4726_v57 = vld [vmem:[%s7005_s5 + $0x20] sm:$0xff] }
0x2f59   :  { %v4432_v59 = vpop.f32.mrb[152].mxu0 }
0x2f5a   :  { %v4433_v63 = vadd.f32 %v6720_v14, %v4432_v59  ;;  %v5596_v1 = vpop.f32.mrb[153].mxu0  ;;  %v4727_v59 = vld [vmem:[%s7005_s5 + $0x28] sm:$0xff] }
0x2f5b   :  { %v4435_v8 = vpop.f32.mrb[154].mxu0 }
0x2f5c   :  { %v4525_v4 = vadd.f32 %v4480_v0, %v4433_v63  ;;  %v5597_v28 = vpop.f32.mrb[155].mxu0 }
0x2f5e   :  { %v4526_v45 = vmul.f32 0.5, %v4525_v4 }
0x2f60   :  { %5850 = vtanh.f32 %v4526_v45 }
0x2f61   :  { %v4519_v48 = vpop.f32.mrb[156].mxu0 }
0x2f62   :  { %v5608_v9 = vpop.f32.mrb[157].mxu0  ;;  %v4520_v17 = vadd.f32 %v4519_v48, %v6092_v36 }
0x2f63   :  { %v4522_v60 = vpop.f32.mrb[158].mxu0 }
0x2f64   :  { %v5609_v53 = vpop.f32.mrb[159].mxu0 }
0x2f6a   :  { %v5851_v11 = vpop.eup %5850 }
0x2f6b   :  { %v4528_v5 = vadd.f32 1.0, %v5851_v11 }
0x2f6d   :  { %v4529_v19 = vmul.f32 0.5, %v4528_v5 }
0x2f6f   :  { %v4530_v62 = vmul.f32 %v4529_v19, %v4520_v17  ;;  %v4643_v17 = vpop.f32.mrb[164].mxu1 }
0x2f71   :  { %4532 = vrot.lane.b32.xlu0 %v4530_v62, %s5891_s19  ;;  %v4728_v62 = vld [vmem:[%s7005_s5 + $0x30] sm:$0xff] }
0x2fe3   :  { %v4533_v31 = vpop.permute.xlu0 %4532 }
0x2fe4   :  { %v4535_v14 = vadd.f32 %v4533_v31, %v4433_v63  ;;  %v5702_v63 = vpack.c.bf16 %v4727_v59, %v4726_v57  ;;  %v4729_v31 = vld [vmem:[%s7005_s5 + $0x38] sm:$0xff] }
0x2fe6   :  { %5852 = vtanh.f32 %v4535_v14  ;;  %v5705_v14 = vpack.c.bf16 %v4729_v31, %v4728_v62 }
0x2ff0   :  { %v6856_v23 = vpop.eup %5852 }
0x2ff1   :  { %v4537_v58 = vsub.f32 %v6836_v33, %v6856_v23 }
0x2ff3   :  { %4539 = vrot.lane.b32.xlu1 %v4537_v58, %s5893_s28  ;;  %v4928_v58 = vld [vmem:[%s7004_s4 + $0x88] ss:$0 sm:$0xff] }
0x2ff7   :  { %419 = vrot.lane.b32.xlu1 %v6111_v16, %s5890_s11  ;;  %s5899_s11 = smov 32  }
0x2ffb   :  { %1246 = vrot.lane.b32.xlu1 %v6256_v2, %s5892_s20 }
0x2fff   :  { %1793 = vrot.lane.b32.xlu1 %v6361_v46, %s5894_s3  ;;  %v4555_v46 = vld [vmem:[%s7004_s4] sm:$0xff] }
0x3003   :  { %2347 = vrot.lane.b32.xlu1 %v6471_v30, %s5895_s17  ;;  %v4556_v30 = vld [vmem:[%s7004_s4 + $0x8] sm:$0xff] }
0x3007   :  { %2894 = vrot.lane.b32.xlu1 %v6571_v21, %s5896_s18  ;;  %v4557_v21 = vld [vmem:[%s7004_s4 + $0x10] sm:$0xff]  ;;  %s5904_s18 = smov 96  }
0x300b   :  { %3448 = vrot.lane.b32.xlu1 %v6676_v15, %s5897_s21  ;;  %s5905_s21 = smov 104  }
0x300f   :  { %3995 = vrot.lane.b32.xlu1 %v6786_v22, %s5898_s22  ;;  %v4559_v22 = vld [vmem:[%s7004_s4 + $0x20] sm:$0xff] }
0x3065   :  { %v4540_v36 = vpop.permute.xlu1 %4539 }
0x3066   :  { %v4542_v16 = vmul.f32 %v4540_v36, %v4529_v19  ;;  %v5614_v19 = vpop.f32.mrb[165].mxu1 }
0x3068   :  { %4544 = vrot.lane.b32.xlu0 %v4542_v16, %s5892_s20 }
0x3069   :  { %v420_v2 = vpop.permute.xlu1 %419 }
0x306a   :  { %423 = vst.msk [vmem:[#allocation2] sm:$0x3] %vm422_vm4, %v420_v2  ;;  %vm4740_vm4 = vcmask 1045504  }
0x306c   :  { %696 = vrot.lane.b32.xlu0 %v6156_v32, %s5893_s28  ;;  %v5901_v32 = vmov 0.0|0.0  }
0x306d   :  { %5671 = vmatprep.subr.bf16.mxu0 %v5901_v32  ;;  %5695 = vmatprep.subr.bf16.mxu1 %v5901_v32  ;;  %v1247_v55 = vpop.permute.xlu1 %1246 }
0x306e   :  { %5697 = vmatpush3.bf16.msra.mxu1 %v5696_v52 }
0x306f   :  { %5698 = vmatprep.subr.bf16.mxu1 %v5901_v32 }
0x3070   :  { %1516 = vrot.lane.b32.xlu0 %v6306_v24, %s5891_s19  ;;  %v5672_v24 = vpack.c.bf16 %v4556_v30, %v4555_v46 }
0x3071   :  { %v1794_v56 = vpop.permute.xlu1 %1793 }
0x3072   :  { %5673 = vmatpush3.bf16.msra.mxu0 %v5672_v24  ;;  %5700 = vmatpush3.bf16.msra.mxu1 %v5699_v6 }
0x3073   :  { %5674 = vmatprep.subr.bf16.mxu0 %v5901_v32  ;;  %5701 = vmatprep.subr.bf16.mxu1 %v5901_v32 }
0x3074   :  { %2070 = vrot.lane.b32.xlu0 %v6421_v3, %s5899_s11  ;;  %v4558_v3 = vld [vmem:[%s7004_s4 + $0x18] sm:$0xff] }
0x3075   :  { %v5675_v15 = vpack.c.bf16 %v4558_v3, %v4557_v21  ;;  %v2348_v1 = vpop.permute.xlu1 %2347 }
0x3076   :  { %5703 = vmatpush3.bf16.msra.mxu1 %v5702_v63 }
0x3077   :  { %5676 = vmatpush3.bf16.msra.mxu0 %v5675_v15  ;;  %5704 = vmatprep.subr.bf16.mxu1 %v5901_v32 }
0x3078   :  { %2617 = vrot.lane.b32.xlu0 %v6521_v54, %s5900_s27  ;;  %v4560_v54 = vld [vmem:[%s7004_s4 + $0x28] sm:$0xff]  ;;  %5677 = vmatprep.subr.bf16.mxu0 %v5901_v32 }
0x3079   :  { %v5678_v61 = vpack.c.bf16 %v4560_v54, %v4559_v22  ;;  %v2895_v28 = vpop.permute.xlu1 %2894 }
0x307a   :  { %5706 = vmatpush3.bf16.msra.mxu1 %v5705_v14 }
0x307b   :  { %5679 = vmatpush3.bf16.msra.mxu0 %v5678_v61  ;;  %5666 = vmatprep.subr.mxu1 %v5888_v10  ;;  %v4929_v10 = vld [vmem:[%s7005_s5 + $0x46] ss:$0 sm:$0xff] }
0x307c   :  { %3171 = vrot.lane.b32.xlu0 %v6621_v27, %s5902_s9  ;;  %5680 = vmatprep.subr.bf16.mxu0 %v5901_v32  ;;  %v4563_v27 = vld [vmem:[%s7004_s4 + $0x40] sm:$0xff] }
0x307d   :  { %v5684_v18 = vpack.c.bf16 %v4564_v13, %v4563_v27  ;;  %v3449_v45 = vpop.permute.xlu1 %3448 }
0x307f   :  { %5682 = vmatpush3.bf16.msra.mxu0 %v5681_v39 }
0x3080   :  { %3718 = vrot.lane.b32.xlu0 %v6736_v44, %s5903_s14  ;;  %5683 = vmatprep.subr.bf16.mxu0 %v5901_v32  ;;  %v4565_v44 = vld [vmem:[%s7004_s4 + $0x50] sm:$0xff]  ;;  %s5906_s4 = smov [#allocation3]  }
0x3081   :  { %v5687_v40 = vpack.c.bf16 %v4566_v38, %v4565_v44  ;;  %v3996_v60 = vpop.permute.xlu1 %3995  ;;  %s4833_s28 = sshll.u32 %s5906_s4, 4  ;;  %s4834_s28 = int_to_ptr.vmem [resolvable:$true] %s4833_s28 }
0x3082   :  { %p5869_p1 = scmp.lt.s32.totalorder %s4834_s28, %s4834_s28 }
0x3083   :  { %5685 = vmatpush3.bf16.msra.mxu0 %v5684_v18 }
0x3084   :  { %4272 = vrot.lane.b32.xlu0 %v6836_v33, %s5904_s18  ;;  %5686 = vmatprep.subr.bf16.mxu0 %v5901_v32  ;;  %v5693_v33 = vpack.c.bf16 %v4570_v37, %v4569_v43 }
0x3087   :  { %5688 = vmatpush3.bf16.msra.mxu0 %v5687_v40 }
0x3088   :  { %5689 = vmatprep.subr.bf16.mxu0 %v5901_v32 }
0x308b   :  { %5691 = vmatpush3.bf16.msra.mxu0 %v5690_v47 }
0x308c   :  { %5692 = vmatprep.subr.bf16.mxu0 %v5901_v32 }
0x308f   :  { %5694 = vmatpush3.bf16.msra.mxu0 %v5693_v33 }
0x30da   :  { %v4545_v25 = vpop.permute.xlu0 %4544 }
0x30db   :  { %v4547_v7 = vadd.f32 %v6856_v23, %v4545_v25  ;;  %v4730_v23 = vld [vmem:[%s7005_s5 + $0x40] sm:$0x3f]  ;;  %s5864_s5 = scalar_lea.vmem %s4834_s28, 32 }
0x30dc   :  { %5667 = vmatpush3.msk.msra.mxu1 %vm4740_vm4, %v4730_v23  ;;  %p5865_p0 = scmp.ne.s32.totalorder %s4834_s28, %s5864_s5  ;;  %p5870_p2 = scmp.lt.s32.totalorder %s5864_s5, %s5864_s5 }
0x30dd   :  { %4549 = vrot.lane.b32.xlu1 %v4547_v7, %s5905_s21 }
0x30de   :  { %v697_v0 = vpop.permute.xlu0 %696  ;;  %p5871_p3 = por %p5870_p2, %p5869_p1 }
0x30df   :  { %700 = vst.msk [vmem:[#allocation2] sm:$0x3] %vm699_vm5, %v697_v0  ;;  %vm4736_vm5 = vcmask 572416  }
0x30e0   :  { %973 = vst.msk [vmem:[#allocation2] sm:$0x3] %vm972_vm6, %v6206_v49  ;;  %vm4814_vm6 = vcmask 25600   ;;  %p5872_p4 = pnand %p5871_p3, %p5865_p0 }
0x30e1   :  { %1250 = vst.msk [vmem:[#allocation2] sm:$0x3] %vm1249_vm7, %v1247_v55 }
0x30e2   :  { %v1517_v8 = vpop.permute.xlu0 %1516 }
0x30e3   :  { %1520 = vst.msk [vmem:[#allocation2] sm:$0x3] %vm1519_vm8, %v1517_v8 }
0x30e4   :  { %1797 = vst.msk [vmem:[#allocation2] sm:$0x3] %vm1796_vm9, %v1794_v56 }
0x30e6   :  { %v2071_v4 = vpop.permute.xlu0 %2070 }
0x30e7   :  { %2074 = vst.msk [vmem:[#allocation2] sm:$0x3] %vm2073_vm10, %v2071_v4 }
0x30e8   :  { %2351 = vst.msk [vmem:[#allocation2] sm:$0x3] %vm2350_vm11, %v2348_v1 }
0x30ea   :  { %v2618_v49 = vpop.permute.xlu0 %2617 }
0x30eb   :  { %2621 = vst.msk [vmem:[#allocation2] sm:$0x3] %vm2620_vm12, %v2618_v49 }
0x30ec   :  { %2898 = vst.msk [vmem:[#allocation2] sm:$0x3] %vm2897_vm13, %v2895_v28 }
0x30ee   :  { %v3172_v48 = vpop.permute.xlu0 %3171 }
0x30ef   :  { %3175 = vst.msk [vmem:[#allocation2] sm:$0x3] %vm3174_vm14, %v3172_v48 }
0x30f0   :  { %3452 = vst.msk [vmem:[#allocation2] sm:$0x3] %vm3451_vm15, %v3449_v45 }
0x30f2   :  { %v3719_v9 = vpop.permute.xlu0 %3718 }
0x30f3   :  { %3722 = vst.msk [vmem:[#allocation2] sm:$0x3] %vm3721_vm0, %v3719_v9 }
0x30f4   :  { %3999 = vst.msk [vmem:[#allocation2] sm:$0x3] %vm3998_vm1, %v3996_v60 }
0x30f6   :  { %v4273_v53 = vpop.permute.xlu0 %4272 }
0x30f7   :  { %4276 = vst.msk [vmem:[#allocation2] sm:$0x3] %vm4275_vm2, %v4273_v53 }
0x314f   :  { %v4550_v11 = vpop.permute.xlu1 %4549 }
0x3150   :  { %4553 = vst.msk [vmem:[#allocation2] sm:$0x3] %vm4552_vm3, %v4550_v11 }
0x3157   :  { %v4554_v5 = vld [vmem:[#allocation2] sm:$0x3] }
0x3158   :  { %5648 = vmatmul.mubr.f32.vlgmr.msra.gmra.mrb[160].mxu0 %v4554_v5 }
0x322b   :  { %v4713_v36 = vpop.f32.mrb[160].mxu0 }
0x322c   :  { %v4714_v16 = vadd.f32 %v4713_v36, %v4643_v17  ;;  %v5649_v2 = vpop.f32.mrb[161].mxu0 }
0x322e   :  { %v4721_v46 = vadd.f32 %v4928_v58, %v4714_v16 }
0x3230   :  { %5669 = vmatmul.mubr.msk.f32.vlgmr.msra.gmra.mrb[166].mxu1 %vm4736_vm5, %v4721_v46 }
0x3303   :  { %v4810_v30 = vpop.f32.mrb[166].mxu1 }
0x3304   :  { %v4811_v21 = vadd.f32 %v4929_v10, %v4810_v30  ;;  %v5670_v32 = vpop.f32.mrb[167].mxu1 }
0x3306   :  { %v4815_v24 = vsel %vm4814_vm6, %v4811_v21, -inf }
0x3307   :  { %4816 = vmax.xlane.f32.xlu0 %v4815_v24 }
0x3394   :  { %v4817_v3 = vpop.xlane.xlu0 %4816 }
0x3395   :  { %v4818_v15 = vsub.f32 %v4811_v21, %v4817_v3 }
0x3397   :  { %v4819_v22 = vmul.f32 1.442695, %v4818_v15 }
0x3399   :  { %5854 = vpow2.f32 %v4819_v22 }
0x33a3   :  { %v5855_v54 = vpop.eup %5854 }
0x33a4   :  { %v4821_v61 = vsel %vm4814_vm6, %v5855_v54, 0.0 }
0x33a5   :  { %4822 = vadd.xlane.f32.xlu1 %v4821_v61 }
0x3432   :  { %v4823_v29 = vpop.xlane.xlu1 %4822 }
0x3433   :  { %5856 = vrcp.f32 %v4823_v29 }
0x343d   :  { %v5857_v34 = vpop.eup %5856 }
0x343e   :  { %v4825_v39 = vmul.f32 %v5857_v34, %v5855_v54 }
0x3440   :  { %4826 = vst.msk [vmem:[#allocation3] sm:$0x3] %vm4814_vm6, %v4825_v39 }
0x3441   :  { %5875 = shalt.err (!%p5872_p4)
}
0x3442   :  { %s5876_s7 = scalar_lea.hbm %s7006_s6, 32 }
0x3443   :  { %p5877_p5 = scmp.ne.s32.totalorder %s7006_s6, %s5876_s7  ;;  %p5880_p6 = scmp.lt.u32.totalorder %s5876_s7, %s7006_s6 }
0x3445   :  { %p5882_p7 = pnand %p5880_p6, %p5877_p5 }
0x3447   :  { %5885 = shalt.err (!%p5882_p7)
}
0x3448   :  { %4836 = dma.vmem_to_hbm [thread:$0]  %s4834_s28, 32, %s7006_s6, [#allocation4]  }
0x3449   :  { %5886 = dma.done.wait [#allocation4], 32  }
0x344a   :  { %5887 = vsyncadd [#allocation4], 4294967264 }
0x344b   :  { %4840 = vsyncpa [#allocation4], 1 }

</bundles_post_ra>
